<compile_context>
chip_gen: v7x
topology: tpu7x:2x2x1
jax: 0.10.0
libtpu: 0.0.40
codegen_flags: <defaults>
</compile_context>

<pallas_src>
import jax
import jax.numpy as jnp
from jax.experimental import pallas as pl
from jax.experimental.pallas import tpu as pltpu

# Layer sizes from the PyTorch module: 1 -> 64 -> 128 -> 64 -> 32 -> 16 -> 1
LAYER_DIMS = [1, 64, 128, 64, 32, 16, 1]
LEAK = 0.2
_HIGH = jax.lax.Precision.HIGHEST


def _mlp_kernel(x_ref,
                w1, b1, w2, b2, w3, b3, w4, b4, w5, b5, w6c, b6,
                o_ref):
    # x_ref: (1, TB)  -> batch tile on the lane axis.
    x_row = x_ref[...]                                 # (1, TB)

    # Layer 1: Linear(1, 64) + ReLU  -- K=1, do it on the VPU (broadcast mul).
    h = w1[...] * x_row + b1[...]                      # (64,1)*(1,TB)+(64,1) -> (64,TB)
    h = jnp.maximum(h, 0.0)

    # Layer 2: Linear(64, 128) + Tanh  (MXU, EUP tanh)
    h = jnp.dot(w2[...], h, preferred_element_type=jnp.float32,
                precision=_HIGH) + b2[...]             # (128, TB)
    h = jnp.tanh(h)

    # Layer 3: Linear(128, 64) + LeakyReLU(0.2)
    h = jnp.dot(w3[...], h, preferred_element_type=jnp.float32,
                precision=_HIGH) + b3[...]             # (64, TB)
    h = jnp.where(h > 0.0, h, LEAK * h)

    # Layer 4: Linear(64, 32) + ReLU
    h = jnp.dot(w4[...], h, preferred_element_type=jnp.float32,
                precision=_HIGH) + b4[...]             # (32, TB)
    h = jnp.maximum(h, 0.0)

    # Layer 5: Linear(32, 16) + Sigmoid
    h = jnp.dot(w5[...], h, preferred_element_type=jnp.float32,
                precision=_HIGH) + b5[...]             # (16, TB)
    h = jax.nn.sigmoid(h)

    # Layer 6: Linear(16, 1) -- N=1, cross-sublane weighted reduction (XLU).
    out = jnp.sum(h * w6c[...], axis=0, keepdims=True) + b6[...]   # (1, TB)

    # Lane-dense store: the full 128-lane width of every vreg is real output.
    o_ref[...] = out


def simple_nn_forward(x, params, *, block_batch=2048):
    """x: [batch, 1] float32. params: list of (W [out,in], b [out]) in PyTorch layout."""
    batch = x.shape[0]
    tb = max(128, (block_batch // 128) * 128)          # lane-aligned batch tile
    padded = pl.cdiv(batch, tb) * tb
    grid = padded // tb

    # Lane-dense presentation of x: (1, padded), batch on the last (lane) axis.
    x_flat = jnp.pad(x.reshape(-1).astype(jnp.float32), (0, padded - batch))
    x_row = x_flat.reshape(1, padded)

    # Weights stay in PyTorch (out, in) layout; biases become (out, 1) columns.
    # Last layer's weight is pre-transposed to a (16, 1) column for the reduction.
    (w1, b1), (w2, b2), (w3, b3), (w4, b4), (w5, b5), (w6, b6) = params
    flat = [
        w1, b1.reshape(-1, 1),
        w2, b2.reshape(-1, 1),
        w3, b3.reshape(-1, 1),
        w4, b4.reshape(-1, 1),
        w5, b5.reshape(-1, 1),
        w6.T, b6.reshape(1, 1),
    ]

    in_specs = [pl.BlockSpec((1, tb), lambda i: (0, i))]
    for a in flat:
        # Full-array block, constant index_map -> stays resident in VMEM across steps.
        in_specs.append(pl.BlockSpec(a.shape, lambda i: (0, 0)))

    out_shape = jax.ShapeDtypeStruct((1, padded), jnp.float32)
    out_spec = pl.BlockSpec((1, tb), lambda i: (0, i))

    out_row = pl.pallas_call(
        _mlp_kernel,
        out_shape=out_shape,
        grid=(grid,),
        in_specs=in_specs,
        out_specs=out_spec,
        compiler_params=pltpu.CompilerParams(
            dimension_semantics=("parallel",)),
    )(x_row, *flat)

    return out_row.reshape(-1)[:batch].reshape(batch, 1)


def init_params(key):
    """Deterministic init mimicking nn.Linear: U(-1/sqrt(fan_in), 1/sqrt(fan_in)).

    Returns params in PyTorch layout: W has shape (out_features, in_features),
    b has shape (out_features,).
    """
    params = []
    for i in range(len(LAYER_DIMS) - 1):
        fan_in, fan_out = LAYER_DIMS[i], LAYER_DIMS[i + 1]
        key, kw, kb = jax.random.split(key, 3)
        bound = 1.0 / jnp.sqrt(jnp.float32(fan_in))
        w = jax.random.uniform(kw, (fan_out, fan_in), jnp.float32, -bound, bound)
        b = jax.random.uniform(kb, (fan_out,), jnp.float32, -bound, bound)
        params.append((w, b))
    return params


def reference_forward(x, params):
    """Pure-JAX reference (PyTorch-layout params) for correctness checking."""
    acts = [
        lambda v: jnp.maximum(v, 0.0),
        jnp.tanh,
        lambda v: jnp.where(v > 0.0, v, LEAK * v),
        lambda v: jnp.maximum(v, 0.0),
        jax.nn.sigmoid,
        lambda v: v,
    ]
    h = x
    for (w, b), act in zip(params, acts):
        h = act(jnp.dot(h, w.T, precision=_HIGH) + b)
    return h


if __name__ == "__main__":
    key = jax.random.PRNGKey(0)
    key, kx = jax.random.split(key)

    batch = 1000                      # deliberately not a multiple of the tile
    x = jax.random.normal(kx, (batch, 1), jnp.float32)
    params = init_params(key)

    out = simple_nn_forward(x, params, block_batch=256)   # grid of 4 batch tiles
    out = jax.block_until_ready(out)

    ref = reference_forward(x, params)
    assert out.shape == (batch, 1)
    assert jnp.allclose(out, ref, atol=1e-4, rtol=1e-4), \
        float(jnp.max(jnp.abs(out - ref)))

    print("KERNEL_OK")
</pallas_src>

<mosaic_0001>
module attributes {stable_mosaic.version = 11 : i64} {
  func.func @_mlp_kernel(%arg0: i32, %arg1: memref<1x256xf32, #tpu.memory_space<vmem>>, %arg2: memref<64x1xf32, #tpu.memory_space<vmem>>, %arg3: memref<64x1xf32, #tpu.memory_space<vmem>>, %arg4: memref<128x64xf32, #tpu.memory_space<vmem>>, %arg5: memref<128x1xf32, #tpu.memory_space<vmem>>, %arg6: memref<64x128xf32, #tpu.memory_space<vmem>>, %arg7: memref<64x1xf32, #tpu.memory_space<vmem>>, %arg8: memref<32x64xf32, #tpu.memory_space<vmem>>, %arg9: memref<32x1xf32, #tpu.memory_space<vmem>>, %arg10: memref<16x32xf32, #tpu.memory_space<vmem>>, %arg11: memref<16x1xf32, #tpu.memory_space<vmem>>, %arg12: memref<16x1xf32, #tpu.memory_space<vmem>>, %arg13: memref<1x1xf32, #tpu.memory_space<vmem>>, %arg14: memref<1x256xf32, #tpu.memory_space<vmem>>) attributes {dimension_semantics = [#tpu.dimension_semantics<parallel>], iteration_bounds = array<i64: 4>, scalar_prefetch = 0 : i64, scratch_operands = 0 : i64, tpu.core_type = #tpu.core_type<tc>, window_params = [{transform_indices = @transform_0, window_bounds = array<i64: 1, 256>}, {pipeline_mode = #tpu.pipeline_mode<synchronous>, transform_indices = @transform_1, window_bounds = array<i64: 64, 1>}, {pipeline_mode = #tpu.pipeline_mode<synchronous>, transform_indices = @transform_2, window_bounds = array<i64: 64, 1>}, {pipeline_mode = #tpu.pipeline_mode<synchronous>, transform_indices = @transform_3, window_bounds = array<i64: 128, 64>}, {pipeline_mode = #tpu.pipeline_mode<synchronous>, transform_indices = @transform_4, window_bounds = array<i64: 128, 1>}, {pipeline_mode = #tpu.pipeline_mode<synchronous>, transform_indices = @transform_5, window_bounds = array<i64: 64, 128>}, {pipeline_mode = #tpu.pipeline_mode<synchronous>, transform_indices = @transform_6, window_bounds = array<i64: 64, 1>}, {pipeline_mode = #tpu.pipeline_mode<synchronous>, transform_indices = @transform_7, window_bounds = array<i64: 32, 64>}, {pipeline_mode = #tpu.pipeline_mode<synchronous>, transform_indices = @transform_8, window_bounds = array<i64: 32, 1>}, {pipeline_mode = #tpu.pipeline_mode<synchronous>, transform_indices = @transform_9, window_bounds = array<i64: 16, 32>}, {pipeline_mode = #tpu.pipeline_mode<synchronous>, transform_indices = @transform_10, window_bounds = array<i64: 16, 1>}, {pipeline_mode = #tpu.pipeline_mode<synchronous>, transform_indices = @transform_11, window_bounds = array<i64: 16, 1>}, {pipeline_mode = #tpu.pipeline_mode<synchronous>, transform_indices = @transform_12, window_bounds = array<i64: 1, 1>}, {transform_indices = @transform_13, window_bounds = array<i64: 1, 256>}]} {
    %c0 = arith.constant 0 : index
    %c0_0 = arith.constant 0 : index
    %0 = vector.load %arg1[%c0, %c0_0] : memref<1x256xf32, #tpu.memory_space<vmem>>, vector<1x256xf32>
    %c0_1 = arith.constant 0 : index
    %c0_2 = arith.constant 0 : index
    %1 = vector.load %arg2[%c0_1, %c0_2] : memref<64x1xf32, #tpu.memory_space<vmem>>, vector<64x1xf32>
    %2 = vector.broadcast %1 : vector<64x1xf32> to vector<64x256xf32>
    %3 = vector.broadcast %0 : vector<1x256xf32> to vector<64x256xf32>
    %4 = arith.mulf %2, %3 : vector<64x256xf32>
    %c0_3 = arith.constant 0 : index
    %c0_4 = arith.constant 0 : index
    %5 = vector.load %arg3[%c0_3, %c0_4] : memref<64x1xf32, #tpu.memory_space<vmem>>, vector<64x1xf32>
    %6 = vector.broadcast %5 : vector<64x1xf32> to vector<64x256xf32>
    %7 = arith.addf %4, %6 : vector<64x256xf32>
    %cst = arith.constant 0.000000e+00 : f32
    %8 = vector.broadcast %cst : f32 to vector<64x256xf32>
    %9 = arith.maximumf %7, %8 : vector<64x256xf32>
    %c0_5 = arith.constant 0 : index
    %c0_6 = arith.constant 0 : index
    %10 = vector.load %arg4[%c0_5, %c0_6] : memref<128x64xf32, #tpu.memory_space<vmem>>, vector<128x64xf32>
    %cst_7 = arith.constant dense<0.000000e+00> : vector<128x256xf32>
    %11 = tpu.matmul %10, %9, %cst_7 {dimension_numbers = #tpu.dot_dimension_numbers<[1], [0], [0], [1], [0, 0, 1, 1], [], []>, precision = #tpu.contract_precision<fp32>} : vector<128x64xf32>, vector<64x256xf32>, vector<128x256xf32> -> vector<128x256xf32>
    %c0_8 = arith.constant 0 : index
    %c0_9 = arith.constant 0 : index
    %12 = vector.load %arg5[%c0_8, %c0_9] : memref<128x1xf32, #tpu.memory_space<vmem>>, vector<128x1xf32>
    %13 = vector.broadcast %12 : vector<128x1xf32> to vector<128x256xf32>
    %14 = arith.addf %11, %13 : vector<128x256xf32>
    %15 = math.tanh %14 : vector<128x256xf32>
    %c0_10 = arith.constant 0 : index
    %c0_11 = arith.constant 0 : index
    %16 = vector.load %arg6[%c0_10, %c0_11] : memref<64x128xf32, #tpu.memory_space<vmem>>, vector<64x128xf32>
    %cst_12 = arith.constant dense<0.000000e+00> : vector<64x256xf32>
    %17 = tpu.matmul %16, %15, %cst_12 {dimension_numbers = #tpu.dot_dimension_numbers<[1], [0], [0], [1], [0, 0, 1, 1], [], []>, precision = #tpu.contract_precision<fp32>} : vector<64x128xf32>, vector<128x256xf32>, vector<64x256xf32> -> vector<64x256xf32>
    %c0_13 = arith.constant 0 : index
    %c0_14 = arith.constant 0 : index
    %18 = vector.load %arg7[%c0_13, %c0_14] : memref<64x1xf32, #tpu.memory_space<vmem>>, vector<64x1xf32>
    %19 = vector.broadcast %18 : vector<64x1xf32> to vector<64x256xf32>
    %20 = arith.addf %17, %19 : vector<64x256xf32>
    %cst_15 = arith.constant 0.000000e+00 : f32
    %21 = vector.broadcast %cst_15 : f32 to vector<64x256xf32>
    %22 = arith.cmpf ogt, %20, %21 : vector<64x256xf32>
    %cst_16 = arith.constant 2.000000e-01 : f32
    %23 = vector.broadcast %cst_16 : f32 to vector<64x256xf32>
    %24 = arith.mulf %23, %20 : vector<64x256xf32>
    %25 = arith.select %22, %20, %24 : vector<64x256xi1>, vector<64x256xf32>
    %c0_17 = arith.constant 0 : index
    %c0_18 = arith.constant 0 : index
    %26 = vector.load %arg8[%c0_17, %c0_18] : memref<32x64xf32, #tpu.memory_space<vmem>>, vector<32x64xf32>
    %cst_19 = arith.constant dense<0.000000e+00> : vector<32x256xf32>
    %27 = tpu.matmul %26, %25, %cst_19 {dimension_numbers = #tpu.dot_dimension_numbers<[1], [0], [0], [1], [0, 0, 1, 1], [], []>, precision = #tpu.contract_precision<fp32>} : vector<32x64xf32>, vector<64x256xf32>, vector<32x256xf32> -> vector<32x256xf32>
    %c0_20 = arith.constant 0 : index
    %c0_21 = arith.constant 0 : index
    %28 = vector.load %arg9[%c0_20, %c0_21] : memref<32x1xf32, #tpu.memory_space<vmem>>, vector<32x1xf32>
    %29 = vector.broadcast %28 : vector<32x1xf32> to vector<32x256xf32>
    %30 = arith.addf %27, %29 : vector<32x256xf32>
    %cst_22 = arith.constant 0.000000e+00 : f32
    %31 = vector.broadcast %cst_22 : f32 to vector<32x256xf32>
    %32 = arith.maximumf %30, %31 : vector<32x256xf32>
    %c0_23 = arith.constant 0 : index
    %c0_24 = arith.constant 0 : index
    %33 = vector.load %arg10[%c0_23, %c0_24] : memref<16x32xf32, #tpu.memory_space<vmem>>, vector<16x32xf32>
    %cst_25 = arith.constant dense<0.000000e+00> : vector<16x256xf32>
    %34 = tpu.matmul %33, %32, %cst_25 {dimension_numbers = #tpu.dot_dimension_numbers<[1], [0], [0], [1], [0, 0, 1, 1], [], []>, precision = #tpu.contract_precision<fp32>} : vector<16x32xf32>, vector<32x256xf32>, vector<16x256xf32> -> vector<16x256xf32>
    %c0_26 = arith.constant 0 : index
    %c0_27 = arith.constant 0 : index
    %35 = vector.load %arg11[%c0_26, %c0_27] : memref<16x1xf32, #tpu.memory_space<vmem>>, vector<16x1xf32>
    %36 = vector.broadcast %35 : vector<16x1xf32> to vector<16x256xf32>
    %37 = arith.addf %34, %36 : vector<16x256xf32>
    %38 = arith.negf %37 : vector<16x256xf32>
    %39 = math.exp %38 : vector<16x256xf32>
    %cst_28 = arith.constant 1.000000e+00 : f32
    %40 = vector.broadcast %cst_28 : f32 to vector<16x256xf32>
    %41 = arith.addf %40, %39 : vector<16x256xf32>
    %42 = arith.divf %40, %41 : vector<16x256xf32>
    %c0_29 = arith.constant 0 : index
    %c0_30 = arith.constant 0 : index
    %43 = vector.load %arg12[%c0_29, %c0_30] : memref<16x1xf32, #tpu.memory_space<vmem>>, vector<16x1xf32>
    %44 = vector.broadcast %43 : vector<16x1xf32> to vector<16x256xf32>
    %45 = arith.mulf %42, %44 : vector<16x256xf32>
    %cst_31 = arith.constant dense<0.000000e+00> : vector<256xf32>
    %46 = vector.multi_reduction <add>, %45, %cst_31 [0] : vector<16x256xf32> to vector<256xf32>
    %47 = vector.shape_cast %46 : vector<256xf32> to vector<1x256xf32>
    %c0_32 = arith.constant 0 : index
    %c0_33 = arith.constant 0 : index
    %48 = vector.load %arg13[%c0_32, %c0_33] : memref<1x1xf32, #tpu.memory_space<vmem>>, vector<1x1xf32>
    %49 = vector.broadcast %48 : vector<1x1xf32> to vector<1x256xf32>
    %50 = arith.addf %47, %49 : vector<1x256xf32>
    %c0_34 = arith.constant 0 : index
    %c0_35 = arith.constant 0 : index
    %51 = vector.load %arg14[%c0_34, %c0_35] : memref<1x256xf32, #tpu.memory_space<vmem>>, vector<1x256xf32>
    tpu.vector_store %arg14[%c0_34, %c0_35], %50 {strides = array<i32>} : memref<1x256xf32, #tpu.memory_space<vmem>>, vector<1x256xf32>,
    return
  }
  func.func @transform_0(%arg0: i32) -> (i32, i32) {
    %c0_i32 = arith.constant 0 : i32
    %c0_i32_0 = arith.constant 0 : i32
    return %c0_i32, %arg0 : i32, i32
  }
  func.func @transform_1(%arg0: i32) -> (i32, i32) {
    %c0_i32 = arith.constant 0 : i32
    %c0_i32_0 = arith.constant 0 : i32
    %c0_i32_1 = arith.constant 0 : i32
    return %c0_i32, %c0_i32_0 : i32, i32
  }
  func.func @transform_2(%arg0: i32) -> (i32, i32) {
    %c0_i32 = arith.constant 0 : i32
    %c0_i32_0 = arith.constant 0 : i32
    %c0_i32_1 = arith.constant 0 : i32
    return %c0_i32, %c0_i32_0 : i32, i32
  }
  func.func @transform_3(%arg0: i32) -> (i32, i32) {
    %c0_i32 = arith.constant 0 : i32
    %c0_i32_0 = arith.constant 0 : i32
    %c0_i32_1 = arith.constant 0 : i32
    return %c0_i32, %c0_i32_0 : i32, i32
  }
  func.func @transform_4(%arg0: i32) -> (i32, i32) {
    %c0_i32 = arith.constant 0 : i32
    %c0_i32_0 = arith.constant 0 : i32
    %c0_i32_1 = arith.constant 0 : i32
    return %c0_i32, %c0_i32_0 : i32, i32
  }
  func.func @transform_5(%arg0: i32) -> (i32, i32) {
    %c0_i32 = arith.constant 0 : i32
    %c0_i32_0 = arith.constant 0 : i32
    %c0_i32_1 = arith.constant 0 : i32
    return %c0_i32, %c0_i32_0 : i32, i32
  }
  func.func @transform_6(%arg0: i32) -> (i32, i32) {
    %c0_i32 = arith.constant 0 : i32
    %c0_i32_0 = arith.constant 0 : i32
    %c0_i32_1 = arith.constant 0 : i32
    return %c0_i32, %c0_i32_0 : i32, i32
  }
  func.func @transform_7(%arg0: i32) -> (i32, i32) {
    %c0_i32 = arith.constant 0 : i32
    %c0_i32_0 = arith.constant 0 : i32
    %c0_i32_1 = arith.constant 0 : i32
    return %c0_i32, %c0_i32_0 : i32, i32
  }
  func.func @transform_8(%arg0: i32) -> (i32, i32) {
    %c0_i32 = arith.constant 0 : i32
    %c0_i32_0 = arith.constant 0 : i32
    %c0_i32_1 = arith.constant 0 : i32
    return %c0_i32, %c0_i32_0 : i32, i32
  }
  func.func @transform_9(%arg0: i32) -> (i32, i32) {
    %c0_i32 = arith.constant 0 : i32
    %c0_i32_0 = arith.constant 0 : i32
    %c0_i32_1 = arith.constant 0 : i32
    return %c0_i32, %c0_i32_0 : i32, i32
  }
  func.func @transform_10(%arg0: i32) -> (i32, i32) {
    %c0_i32 = arith.constant 0 : i32
    %c0_i32_0 = arith.constant 0 : i32
    %c0_i32_1 = arith.constant 0 : i32
    return %c0_i32, %c0_i32_0 : i32, i32
  }
  func.func @transform_11(%arg0: i32) -> (i32, i32) {
    %c0_i32 = arith.constant 0 : i32
    %c0_i32_0 = arith.constant 0 : i32
    %c0_i32_1 = arith.constant 0 : i32
    return %c0_i32, %c0_i32_0 : i32, i32
  }
  func.func @transform_12(%arg0: i32) -> (i32, i32) {
    %c0_i32 = arith.constant 0 : i32
    %c0_i32_0 = arith.constant 0 : i32
    %c0_i32_1 = arith.constant 0 : i32
    return %c0_i32, %c0_i32_0 : i32, i32
  }
  func.func @transform_13(%arg0: i32) -> (i32, i32) {
    %c0_i32 = arith.constant 0 : i32
    %c0_i32_0 = arith.constant 0 : i32
    return %c0_i32, %arg0 : i32, i32
  }
}

</mosaic_0001>

<bundles_post_ra>
// kernel: tpu_custom_call.1
= control target key start
LH: loop header
LB: loop body
LE: loop exit
PB: predicated region body
PF: predicated region fallthrough
CT: control target
= control target key end

     0   :  { %s8136_s0 = inlined_call_operand.vmem [shape: f32[1,1024], index: 0, kind: input, shape index: {}]   ;;  %s8137_s1 = inlined_call_operand.vmem [shape: f32[64,1], index: 1, kind: input, shape index: {}]   ;;  %s8138_s2 = inlined_call_operand.vmem [shape: f32[64,1], index: 2, kind: input, shape index: {}]   ;;  %s8139_s3 = inlined_call_operand.vmem [shape: f32[128,64], index: 3, kind: input, shape index: {}]   ;;  %s8140_s4 = inlined_call_operand.vmem [shape: f32[128,1], index: 4, kind: input, shape index: {}]   ;;  %s8141_s5 = inlined_call_operand.vmem [shape: f32[64,128], index: 5, kind: input, shape index: {}]   ;;  %s8142_s6 = inlined_call_operand.vmem [shape: f32[64,1], index: 6, kind: input, shape index: {}]   ;;  %s8143_s7 = inlined_call_operand.vmem [shape: f32[32,64], index: 7, kind: input, shape index: {}]   ;;  %s8144_s8 = inlined_call_operand.vmem [shape: f32[32,1], index: 8, kind: input, shape index: {}]   ;;  %s8145_s9 = inlined_call_operand.vmem [shape: f32[16,32], index: 9, kind: input, shape index: {}]   ;;  %s8146_s10 = inlined_call_operand.vmem [shape: f32[16,1], index: 10, kind: input, shape index: {}]   ;;  %s8147_s11 = inlined_call_operand.vmem [shape: f32[16,1], index: 11, kind: input, shape index: {}]   ;;  %s8148_s12 = inlined_call_operand.<no memory space> [shape: f32[1,1], index: 12, kind: input, shape index: {}]   ;;  %s8149_s13 = inlined_call_operand.hbm [shape: f32[1,1024], index: 13, kind: output, shape index: {}]  }
   0x1   :  { %8286 = sst [smem:[#allocation51_spill]] %s8136_s0  ;;  %v18_v0 = vstv %s8148_s12 }
   0x2   :  { %19 = vst [vmem:[#allocation2] sm:$0x1] %v18_v0 }
   0x3   :  { %20 = vsyncpa [#allocation4], 0 }
   0x4   :  { %22 = vsyncpa [#allocation4 + $0x1], 0  ;;  %s6162_s27 = smov 0   ;;  %s6164_s28 = smov 0  }
   0x5   :  { %s6166_s29 = smov 0   ;;  %s6168_s30 = smov 0  }
   0x6 LB: > { %s6183_s12 = sadd.s32 4294967295, %s6083_s30   ;;  %s5089_s14 = sadd.s32 4294967294, %s6083_s30   ;;  %s6083_s30 = sphi %s6168_s30, %s8510_s30   ;;  %s6079_s29 = sphi %s6166_s29, %s8509_s29   ;;  %s6075_s28 = sphi %s6164_s28, %s8508_s28   ;;  %s6071_s27 = sphi %s6162_s27, %s8507_s27  }
   0x7   : > { %s6187_s15 = sadd.s32 1, %s6083_s30   ;;  %s313_s16 = sadd.s32 1, %s6079_s29 }
   0x8   : > { %s310_s17 = ssub.s32 %s6083_s30, %s6187_s15  ;;  %p323_p0 = scmp.ne.s32.totalorder %s6079_s29, %s6075_s28 }
   0x9   : > { %p311_p1 = scmp.eq.s32.totalorder %s310_s17, 0  ;;  %p324_p2 = scmp.eq.s32.totalorder %s6183_s12, 3 }
   0xa   : > { %p329_p3 = scmp.ne.s32.totalorder %s6075_s28, %s6071_s27  ;;  %p330_p4 = scmp.eq.s32.totalorder %s5089_s14, 3 }
   0xb   : > { %s6198_s18 = scalar_select %p311_p1, %s6079_s29, %s313_s16  }
   0xc   : > { %p6200_p5 = por %p324_p2, %p323_p0  ;;  %p6204_p6 = por %p330_p4, %p329_p3 }
   0xd   : > { %8287 = sst [smem:[#allocation6_spill]] %s6198_s18  ;;  %p5092_p7 = scmp.ge.s32.totalorder %s6083_s30, 1 }
   0xe   : > { %p392_p8 = scmp.lt.s32.totalorder %s6083_s30, 5 }
  0x10   : > { %p393_p9 = pnand %p5092_p7, %p392_p8 }
  0x12   : > { %396 = sbr.rel (%p393_p9) target bundleno = 1874 (0x752), region = 72 }
  0x19   : > { %v517_v1 = vld [vmem:[%s8138_s2] sm:$0xff]  ;;  %v6085_v3 = vmov 0   ;;  %v518_v4 = vld [vmem:[%s8138_s2 + $0x8] sm:$0xff]  ;;  %v445_v6 = vld [vmem:[%s8137_s1 + $0x18] sm:$0xff]  ;;  %v8161_v26 = vmov 0.0   ;;  %s5094_s14 = sshll.u32 %s6183_s12, 1  ;;  %v8150_v52 = vlaneseq }
  0x1a   : > { %v442_v2 = vld [vmem:[%s8137_s1] sm:$0xff]  ;;  %5940 = vset.pattern.permute.xlu1 %v6085_v3  ;;  %5939 = vset.pattern.permute.xlu0 %v6085_v3  ;;  %v443_v5 = vld [vmem:[%s8137_s1 + $0x8] sm:$0xff]  ;;  %v444_v7 = vld [vmem:[%s8137_s1 + $0x10] sm:$0xff]  ;;  %p436_p10 = scmp.lt.s32.totalorder %s5094_s14, 7  ;;  %vm709_vm0 = vcmask 523264   ;;  %s8291_s0 = sld [smem:[#allocation51_spill]] }
  0x1b   : > { %527 = vperm.xlu1 %5940, %v517_v1   ;;  %452 = vperm.xlu0 %5939, %v442_v2   ;;  %v520_v8 = vld [vmem:[%s8138_s2 + $0x18] sm:$0xff]  ;;  %v519_v9 = vld [vmem:[%s8138_s2 + $0x10] sm:$0xff]  ;;  %v447_v10 = vld [vmem:[%s8137_s1 + $0x28] sm:$0xff]  ;;  %v6367_v56 = vshrl.u32 %v8150_v52, 7  ;;  %s432_s22 = sand.u32 1, %s6075_s28   ;;  %s5104_s18 = sshll.u32 %s6183_s12, 5 }
  0x1c   : > { %v446_v11 = vld [vmem:[%s8137_s1 + $0x20] sm:$0xff]  ;;  %v522_v12 = vld [vmem:[%s8138_s2 + $0x28] sm:$0xff]  ;;  %v449_v14 = vld [vmem:[%s8137_s1 + $0x38] sm:$0xff]  ;;  %838 = vmatprep.mubr.f32.mxu0 %v8161_v26  ;;  %2324 = vmatprep.mubr.f32.mxu1 %v8161_v26  ;;  %s8512_s14 = smov (!%p436_p10, %s5094_s14), 7  ;;  %s5093_s23 = sshll.u32 %s432_s22, 1 }
  0x1d   : > { %v521_v13 = vld [vmem:[%s8138_s2 + $0x20] sm:$0xff]  ;;  %v448_v15 = vld [vmem:[%s8137_s1 + $0x30] sm:$0xff]  ;;  %v524_v16 = vld [vmem:[%s8138_s2 + $0x38] sm:$0xff]  ;;  %8290 = vst [vmem:[#allocation7_spill] sm:$0xff] %v6367_v56  ;;  %v8151_v63 = vsub.s32 0, %v6367_v56  ;;  %v497_v0 = vsub.s32 1, %v6367_v56  ;;  %s8094_s16 = scalar_lea.hbm %s8149_s13, %s5104_s18 }
  0x1e   : > { %v523_v17 = vld [vmem:[%s8138_s2 + $0x30] sm:$0xff]  ;;  %v614_v18 = vld [vmem:[%s8140_s4 + $0x8] sm:$0xff]  ;;  %v613_v19 = vld [vmem:[%s8140_s4] sm:$0xff]  ;;  %s434_s24 = scalar_lea.vmem [#allocation3], %s5093_s23  ;;  %s5019_s17 = scalar_lea.sflag [#allocation4], %s432_s22 }
  0x1f   : > { %532 = vperm.xlu1 %5940, %v518_v4   ;;  %457 = vperm.xlu0 %5939, %v443_v5   ;;  %v616_v20 = vld [vmem:[%s8140_s4 + $0x18] sm:$0xff]  ;;  %v615_v21 = vld [vmem:[%s8140_s4 + $0x10] sm:$0xff]  ;;  %v618_v22 = vld [vmem:[%s8140_s4 + $0x28] sm:$0xff]  ;;  %s5033_s25 = sshll.u32 %s434_s24, 4  ;;  %s6088_s12 = smov [#allocation3]   ;;  %s8096_s25 = int_to_ptr.vmem [resolvable:$true] %s5033_s25 }
  0x20   : > { %v617_v23 = vld [vmem:[%s8140_s4 + $0x20] sm:$0xff]  ;;  %v620_v24 = vld [vmem:[%s8140_s4 + $0x38] sm:$0xff]  ;;  %v619_v25 = vld [vmem:[%s8140_s4 + $0x30] sm:$0xff]  ;;  %s438_s26 = scalar_lea.vmem %s8291_s0, %s8512_s14  ;;  %s6021_s21 = scalar_lea.vmem %s8096_s25, 32 }
  0x21   : > { %v622_v27 = vld [vmem:[%s8140_s4 + $0x48] sm:$0xff]  ;;  %v621_v28 = vld [vmem:[%s8140_s4 + $0x40] sm:$0xff]  ;;  %v624_v29 = vld [vmem:[%s8140_s4 + $0x58] sm:$0xff]  ;;  %p6022_p11 = scmp.ne.s32.totalorder %s8096_s25, %s6021_s21  ;;  %s6025_s23 = sshll.u32 %s6088_s12, 4  ;;  %s6026_s23 = int_to_ptr.vmem [resolvable:$false] %s6025_s23 }
  0x22   : > { %v623_v30 = vld [vmem:[%s8140_s4 + $0x50] sm:$0xff]  ;;  %v626_v31 = vld [vmem:[%s8140_s4 + $0x68] sm:$0xff]  ;;  %v625_v32 = vld [vmem:[%s8140_s4 + $0x60] sm:$0xff]  ;;  %s6027_s0 = scalar_lea.vmem %s6026_s23, 64  ;;  %p6028_p0 = scmp.lt.s32.totalorder %s8096_s25, %s6026_s23 }
  0x23   : > { %467 = vperm.xlu1 %5940, %v445_v6   ;;  %462 = vperm.xlu0 %5939, %v444_v7   ;;  %v628_v33 = vld [vmem:[%s8140_s4 + $0x78] sm:$0xff]  ;;  %v627_v34 = vld [vmem:[%s8140_s4 + $0x70] sm:$0xff]  ;;  %v2181_v35 = vld [vmem:[%s8142_s6 + $0x8] sm:$0xff]  ;;  %p6023_p12 = pnand %p6022_p11, %p6200_p5  ;;  %p6029_p1 = scmp.lt.s32.totalorder %s6027_s0, %s6021_s21 }
  0x24   : > { %v2180_v36 = vld [vmem:[%s8142_s6] sm:$0xff]  ;;  %v2183_v37 = vld [vmem:[%s8142_s6 + $0x18] sm:$0xff]  ;;  %v2182_v38 = vld [vmem:[%s8142_s6 + $0x10] sm:$0xff] }
  0x25   : > { %v2185_v39 = vld [vmem:[%s8142_s6 + $0x28] sm:$0xff]  ;;  %v2184_v40 = vld [vmem:[%s8142_s6 + $0x20] sm:$0xff]  ;;  %v2187_v41 = vld [vmem:[%s8142_s6 + $0x38] sm:$0xff]  ;;  %p6024_p13 = pneg %p6023_p12  ;;  %p6030_p2 = por %p6029_p1, %p6028_p0 }
  0x26   : > { %v2186_v42 = vld [vmem:[%s8142_s6 + $0x30] sm:$0xff]  ;;  %v3479_v43 = vld [vmem:[%s8144_s8 + $0x8] sm:$0xff]  ;;  %v3478_v44 = vld [vmem:[%s8144_s8] sm:$0xff] }
  0x27   : > { %542 = vperm.xlu1 %5940, %v520_v8   ;;  %537 = vperm.xlu0 %5939, %v519_v9   ;;  %v3481_v45 = vld [vmem:[%s8144_s8 + $0x18] sm:$0xff]  ;;  %v3480_v46 = vld [vmem:[%s8144_s8 + $0x10] sm:$0xff]  ;;  %v4319_v47 = vld [vmem:[%s8146_s10 + $0x8] sm:$0xff]  ;;  %p6031_p3 = pnand %p6030_p2, %p6024_p13 }
  0x28   : > { %v4318_v48 = vld [vmem:[%s8146_s10] sm:$0xff]  ;;  %v4954_v49 = vld [vmem:[%s8147_s11 + $0x8] sm:$0xff]  ;;  %v599_v55 = vld [vmem:[%s8139_s3 + $0x10] sm:$0xff] }
  0x29   : > { %v4953_v50 = vld [vmem:[%s8147_s11] sm:$0xff]  ;;  %v598_v54 = vld [vmem:[%s8139_s3 + $0x8] sm:$0xff]  ;;  %v717_v59 = vsel %vm709_vm0, %v599_v55, 0  ;;  %v600_v5 = vld [vmem:[%s8139_s3 + $0x18] sm:$0xff] }
  0x2a   : > { %v4983_v51 = vld [vmem:[#allocation2] sm:$0x1]  ;;  %v714_v58 = vsel %vm709_vm0, %v598_v54, 0  ;;  %v6379_v62 = vand.u32 4294901760, %v717_v59  ;;  %v720_v8 = vsel %vm709_vm0, %v600_v5, 0 }
  0x2b   : > { %477 = vperm.xlu1 %5940, %v447_v10   ;;  %472 = vperm.xlu0 %5939, %v446_v11   ;;  %v597_v53 = vld [vmem:[%s8139_s3] sm:$0xff]  ;;  %v6377_v61 = vand.u32 4294901760, %v714_v58 }
  0x2c   : > { %v711_v57 = vsel %vm709_vm0, %v597_v53, 0  ;;  %v441_v1 = vld [vmem:[%s438_s26] sm:$0x3]  ;;  %v6390_v4 = vsub.f32 %v717_v59, %v6379_v62 }
  0x2d   : > { %v6375_v60 = vand.u32 4294901760, %v711_v57  ;;  %v6387_v3 = vsub.f32 %v714_v58, %v6377_v61  ;;  %v6397_v6 = vrot.slane %v441_v1, %v8151_v63  ;;  %v6399_v7 = vrot.slane %v441_v1, %v497_v0 }
  0x2e   : > { %8293 = vst [vmem:[#allocation9_spill] sm:$0xff] %v6390_v4 }
  0x2f   : > { %552 = vperm.xlu1 %5940, %v522_v12   ;;  %547 = vperm.xlu0 %5939, %v521_v13   ;;  %v6384_v2 = vsub.f32 %v711_v57, %v6375_v60  ;;  %8292 = vst [vmem:[#allocation8_spill] sm:$0xff] %v6387_v3  ;;  %v8154_v12 = vand.u32 4294901760, %v6387_v3  ;;  %v8153_v13 = vand.u32 4294901760, %v6390_v4 }
  0x31   : > { %v8155_v11 = vand.u32 4294901760, %v6384_v2 }
  0x33   : > { %487 = vperm.xlu1 %5940, %v449_v14   ;;  %482 = vperm.xlu0 %5939, %v448_v15  }
  0x37   : > { %562 = vperm.xlu1 %5940, %v524_v16   ;;  %557 = vperm.xlu0 %5939, %v523_v17   ;;  %v601_v16 = vld [vmem:[%s8139_s3 + $0x20] sm:$0xff]  ;;  %v6410_v17 = vand.u32 4294901760, %v720_v8 }
  0x3b   : > { %636 = vperm.xlu1 %5940, %v614_v18   ;;  %631 = vperm.xlu0 %5939, %v613_v19  }
  0x3f   : > { %646 = vperm.xlu1 %5940, %v616_v20   ;;  %641 = vperm.xlu0 %5939, %v615_v21  }
  0x43   : > { %656 = vperm.xlu1 %5940, %v618_v22   ;;  %651 = vperm.xlu0 %5939, %v617_v23   ;;  %v6415_v22 = vsub.f32 %v6384_v2, %v8155_v11  ;;  %v6420_v23 = vsub.f32 %v6387_v3, %v8154_v12 }
  0x47   : > { %666 = vperm.xlu1 %5940, %v620_v24   ;;  %661 = vperm.xlu0 %5939, %v619_v25   ;;  %v6425_v24 = vsub.f32 %v6390_v4, %v8153_v13  ;;  %v723_v25 = vsel %vm709_vm0, %v601_v16, 0 }
  0x4b   : > { %676 = vperm.xlu1 %5940, %v622_v27   ;;  %671 = vperm.xlu0 %5939, %v621_v28  }
  0x4f   : > { %686 = vperm.xlu1 %5940, %v624_v29   ;;  %681 = vperm.xlu0 %5939, %v623_v30  }
  0x53   : > { %696 = vperm.xlu1 %5940, %v626_v31   ;;  %691 = vperm.xlu0 %5939, %v625_v32   ;;  %v6431_v31 = vsub.f32 %v720_v8, %v6410_v17  ;;  %v602_v32 = vld [vmem:[%s8139_s3 + $0x28] sm:$0xff] }
  0x55   : > { %8294 = vst [vmem:[#allocation10_spill] sm:$0xff] %v6431_v31 }
  0x57   : > { %706 = vperm.xlu1 %5940, %v628_v33   ;;  %701 = vperm.xlu0 %5939, %v627_v34  }
  0x5b   : > { %2195 = vperm.xlu1 %5940, %v2181_v35   ;;  %2190 = vperm.xlu0 %5939, %v2180_v36  }
  0x5f   : > { %2205 = vperm.xlu1 %5940, %v2183_v37   ;;  %2200 = vperm.xlu0 %5939, %v2182_v38  }
  0x63   : > { %2215 = vperm.xlu1 %5940, %v2185_v39   ;;  %2210 = vperm.xlu0 %5939, %v2184_v40  }
  0x67   : > { %2225 = vperm.xlu1 %5940, %v2187_v41   ;;  %2220 = vperm.xlu0 %5939, %v2186_v42   ;;  %v6438_v41 = vand.u32 4294901760, %v723_v25 }
  0x69   : > { %v6455_v0 = vsub.f32 %v723_v25, %v6438_v41 }
  0x6b   : > { %3489 = vperm.xlu1 %5940, %v3479_v43   ;;  %3484 = vperm.xlu0 %5939, %v3478_v44  }
  0x6f   : > { %3499 = vperm.xlu1 %5940, %v3481_v45   ;;  %3494 = vperm.xlu0 %5939, %v3480_v46   ;;  %v726_v45 = vsel %vm709_vm0, %v602_v32, 0  ;;  %v603_v46 = vld [vmem:[%s8139_s3 + $0x30] sm:$0xff] }
  0x70   : > { %v6457_v1 = vand.u32 4294901760, %v726_v45  ;;  %v6460_v5 = vsel %vm709_vm0, %v603_v46, 0 }
  0x73   : > { %4327 = vperm.xlu1 %5940, %v4319_v47   ;;  %4322 = vperm.xlu0 %5939, %v4318_v48  }
  0x77   : > { %4962 = vperm.xlu1 %5940, %v4954_v49   ;;  %4957 = vperm.xlu0 %5939, %v4953_v50   ;;  %v8152_v50 = vand.u32 4294901760, %v6431_v31 }
  0x7b   : > { %4986 = vperm.xlu0 %5939, %v4983_v51  }
  0x9a   : > { %v528_v9 = vpop.permute.xlu1 %527  ;;  %v453_v10 = vpop.permute.xlu0 %452 }
  0x9b   : > { %v501_v14 = vmul.f32 %v6397_v6, %v453_v10  ;;  %v502_v15 = vmul.f32 %v6399_v7, %v453_v10 }
  0x9d   : > { %v565_v18 = vadd.f32 %v528_v9, %v501_v14  ;;  %v566_v19 = vadd.f32 %v528_v9, %v502_v15 }
  0x9e   : > { %v533_v20 = vpop.permute.xlu1 %532  ;;  %v458_v21 = vpop.permute.xlu0 %457 }
  0x9f   : > { %v581_v27 = vmax.f32 %v565_v18, 0.0  ;;  %v582_v28 = vmax.f32 %v566_v19, 0.0  ;;  %v503_v29 = vmul.f32 %v6397_v6, %v458_v21  ;;  %v504_v30 = vmul.f32 %v6399_v7, %v458_v21 }
  0xa1   : > { %v567_v33 = vadd.f32 %v533_v20, %v503_v29  ;;  %v568_v34 = vadd.f32 %v533_v20, %v504_v30  ;;  %v758_v35 = vand.u32 4294901760, %v582_v28  ;;  %v760_v38 = vand.u32 4294901760, %v581_v27 }
  0xa2   : > { %v468_v36 = vpop.permute.xlu1 %467  ;;  %v463_v37 = vpop.permute.xlu0 %462 }
  0xa3   : > { %v583_v42 = vmax.f32 %v567_v33, 0.0  ;;  %v584_v43 = vmax.f32 %v568_v34, 0.0  ;;  %v507_v47 = vmul.f32 %v6397_v6, %v468_v36  ;;  %v508_v48 = vmul.f32 %v6399_v7, %v468_v36 }
  0xa4   : > { %v6447_v49 = vsub.f32 %v582_v28, %v758_v35  ;;  %v505_v51 = vmul.f32 %v6397_v6, %v463_v37  ;;  %v506_v53 = vmul.f32 %v6399_v7, %v463_v37  ;;  %v6452_v59 = vsub.f32 %v581_v27, %v760_v38 }
  0xa5   : > { %v762_v54 = vand.u32 4294901760, %v584_v43  ;;  %v764_v55 = vand.u32 4294901760, %v583_v42  ;;  %v6475_v33 = vsub.f32 %v6431_v31, %v8152_v50 }
  0xa6   : > { %v543_v57 = vpop.permute.xlu1 %542  ;;  %v538_v58 = vpop.permute.xlu0 %537  ;;  %v8160_v19 = vand.u32 4294901760, %v6447_v49  ;;  %v8157_v32 = vand.u32 4294901760, %v6452_v59 }
  0xa7   : > { %v571_v8 = vadd.f32 %v543_v57, %v507_v47  ;;  %v572_v9 = vadd.f32 %v543_v57, %v508_v48  ;;  %v569_v10 = vadd.f32 %v538_v58, %v505_v51  ;;  %v570_v14 = vadd.f32 %v538_v58, %v506_v53 }
  0xa8   : > { %v6462_v15 = vpack.c.bf16 %v762_v54, %v758_v35  ;;  %v6464_v16 = vsub.f32 %v584_v43, %v762_v54  ;;  %v6466_v18 = vpack.c.bf16 %v764_v55, %v760_v38  ;;  %v6479_v43 = vsub.f32 %v583_v42, %v764_v55 }
  0xa9   : > { %v587_v20 = vmax.f32 %v571_v8, 0.0  ;;  %v588_v21 = vmax.f32 %v572_v9, 0.0  ;;  %v585_v25 = vmax.f32 %v569_v10, 0.0  ;;  %v586_v27 = vmax.f32 %v570_v14, 0.0 }
  0xaa   : > { %8295 = vst [vmem:[#allocation11_spill] sm:$0xff] %v6466_v18  ;;  %5106 = vmatprep.subr.bf16.mxu0 %v6462_v15  ;;  %v478_v28 = vpop.permute.xlu1 %477  ;;  %v473_v29 = vpop.permute.xlu0 %472  ;;  %v8159_v30 = vand.u32 4294901760, %v6464_v16  ;;  %v1018_v46 = vsub.f32 %v6447_v49, %v8160_v19  ;;  %v6485_v47 = vsub.f32 %v726_v45, %v6457_v1  ;;  %v6488_v48 = vand.u32 4294901760, %v6460_v5 }
  0xab   : > { %v770_v35 = vand.u32 4294901760, %v588_v21  ;;  %v772_v36 = vand.u32 4294901760, %v587_v20  ;;  %v766_v37 = vand.u32 4294901760, %v586_v27  ;;  %v768_v38 = vand.u32 4294901760, %v585_v25  ;;  %5108 = vmatpush1.bf16.msra.mxu0 %v6466_v18 }
  0xac   : > { %v511_v54 = vmul.f32 %v6397_v6, %v478_v28  ;;  %v512_v57 = vmul.f32 %v6399_v7, %v478_v28  ;;  %v509_v42 = vmul.f32 %v6397_v6, %v473_v29  ;;  %v510_v55 = vmul.f32 %v6399_v7, %v473_v29 }
  0xad   : > { %v6490_v51 = vsub.f32 %v587_v20, %v772_v36  ;;  %v6492_v53 = vsub.f32 %v585_v25, %v768_v38  ;;  %v6498_v9 = vpack.c.bf16 %v770_v35, %v766_v37  ;;  %v6500_v45 = vpack.c.bf16 %v772_v36, %v768_v38 }
  0xae   : > { %v553_v58 = vpop.permute.xlu1 %552  ;;  %v548_v8 = vpop.permute.xlu0 %547  ;;  %v1030_v20 = vsub.f32 %v6464_v16, %v8159_v30  ;;  %v6508_v25 = vsub.f32 %v6452_v59, %v8157_v32  ;;  %v6513_v36 = vsub.f32 %v588_v21, %v770_v35  ;;  %v1019_v34 = vand.u32 4294901760, %v1018_v46 }
  0xaf   : > { %8296 = vst [vmem:[#allocation12_spill] sm:$0xff] %v6498_v9  ;;  %8297 = vst [vmem:[#allocation13_spill] sm:$0xff] %v6500_v45  ;;  %v575_v10 = vadd.f32 %v553_v58, %v511_v54  ;;  %v576_v14 = vadd.f32 %v553_v58, %v512_v57  ;;  %v8156_v28 = vand.u32 4294901760, %v6490_v51  ;;  %v8158_v29 = vand.u32 4294901760, %v6492_v53  ;;  %5110 = vmatprep.subr.bf16.mxu0 %v6498_v9 }
  0xb0   : > { %v573_v52 = vadd.f32 %v548_v8, %v509_v42  ;;  %v574_v63 = vadd.f32 %v548_v8, %v510_v55  ;;  %5112 = vmatpush1.bf16.msra.mxu0 %v6500_v45  ;;  %v8166_v57 = vand.u32 4294901760, %v6479_v43  ;;  %v6517_v58 = vsub.f32 %v586_v27, %v766_v37 }
  0xb1   : > { %v591_v38 = vmax.f32 %v575_v10, 0.0  ;;  %v592_v54 = vmax.f32 %v576_v14, 0.0  ;;  %v1031_v55 = vand.u32 4294901760, %v1030_v20  ;;  %v6523_v21 = vsub.f32 %v6490_v51, %v8156_v28 }
  0xb2   : > { %v589_v50 = vmax.f32 %v573_v52, 0.0  ;;  %v590_v13 = vmax.f32 %v574_v63, 0.0  ;;  %v488_v12 = vpop.permute.xlu1 %487  ;;  %v483_v11 = vpop.permute.xlu0 %482  ;;  %v6528_v27 = vsub.f32 %v6492_v53, %v8158_v29  ;;  %v8302_v31 = vand.u32 4294901760, %v6508_v25 }
  0xb3   : > { %v778_v44 = vand.u32 4294901760, %v592_v54  ;;  %v780_v42 = vand.u32 4294901760, %v591_v38  ;;  %v515_v37 = vmul.f32 %v6397_v6, %v488_v12  ;;  %v516_v46 = vmul.f32 %v6399_v7, %v488_v12 }
  0xb4   : > { %v774_v52 = vand.u32 4294901760, %v590_v13  ;;  %v776_v63 = vand.u32 4294901760, %v589_v50  ;;  %v513_v10 = vmul.f32 %v6397_v6, %v483_v11  ;;  %v514_v20 = vmul.f32 %v6399_v7, %v483_v11 }
  0xb5   : > { %v6530_v35 = vsub.f32 %v591_v38, %v780_v42  ;;  %v5121_v26 = vpack.c.bf16 %v1031_v55, %v1019_v34  ;;  %v1061_v39 = vand.u32 4294901760, %v6523_v21  ;;  %v1036_v6 = vsub.f32 %v6479_v43, %v8166_v57 }
  0xb6   : > { %v6535_v14 = vsub.f32 %v589_v50, %v776_v63  ;;  %v563_v28 = vpop.permute.xlu1 %562  ;;  %v558_v40 = vpop.permute.xlu0 %557  ;;  %v6538_v32 = vpack.c.bf16 %v778_v44, %v774_v52  ;;  %v6540_v29 = vpack.c.bf16 %v780_v42, %v776_v63  ;;  %v8163_v7 = vand.u32 4294901760, %v6517_v58 }
  0xb7   : > { %v579_v30 = vadd.f32 %v563_v28, %v515_v37  ;;  %v580_v19 = vadd.f32 %v563_v28, %v516_v46  ;;  %v577_v38 = vadd.f32 %v558_v40, %v513_v10  ;;  %v578_v8 = vadd.f32 %v558_v40, %v514_v20 }
  0xb8   : > { %8298 = vst [vmem:[#allocation14_spill] sm:$0xff] %v6538_v32  ;;  %8299 = vst [vmem:[#allocation15_spill] sm:$0xff] %v6540_v29  ;;  %5114 = vmatprep.subr.bf16.mxu0 %v6538_v32  ;;  %v6548_v11 = vsub.f32 %v592_v54, %v778_v44  ;;  %v8164_v34 = vand.u32 4294901760, %v6530_v35  ;;  %v6552_v28 = vsub.f32 %v590_v13, %v774_v52  ;;  %v8165_v40 = vand.u32 4294901760, %v6535_v14 }
  0xb9   : > { %v595_v12 = vmax.f32 %v579_v30, 0.0  ;;  %v596_v50 = vmax.f32 %v580_v19, 0.0  ;;  %v593_v42 = vmax.f32 %v577_v38, 0.0  ;;  %5116 = vmatpush1.bf16.msra.mxu0 %v6540_v29  ;;  %v594_v55 = vmax.f32 %v578_v8, 0.0 }
  0xba   : > { %v1042_v44 = vsub.f32 %v6517_v58, %v8163_v7  ;;  %v1049_v30 = vand.u32 4294901760, %v6528_v27  ;;  %v1037_v54 = vand.u32 4294901760, %v1036_v6  ;;  %v1053_v46 = vand.u32 4294901760, %v6513_v36  ;;  %v604_v6 = vld [vmem:[%s8139_s3 + $0x38] sm:$0xff] }
  0xbb   : > { %v786_v21 = vand.u32 4294901760, %v596_v50  ;;  %v788_v63 = vand.u32 4294901760, %v595_v12  ;;  %v784_v37 = vand.u32 4294901760, %v593_v42  ;;  %v782_v19 = vand.u32 4294901760, %v594_v55 }
  0xbc   : > { %v1084_v20 = vsub.f32 %v6530_v35, %v8164_v34  ;;  %v1054_v27 = vsub.f32 %v6513_v36, %v1053_v46  ;;  %v732_v57 = vsel %vm709_vm0, %v604_v6, 0  ;;  %v5127_v32 = vpack.c.bf16 %v1061_v39, %v1049_v30 }
  0xbd   : > { %v6560_v10 = vsub.f32 %v596_v50, %v786_v21  ;;  %v6562_v13 = vsub.f32 %v595_v12, %v788_v63  ;;  %v6564_v52 = vsub.f32 %v593_v42, %v784_v37  ;;  %v6566_v8 = vpack.c.bf16 %v788_v63, %v784_v37 }
  0xbe   : > { %v6571_v38 = vsub.f32 %v594_v55, %v782_v19  ;;  %v6573_v7 = vpack.c.bf16 %v786_v21, %v782_v19  ;;  %v1072_v12 = vsub.f32 %v6535_v14, %v8165_v40  ;;  %v1043_v50 = vand.u32 4294901760, %v1042_v44 }
  0xbf   : > { %8300 = vst [vmem:[#allocation16_spill] sm:$0xff] %v6566_v8  ;;  %v1065_v42 = vand.u32 4294901760, %v6552_v28  ;;  %v1077_v63 = vand.u32 4294901760, %v6548_v11  ;;  %v1107_v55 = vand.u32 4294901760, %v6562_v13  ;;  %v1055_v21 = vand.u32 4294901760, %v1054_v27 }
  0xc0   : > { %8301 = vst [vmem:[#allocation17_spill] sm:$0xff] %v6573_v7  ;;  %5118 = vmatprep.subr.bf16.mxu0 %v6573_v7  ;;  %v1089_v37 = vand.u32 4294901760, %v6571_v38  ;;  %v1101_v19 = vand.u32 4294901760, %v6560_v10  ;;  %v1095_v34 = vand.u32 4294901760, %v6564_v52  ;;  %v1085_v56 = vand.u32 4294901760, %v1084_v20 }
  0xc1   : > { %5120 = vmatpush1.bf16.msra.mxu0 %v6566_v8  ;;  %v1066_v40 = vsub.f32 %v6552_v28, %v1065_v42  ;;  %v1078_v44 = vsub.f32 %v6548_v11, %v1077_v63  ;;  %v5123_v7 = vpack.c.bf16 %v1037_v54, %v8302_v31  ;;  %v1073_v4 = vand.u32 4294901760, %v1072_v12 }
  0xc2   : > { %5122 = vmatprep.subr.bf16.mxu0 %v5121_v26  ;;  %v1090_v27 = vsub.f32 %v6571_v38, %v1089_v37  ;;  %v1102_v29 = vsub.f32 %v6560_v10, %v1101_v19  ;;  %v1108_v8 = vsub.f32 %v6562_v13, %v1107_v55  ;;  %v8303_v9 = vand.u32 4294901760, %v6415_v22 }
  0xc3   : > { %v1067_v45 = vand.u32 4294901760, %v1066_v40  ;;  %v1079_v3 = vand.u32 4294901760, %v1078_v44  ;;  %v5125_v18 = vpack.c.bf16 %v1055_v21, %v1043_v50  ;;  %v5139_v26 = vpack.c.bf16 %v6479_v43, %v6452_v59 }
  0xc4   : > { %844 = vmatmul.mubr.f32.vlgmr.msra.gmra.mrb[0].mxu0 %v8303_v9  ;;  %v5141_v31 = vpack.c.bf16 %v6513_v36, %v6517_v58  ;;  %v1096_v25 = vsub.f32 %v6564_v52, %v1095_v34  ;;  %v8304_v54 = vmov 0.0   ;;  %v1091_v39 = vand.u32 4294901760, %v1090_v27  ;;  %v8323_v36 = vld [vmem:[#allocation12_spill] sm:$0xff] }
  0xc5   : > { %5124 = vmatpush1.bf16.msra.mxu0 %v5123_v7  ;;  %849 = vmatprep.mubr.f32.mxu0 %v8304_v54  ;;  %v1103_v40 = vand.u32 4294901760, %v1102_v29  ;;  %v5129_v22 = vpack.c.bf16 %v1079_v3, %v1067_v45  ;;  %v8305_v12 = vand.u32 4294901760, %v6447_v49  ;;  %v8306_v29 = vand.u32 4294901760, %v6464_v16 }
  0xc6   : > { %5126 = vmatprep.subr.bf16.mxu0 %v5125_v18  ;;  %v8307_v3 = vand.u32 4294901760, %v6452_v59  ;;  %v8308_v18 = vand.u32 4294901760, %v6479_v43  ;;  %v8309_v21 = vand.u32 4294901760, %v6517_v58  ;;  %v8310_v27 = vand.u32 4294901760, %v6420_v23  ;;  %v8324_v58 = vld [vmem:[#allocation8_spill] sm:$0xff] }
  0xc7   : > { %v6620_v50 = vpack.c.bf16 %v8306_v29, %v8305_v12  ;;  %v8311_v7 = vand.u32 4294901760, %v6492_v53  ;;  %v8312_v6 = vand.u32 4294901760, %v6490_v51  ;;  %v6640_v12 = vpack.c.bf16 %v1077_v63, %v1065_v42  ;;  %v605_v42 = vld [vmem:[%s8139_s3 + $0x40] sm:$0xff] }
  0xc8   : > { %v6626_v45 = vpack.c.bf16 %v8308_v18, %v8307_v3  ;;  %v6630_v44 = vpack.c.bf16 %v1053_v46, %v8309_v21  ;;  %855 = vmatmul.mubr.f32.gmra.mrb[2].mxu0 %v8310_v27  ;;  %v8313_v29 = vand.u32 4294901760, %v6535_v14  ;;  %v8314_v3 = vand.u32 4294901760, %v6530_v35 }
  0xc9   : > { %v6638_v20 = vpack.c.bf16 %v8312_v6, %v8311_v7  ;;  %v6648_v9 = vpack.c.bf16 %v1101_v19, %v1089_v37  ;;  %5128 = vmatpush1.bf16.msra.mxu0 %v5127_v32  ;;  %860 = vmatprep.mubr.f32.mxu0 %v8304_v54  ;;  %v6651_v23 = vpack.c.bf16 %v1107_v55, %v1095_v34  ;;  %v1109_v63 = vand.u32 4294901760, %v1108_v8 }
  0xca   : > { %v6646_v18 = vpack.c.bf16 %v8314_v3, %v8313_v29  ;;  %5130 = vmatprep.subr.bf16.mxu0 %v5129_v22  ;;  %v6655_v46 = vsub.f32 %v6460_v5, %v6488_v48  ;;  %v1097_v6 = vand.u32 4294901760, %v1096_v25  ;;  %v5131_v7 = vpack.c.bf16 %v1085_v56, %v1073_v4  ;;  %v606_v56 = vld [vmem:[%s8139_s3 + $0x48] sm:$0xff] }
  0xcb   : > { %v6660_v21 = vand.u32 4294901760, %v732_v57  ;;  %v8315_v32 = vand.u32 4294901760, %v6425_v24  ;;  %v5133_v37 = vpack.c.bf16 %v1103_v40, %v1091_v39  ;;  %v876_v34 = vand.u32 4294901760, %v6475_v33 }
  0xcc   : > { %v8316_v55 = vand.u32 4294901760, %v6455_v0  ;;  %v8194_v19 = vand.u32 4294901760, %v6485_v47  ;;  %v735_v8 = vsel %vm709_vm0, %v605_v42, 0  ;;  %v5135_v4 = vpack.c.bf16 %v1109_v63, %v1097_v6  ;;  %v608_v6 = vld [vmem:[%s8139_s3 + $0x58] sm:$0xff] }
  0xcd   : > { %866 = vmatmul.mubr.f32.gmra.mrb[4].mxu0 %v8315_v32  ;;  %v8193_v24 = vand.u32 4294901760, %v6655_v46  ;;  %v6676_v33 = vsub.f32 %v732_v57, %v6660_v21  ;;  %v5137_v25 = vpack.c.bf16 %v6464_v16, %v6447_v49  ;;  %v6683_v22 = vand.u32 4294901760, %v735_v8  ;;  %v607_v57 = vld [vmem:[%s8139_s3 + $0x50] sm:$0xff] }
  0xce   : > { %v886_v5 = vsub.f32 %v6455_v0, %v8316_v55  ;;  %5132 = vmatpush1.bf16.msra.mxu0 %v5131_v7  ;;  %871 = vmatprep.mubr.f32.mxu0 %v8304_v54  ;;  %v897_v40 = vsub.f32 %v6485_v47, %v8194_v19  ;;  %v738_v27 = vsel %vm709_vm0, %v606_v56, 0  ;;  %v741_v63 = vsel %vm709_vm0, %v607_v57, 0  ;;  %v610_v57 = vld [vmem:[%s8139_s3 + $0x68] sm:$0xff] }
  0xcf   : > { %5134 = vmatprep.subr.bf16.mxu0 %v5133_v37  ;;  %v908_v49 = vsub.f32 %v6655_v46, %v8193_v24  ;;  %v8191_v16 = vand.u32 4294901760, %v6676_v33  ;;  %v6695_v3 = vsub.f32 %v735_v8, %v6683_v22  ;;  %v6697_v42 = vand.u32 4294901760, %v738_v27  ;;  %v609_v8 = vld [vmem:[%s8139_s3 + $0x60] sm:$0xff] }
  0xd0   : > { %v887_v39 = vand.u32 4294901760, %v886_v5  ;;  %v898_v29 = vand.u32 4294901760, %v897_v40  ;;  %v6711_v55 = vand.u32 4294901760, %v741_v63  ;;  %v744_v5 = vsel %vm709_vm0, %v608_v6, 0 }
  0xd1   : > { %877 = vmatmul.mubr.f32.gmra.mrb[6].mxu0 %v876_v34  ;;  %v909_v7 = vand.u32 4294901760, %v908_v49  ;;  %v919_v32 = vsub.f32 %v6676_v33, %v8191_v16  ;;  %v8190_v37 = vand.u32 4294901760, %v6695_v3  ;;  %v6709_v34 = vsub.f32 %v738_v27, %v6697_v42  ;;  %v612_v16 = vld [vmem:[%s8139_s3 + $0x78] sm:$0xff] }
  0xd2   : > { %5136 = vmatpush1.bf16.msra.mxu0 %v5135_v4  ;;  %882 = vmatprep.mubr.f32.mxu0 %v8304_v54  ;;  %v6718_v56 = vand.u32 4294901760, %v744_v5  ;;  %v6725_v40 = vsub.f32 %v741_v63, %v6711_v55  ;;  %v747_v27 = vsel %vm709_vm0, %v609_v8, 0  ;;  %v611_v8 = vld [vmem:[%s8139_s3 + $0x70] sm:$0xff]  ;;  %v8319_v59 = vpack.c.bf16 %v6530_v35, %v6535_v14  ;;  %v8326_v14 = vld [vmem:[#allocation14_spill] sm:$0xff] }
  0xd3   : > { %5138 = vmatprep.subr.bf16.mxu0 %v5137_v25  ;;  %v920_v4 = vand.u32 4294901760, %v919_v32  ;;  %v930_v25 = vsub.f32 %v6695_v3, %v8190_v37  ;;  %v750_v32 = vsel %vm709_vm0, %v610_v57, 0  ;;  %v753_v57 = vsel %vm709_vm0, %v611_v8, 0  ;;  %v8325_v35 = vld [vmem:[#allocation13_spill] sm:$0xff] }
  0xd4   : > { %v6733_v49 = vsub.f32 %v744_v5, %v6718_v56  ;;  %v8192_v63 = vand.u32 4294901760, %v6725_v40  ;;  %v6753_v37 = vand.u32 4294901760, %v750_v32  ;;  %v6767_v24 = vand.u32 4294901760, %v753_v57 }
  0xd5   : > { %888 = vmatmul.mubr.f32.gmra.mrb[8].mxu0 %v887_v39  ;;  %v8189_v39 = vand.u32 4294901760, %v6709_v34  ;;  %v756_v8 = vsel %vm709_vm0, %v612_v16, 0  ;;  %v8320_v43 = vpack.c.bf16 %v6560_v10, %v6571_v38  ;;  %v8329_v10 = vld [vmem:[#allocation17_spill] sm:$0xff]  ;;  %v8332_v38 = vand.u32 4294901760, %v6384_v2 }
  0xd6   : > { %893 = vmatprep.mubr.f32.mxu0 %v8304_v54  ;;  %v8195_v5 = vand.u32 4294901760, %v6733_v49 }
  0xd7   : > { %v941_v6 = vsub.f32 %v6709_v34, %v8189_v39 }
  0xd9   : > { %899 = vmatmul.mubr.f32.gmra.mrb[10].mxu0 %v898_v29  ;;  %v931_v29 = vand.u32 4294901760, %v930_v25  ;;  %v952_v25 = vsub.f32 %v6725_v40, %v8192_v63 }
  0xda   : > { %904 = vmatprep.mubr.f32.mxu0 %v8304_v54 }
  0xdd   : > { %910 = vmatmul.mubr.f32.gmra.mrb[12].mxu0 %v909_v7  ;;  %v6739_v7 = vand.u32 4294901760, %v747_v27 }
  0xde   : > { %915 = vmatprep.mubr.f32.mxu0 %v8304_v54 }
  0xdf   : > { %v6751_v39 = vsub.f32 %v747_v27, %v6739_v7  ;;  %v6765_v27 = vsub.f32 %v750_v32, %v6753_v37 }
  0xe1   : > { %921 = vmatmul.mubr.f32.gmra.mrb[14].mxu0 %v920_v4  ;;  %v942_v4 = vand.u32 4294901760, %v941_v6  ;;  %v953_v6 = vand.u32 4294901760, %v952_v25  ;;  %v8196_v63 = vand.u32 4294901760, %v6751_v39  ;;  %v6776_v25 = vsub.f32 %v753_v57, %v6767_v24 }
  0xe2   : > { %926 = vmatprep.mubr.f32.mxu0 %v8304_v54 }
  0xe3   : > { %v974_v30 = vsub.f32 %v6751_v39, %v8196_v63 }
  0xe5   : > { %932 = vmatmul.mubr.f32.gmra.mrb[16].mxu0 %v931_v29  ;;  %v963_v29 = vsub.f32 %v6733_v49, %v8195_v5  ;;  %v6778_v5 = vand.u32 4294901760, %v756_v8  ;;  %v975_v32 = vand.u32 4294901760, %v974_v30 }
  0xe6   : > { %937 = vmatprep.mubr.f32.mxu0 %v8304_v54 }
  0xe7   : > { %v964_v19 = vand.u32 4294901760, %v963_v29  ;;  %v995_v29 = vand.u32 4294901760, %v6776_v25 }
  0xe9   : > { %943 = vmatmul.mubr.f32.gmra.mrb[18].mxu0 %v942_v4  ;;  %v8197_v4 = vand.u32 4294901760, %v6765_v27  ;;  %v996_v63 = vsub.f32 %v6776_v25, %v995_v29 }
  0xea   : > { %948 = vmatprep.mubr.f32.mxu0 %v8304_v54 }
  0xeb   : > { %v985_v16 = vsub.f32 %v6765_v27, %v8197_v4  ;;  %v997_v30 = vand.u32 4294901760, %v996_v63  ;;  %v8317_v63 = vpack.c.bf16 %v6490_v51, %v6492_v53  ;;  %v8321_v51 = vpack.c.bf16 %v6562_v13, %v6564_v52  ;;  %v8322_v53 = vld [vmem:[#allocation11_spill] sm:$0xff]  ;;  %v8330_v13 = vld [vmem:[#allocation10_spill] sm:$0xff]  ;;  %v8331_v52 = vld [vmem:[#allocation16_spill] sm:$0xff] }
  0xed   : > { %954 = vmatmul.mubr.f32.gmra.mrb[20].mxu0 %v953_v6  ;;  %v6786_v6 = vsub.f32 %v756_v8, %v6778_v5  ;;  %v986_v57 = vand.u32 4294901760, %v985_v16 }
  0xee   : > { %959 = vmatprep.mubr.f32.mxu0 %v8304_v54 }
  0xf1   : > { %965 = vmatmul.mubr.f32.gmra.mrb[22].mxu0 %v964_v19  ;;  %v1006_v19 = vand.u32 4294901760, %v6786_v6 }
  0xf2   : > { %970 = vmatprep.mubr.f32.mxu0 %v8304_v54 }
  0xf3   : > { %v1007_v4 = vsub.f32 %v6786_v6, %v1006_v19 }
  0xf5   : > { %976 = vmatmul.mubr.f32.gmra.mrb[24].mxu0 %v975_v32  ;;  %v1008_v8 = vand.u32 4294901760, %v1007_v4  ;;  %v8318_v4 = vpack.c.bf16 %v6548_v11, %v6552_v28  ;;  %v8327_v11 = vld [vmem:[#allocation9_spill] sm:$0xff]  ;;  %v8328_v28 = vld [vmem:[#allocation15_spill] sm:$0xff] }
  0xf6   : > { %981 = vmatprep.mubr.f32.mxu0 %v8304_v54 }
  0xf9   : > { %987 = vmatmul.mubr.f32.gmra.mrb[26].mxu0 %v986_v57 }
  0xfa   : > { %992 = vmatprep.mubr.f32.mxu0 %v8304_v54 }
  0xfd   : > { %998 = vmatmul.mubr.f32.gmra.mrb[28].mxu0 %v997_v30 }
  0xfe   : > { %1003 = vmatprep.mubr.f32.mxu0 %v8304_v54 }
 0x101   : > { %1009 = vmatmul.mubr.f32.gmra.mrb[30].mxu0 %v1008_v8 }
 0x102   : > { %1159 = vmatprep.mubr.f32.mxu0 %v8304_v54 }
 0x105   : > { %1161 = vmatmul.mubr.f32.vlgmr.msra.gmra.mrb[0].mxu0 %v6375_v60 }
 0x106   : > { %5140 = vmatpush1.bf16.msra.mxu0 %v5139_v26  ;;  %1166 = vmatprep.mubr.f32.mxu0 %v8304_v54  ;;  %v8333_v26 = vand.u32 4294901760, %v8324_v58 }
 0x107   : > { %5142 = vmatprep.subr.bf16.mxu0 %v5141_v31  ;;  %v8334_v31 = vand.u32 4294901760, %v8327_v11 }
 0x109   : > { %1168 = vmatmul.mubr.f32.gmra.mrb[2].mxu0 %v6377_v61 }
 0x10a   : > { %5144 = vmatpush1.bf16.msra.mxu0 %v8317_v63  ;;  %1173 = vmatprep.mubr.f32.mxu0 %v8304_v54 }
 0x10b   : > { %5146 = vmatprep.subr.bf16.mxu0 %v8318_v4 }
 0x10d   : > { %1175 = vmatmul.mubr.f32.gmra.mrb[4].mxu0 %v6379_v62 }
 0x10e   : > { %5148 = vmatpush1.bf16.msra.mxu0 %v8319_v59  ;;  %1180 = vmatprep.mubr.f32.mxu0 %v8304_v54 }
 0x10f   : > { %5150 = vmatprep.subr.bf16.mxu0 %v8320_v43 }
 0x111   : > { %1182 = vmatmul.mubr.f32.gmra.mrb[6].mxu0 %v6410_v17 }
 0x112   : > { %5152 = vmatpush1.bf16.msra.mxu0 %v8321_v51  ;;  %1187 = vmatprep.mubr.f32.mxu0 %v8304_v54 }
 0x113   : > { %5154 = vmatprep.subr.bf16.mxu0 %v6462_v15 }
 0x115   : > { %1189 = vmatmul.mubr.f32.gmra.mrb[8].mxu0 %v6438_v41 }
 0x116   : > { %1194 = vmatprep.mubr.f32.mxu0 %v8304_v54 }
 0x119   : > { %1196 = vmatmul.mubr.f32.gmra.mrb[10].mxu0 %v6457_v1 }
 0x11a   : > { %1201 = vmatprep.mubr.f32.mxu0 %v8304_v54 }
 0x11d   : > { %1203 = vmatmul.mubr.f32.gmra.mrb[12].mxu0 %v6488_v48 }
 0x11e   : > { %1208 = vmatprep.mubr.f32.mxu0 %v8304_v54 }
 0x121   : > { %1210 = vmatmul.mubr.f32.gmra.mrb[14].mxu0 %v6660_v21 }
 0x122   : > { %1215 = vmatprep.mubr.f32.mxu0 %v8304_v54 }
 0x125   : > { %1217 = vmatmul.mubr.f32.gmra.mrb[16].mxu0 %v6683_v22 }
 0x126   : > { %1222 = vmatprep.mubr.f32.mxu0 %v8304_v54 }
 0x129   : > { %1224 = vmatmul.mubr.f32.gmra.mrb[18].mxu0 %v6697_v42 }
 0x12a   : > { %1229 = vmatprep.mubr.f32.mxu0 %v8304_v54 }
 0x12d   : > { %1231 = vmatmul.mubr.f32.gmra.mrb[20].mxu0 %v6711_v55 }
 0x12e   : > { %1236 = vmatprep.mubr.f32.mxu0 %v8304_v54 }
 0x131   : > { %1238 = vmatmul.mubr.f32.gmra.mrb[22].mxu0 %v6718_v56 }
 0x132   : > { %1243 = vmatprep.mubr.f32.mxu0 %v8304_v54 }
 0x135   : > { %1245 = vmatmul.mubr.f32.gmra.mrb[24].mxu0 %v6739_v7 }
 0x136   : > { %1250 = vmatprep.mubr.f32.mxu0 %v8304_v54 }
 0x139   : > { %1252 = vmatmul.mubr.f32.gmra.mrb[26].mxu0 %v6753_v37 }
 0x13a   : > { %1257 = vmatprep.mubr.f32.mxu0 %v8304_v54 }
 0x13d   : > { %1259 = vmatmul.mubr.f32.gmra.mrb[28].mxu0 %v6767_v24 }
 0x13e   : > { %1264 = vmatprep.mubr.f32.mxu0 %v8304_v54 }
 0x141   : > { %1266 = vmatmul.mubr.f32.gmra.mrb[30].mxu0 %v6778_v5 }
 0x142   : > { %1368 = vmatprep.mubr.f32.mxu0 %v8304_v54 }
 0x145   : > { %1371 = vmatmul.mubr.f32.vlgmr.msra.gmra.mrb[0].mxu0 %v6384_v2  ;;  %v8335_v2 = vand.u32 4294901760, %v8330_v13 }
 0x146   : > { %5156 = vmatpush1.bf16.msra.mxu0 %v8322_v53  ;;  %1376 = vmatprep.mubr.f32.mxu0 %v8304_v54 }
 0x147   : > { %5158 = vmatprep.subr.bf16.mxu0 %v8323_v36 }
 0x149   : > { %1379 = vmatmul.mubr.f32.gmra.mrb[2].mxu0 %v8324_v58 }
 0x14a   : > { %5160 = vmatpush1.bf16.msra.mxu0 %v8325_v35  ;;  %1384 = vmatprep.mubr.f32.mxu0 %v8304_v54 }
 0x14b   : > { %5162 = vmatprep.subr.bf16.mxu0 %v8326_v14 }
 0x14d   : > { %1387 = vmatmul.mubr.f32.gmra.mrb[4].mxu0 %v8327_v11 }
 0x14e   : > { %5164 = vmatpush1.bf16.msra.mxu0 %v8328_v28  ;;  %1392 = vmatprep.mubr.f32.mxu0 %v8304_v54 }
 0x14f   : > { %5166 = vmatprep.subr.bf16.mxu0 %v8329_v10 }
 0x151   : > { %1395 = vmatmul.mubr.f32.gmra.mrb[6].mxu0 %v8330_v13 }
 0x152   : > { %5168 = vmatpush1.bf16.msra.mxu0 %v8331_v52  ;;  %1400 = vmatprep.mubr.f32.mxu0 %v8304_v54 }
 0x153   : > { %5170 = vmatprep.subr.bf16.mxu0 %v6620_v50  ;;  %v8337_v50 = vand.u32 4294901760, %v6485_v47 }
 0x155   : > { %1403 = vmatmul.mubr.f32.gmra.mrb[8].mxu0 %v6455_v0 }
 0x156   : > { %1408 = vmatprep.mubr.f32.mxu0 %v8304_v54 }
 0x159   : > { %1411 = vmatmul.mubr.f32.gmra.mrb[10].mxu0 %v6485_v47  ;;  %v8342_v47 = vand.u32 4294901760, %v6725_v40 }
 0x15a   : > { %1416 = vmatprep.mubr.f32.mxu0 %v8304_v54 }
 0x15d   : > { %1419 = vmatmul.mubr.f32.gmra.mrb[12].mxu0 %v6655_v46 }
 0x15e   : > { %1424 = vmatprep.mubr.f32.mxu0 %v8304_v54 }
 0x161   : > { %1427 = vmatmul.mubr.f32.gmra.mrb[14].mxu0 %v6676_v33 }
 0x162   : > { %1432 = vmatprep.mubr.f32.mxu0 %v8304_v54 }
 0x165   : > { %1435 = vmatmul.mubr.f32.gmra.mrb[16].mxu0 %v6695_v3 }
 0x166   : > { %1440 = vmatprep.mubr.f32.mxu0 %v8304_v54 }
 0x169   : > { %1443 = vmatmul.mubr.f32.gmra.mrb[18].mxu0 %v6709_v34 }
 0x16a   : > { %1448 = vmatprep.mubr.f32.mxu0 %v8304_v54 }
 0x16d   : > { %1451 = vmatmul.mubr.f32.gmra.mrb[20].mxu0 %v6725_v40 }
 0x16e   : > { %1456 = vmatprep.mubr.f32.mxu0 %v8304_v54 }
 0x171   : > { %1459 = vmatmul.mubr.f32.gmra.mrb[22].mxu0 %v6733_v49 }
 0x172   : > { %1464 = vmatprep.mubr.f32.mxu0 %v8304_v54 }
 0x175   : > { %1467 = vmatmul.mubr.f32.gmra.mrb[24].mxu0 %v6751_v39 }
 0x176   : > { %1472 = vmatprep.mubr.f32.mxu0 %v8304_v54 }
 0x179   : > { %1475 = vmatmul.mubr.f32.gmra.mrb[26].mxu0 %v6765_v27 }
 0x17a   : > { %1480 = vmatprep.mubr.f32.mxu0 %v8304_v54 }
 0x17d   : > { %1483 = vmatmul.mubr.f32.gmra.mrb[28].mxu0 %v6776_v25 }
 0x17e   : > { %1488 = vmatprep.mubr.f32.mxu0 %v8304_v54 }
 0x181   : > { %1491 = vmatmul.mubr.f32.gmra.mrb[30].mxu0 %v6786_v6 }
 0x182   : > { %1577 = vmatprep.mubr.f32.mxu0 %v8304_v54 }
 0x185   : > { %1581 = vmatmul.mubr.f32.vlgmr.msra.gmra.mrb[0].mxu0 %v8332_v38 }
 0x186   : > { %5172 = vmatpush1.bf16.msra.mxu0 %v6626_v45  ;;  %1586 = vmatprep.mubr.f32.mxu0 %v8304_v54  ;;  %v8339_v45 = vand.u32 4294901760, %v6676_v33 }
 0x187   : > { %5174 = vmatprep.subr.bf16.mxu0 %v6630_v44  ;;  %v8343_v44 = vand.u32 4294901760, %v6733_v49 }
 0x189   : > { %1590 = vmatmul.mubr.f32.gmra.mrb[2].mxu0 %v8333_v26 }
 0x18a   : > { %5176 = vmatpush1.bf16.msra.mxu0 %v6638_v20  ;;  %1595 = vmatprep.mubr.f32.mxu0 %v8304_v54  ;;  %v8336_v20 = vand.u32 4294901760, %v6455_v0  ;;  %v8340_v0 = vand.u32 4294901760, %v6695_v3 }
 0x18b   : > { %5178 = vmatprep.subr.bf16.mxu0 %v6640_v12  ;;  %v8344_v12 = vand.u32 4294901760, %v6751_v39 }
 0x18d   : > { %1599 = vmatmul.mubr.f32.gmra.mrb[4].mxu0 %v8334_v31 }
 0x18e   : > { %5180 = vmatpush1.bf16.msra.mxu0 %v6646_v18  ;;  %1604 = vmatprep.mubr.f32.mxu0 %v8304_v54  ;;  %v8345_v18 = vand.u32 4294901760, %v6765_v27 }
 0x18f   : > { %5182 = vmatprep.subr.bf16.mxu0 %v6648_v9  ;;  %v8338_v9 = vand.u32 4294901760, %v6655_v46 }
 0x191   : > { %1608 = vmatmul.mubr.f32.gmra.mrb[6].mxu0 %v8335_v2 }
 0x192   : > { %5184 = vmatpush1.bf16.msra.mxu0 %v6651_v23  ;;  %1613 = vmatprep.mubr.f32.mxu0 %v8304_v54 }
 0x193   : > { %5186 = vmatprep.subr.bf16.mxu0 %v6462_v15  ;;  %v8341_v15 = vand.u32 4294901760, %v6709_v34 }
 0x195   : > { %1617 = vmatmul.mubr.f32.gmra.mrb[8].mxu0 %v8336_v20 }
 0x196   : > { %1622 = vmatprep.mubr.f32.mxu0 %v8304_v54 }
 0x199   : > { %1626 = vmatmul.mubr.f32.gmra.mrb[10].mxu0 %v8337_v50 }
 0x19a   : > { %1631 = vmatprep.mubr.f32.mxu0 %v8304_v54 }
 0x19d   : > { %1635 = vmatmul.mubr.f32.gmra.mrb[12].mxu0 %v8338_v9 }
 0x19e   : > { %1640 = vmatprep.mubr.f32.mxu0 %v8304_v54 }
 0x1a1   : > { %1644 = vmatmul.mubr.f32.gmra.mrb[14].mxu0 %v8339_v45 }
 0x1a2   : > { %1649 = vmatprep.mubr.f32.mxu0 %v8304_v54 }
 0x1a5   : > { %1653 = vmatmul.mubr.f32.gmra.mrb[16].mxu0 %v8340_v0 }
 0x1a6   : > { %1658 = vmatprep.mubr.f32.mxu0 %v8304_v54 }
 0x1a9   : > { %1662 = vmatmul.mubr.f32.gmra.mrb[18].mxu0 %v8341_v15 }
 0x1aa   : > { %1667 = vmatprep.mubr.f32.mxu0 %v8304_v54 }
 0x1ad   : > { %1671 = vmatmul.mubr.f32.gmra.mrb[20].mxu0 %v8342_v47 }
 0x1ae   : > { %1676 = vmatprep.mubr.f32.mxu0 %v8304_v54 }
 0x1b1   : > { %1680 = vmatmul.mubr.f32.gmra.mrb[22].mxu0 %v8343_v44 }
 0x1b2   : > { %1685 = vmatprep.mubr.f32.mxu0 %v8304_v54 }
 0x1b5   : > { %1689 = vmatmul.mubr.f32.gmra.mrb[24].mxu0 %v8344_v12 }
 0x1b6   : > { %1694 = vmatprep.mubr.f32.mxu0 %v8304_v54 }
 0x1b9   : > { %1698 = vmatmul.mubr.f32.gmra.mrb[26].mxu0 %v8345_v18 }
 0x1ba   : > { %1703 = vmatprep.mubr.f32.mxu0 %v8304_v54 }
 0x1bd   : > { %1707 = vmatmul.mubr.f32.gmra.mrb[28].mxu0 %v995_v29  ;;  %v2176_v29 = vld [vmem:[%s8141_s5 + $0x20] sm:$0xff] }
 0x1be   : > { %1712 = vmatprep.mubr.f32.mxu0 %v8304_v54  ;;  %v7068_v58 = vand.u32 4294901760, %v2176_v29 }
 0x1c0   : > { %8353 = vst [vmem:[#allocation17_spill] sm:$0xff] %v7068_v58  ;;  %v7089_v47 = vsub.f32 %v2176_v29, %v7068_v58 }
 0x1c1   : > { %1716 = vmatmul.mubr.f32.gmra.mrb[30].mxu0 %v1006_v19 }
 0x1c2   : > { %1834 = vmatprep.mubr.f32.mxu0 %v8304_v54 }
 0x1c5   : > { %1836 = vmatmul.mubr.f32.vlgmr.msra.gmra.mrb[0].mxu0 %v6375_v60 }
 0x1c6   : > { %5188 = vmatpush1.bf16.msra.mxu0 %v8322_v53  ;;  %1841 = vmatprep.mubr.f32.mxu0 %v8304_v54 }
 0x1c7   : > { %5190 = vmatprep.subr.bf16.mxu0 %v8323_v36 }
 0x1c9   : > { %1843 = vmatmul.mubr.f32.gmra.mrb[2].mxu0 %v6377_v61 }
 0x1ca   : > { %5192 = vmatpush1.bf16.msra.mxu0 %v8325_v35  ;;  %1848 = vmatprep.mubr.f32.mxu0 %v8304_v54 }
 0x1cb   : > { %5194 = vmatprep.subr.bf16.mxu0 %v8326_v14 }
 0x1cd   : > { %1850 = vmatmul.mubr.f32.gmra.mrb[4].mxu0 %v6379_v62 }
 0x1ce   : > { %5196 = vmatpush1.bf16.msra.mxu0 %v8328_v28  ;;  %1855 = vmatprep.mubr.f32.mxu0 %v8304_v54 }
 0x1cf   : > { %5198 = vmatprep.subr.bf16.mxu0 %v8329_v10 }
 0x1d1   : > { %1857 = vmatmul.mubr.f32.gmra.mrb[6].mxu0 %v6410_v17 }
 0x1d2   : > { %5200 = vmatpush1.bf16.msra.mxu0 %v8331_v52  ;;  %1862 = vmatprep.mubr.f32.mxu0 %v8304_v54  ;;  %v7077_v52 = vld [vmem:[%s8141_s5 + $0x28] sm:$0xff] }
 0x1d3   : > { %8354 = vst [vmem:[#allocation10_spill] sm:$0xff] %v7077_v52  ;;  %v7093_v18 = vand.u32 4294901760, %v7077_v52 }
 0x1d5   : > { %1864 = vmatmul.mubr.f32.gmra.mrb[8].mxu0 %v6438_v41 }
 0x1d6   : > { %1869 = vmatprep.mubr.f32.mxu0 %v8304_v54 }
 0x1d9   : > { %1871 = vmatmul.mubr.f32.gmra.mrb[10].mxu0 %v6457_v1 }
 0x1da   : > { %1876 = vmatprep.mubr.f32.mxu0 %v8304_v54 }
 0x1dd   : > { %1878 = vmatmul.mubr.f32.gmra.mrb[12].mxu0 %v6488_v48 }
 0x1de   : > { %1883 = vmatprep.mubr.f32.mxu0 %v8304_v54 }
 0x1e1   : > { %1885 = vmatmul.mubr.f32.gmra.mrb[14].mxu0 %v6660_v21 }
 0x1e2   : > { %1890 = vmatprep.mubr.f32.mxu0 %v8304_v54 }
 0x1e5   : > { %1892 = vmatmul.mubr.f32.gmra.mrb[16].mxu0 %v6683_v22 }
 0x1e6   : > { %1897 = vmatprep.mubr.f32.mxu0 %v8304_v54 }
 0x1e9   : > { %1899 = vmatmul.mubr.f32.gmra.mrb[18].mxu0 %v6697_v42 }
 0x1ea   : > { %1904 = vmatprep.mubr.f32.mxu0 %v8304_v54 }
 0x1ed   : > { %1906 = vmatmul.mubr.f32.gmra.mrb[20].mxu0 %v6711_v55 }
 0x1ee   : > { %1911 = vmatprep.mubr.f32.mxu0 %v8304_v54 }
 0x1f1   : > { %1913 = vmatmul.mubr.f32.gmra.mrb[22].mxu0 %v6718_v56 }
 0x1f2   : > { %1918 = vmatprep.mubr.f32.mxu0 %v8304_v54 }
 0x1f5   : > { %1920 = vmatmul.mubr.f32.gmra.mrb[24].mxu0 %v6739_v7 }
 0x1f6   : > { %1925 = vmatprep.mubr.f32.mxu0 %v8304_v54 }
 0x1f9   : > { %1927 = vmatmul.mubr.f32.gmra.mrb[26].mxu0 %v6753_v37 }
 0x1fa   : > { %1932 = vmatprep.mubr.f32.mxu0 %v8304_v54 }
 0x1fd   : > { %1934 = vmatmul.mubr.f32.gmra.mrb[28].mxu0 %v6767_v24 }
 0x1fe   : > { %1939 = vmatprep.mubr.f32.mxu0 %v8304_v54 }
 0x201   : > { %1941 = vmatmul.mubr.f32.gmra.mrb[30].mxu0 %v6778_v5 }
 0x202   : > { %2027 = vmatprep.mubr.f32.mxu0 %v8304_v54 }
 0x205   : > { %2029 = vmatmul.mubr.f32.vlgmr.msra.gmra.mrb[0].mxu0 %v6375_v60  ;;  %v2172_v60 = vld [vmem:[%s8141_s5] sm:$0xff] }
 0x206   : > { %2034 = vmatprep.mubr.f32.mxu0 %v8304_v54 }
 0x209   : > { %2036 = vmatmul.mubr.f32.gmra.mrb[2].mxu0 %v6377_v61  ;;  %v2173_v61 = vld [vmem:[%s8141_s5 + $0x8] sm:$0xff] }
 0x20a   : > { %2041 = vmatprep.mubr.f32.mxu0 %v8304_v54 }
 0x20d   : > { %2043 = vmatmul.mubr.f32.gmra.mrb[4].mxu0 %v6379_v62  ;;  %v632_v62 = vpop.permute.xlu0 %631 }
 0x20e   : > { %2048 = vmatprep.mubr.f32.mxu0 %v8304_v54 }
 0x211   : > { %2050 = vmatmul.mubr.f32.gmra.mrb[6].mxu0 %v6410_v17  ;;  %v642_v39 = vpop.permute.xlu0 %641 }
 0x212   : > { %2055 = vmatprep.mubr.f32.mxu0 %v8304_v54 }
 0x215   : > { %2057 = vmatmul.mubr.f32.gmra.mrb[8].mxu0 %v6438_v41  ;;  %v7026_v41 = vand.u32 4294901760, %v2172_v60  ;;  %v652_v14 = vpop.permute.xlu0 %651 }
 0x216   : > { %2062 = vmatprep.mubr.f32.mxu0 %v8304_v54 }
 0x217   : > { %8346 = vst [vmem:[#allocation11_spill] sm:$0xff] %v7026_v41 }
 0x219   : > { %2064 = vmatmul.mubr.f32.gmra.mrb[10].mxu0 %v6457_v1  ;;  %v7028_v1 = vand.u32 4294901760, %v2173_v61  ;;  %v662_v29 = vpop.permute.xlu0 %661 }
 0x21a   : > { %2069 = vmatprep.mubr.f32.mxu0 %v8304_v54 }
 0x21b   : > { %8347 = vst [vmem:[#allocation12_spill] sm:$0xff] %v7028_v1  ;;  %v7037_v3 = vsub.f32 %v2173_v61, %v7028_v1 }
 0x21d   : > { %2071 = vmatmul.mubr.f32.gmra.mrb[12].mxu0 %v6488_v48  ;;  %8349 = vst [vmem:[#allocation13_spill] sm:$0xff] %v7037_v3 }
 0x21e   : > { %2076 = vmatprep.mubr.f32.mxu0 %v8304_v54 }
 0x221   : > { %2078 = vmatmul.mubr.f32.gmra.mrb[14].mxu0 %v6660_v21  ;;  %v2174_v21 = vld [vmem:[%s8141_s5 + $0x10] sm:$0xff] }
 0x222   : > { %2083 = vmatprep.mubr.f32.mxu0 %v8304_v54  ;;  %v7039_v34 = vand.u32 4294901760, %v2174_v21 }
 0x224   : > { %8350 = vst [vmem:[#allocation14_spill] sm:$0xff] %v7039_v34  ;;  %v7047_v25 = vsub.f32 %v2174_v21, %v7039_v34 }
 0x225   : > { %2085 = vmatmul.mubr.f32.gmra.mrb[16].mxu0 %v6683_v22  ;;  %v7034_v22 = vsub.f32 %v2172_v60, %v7026_v41 }
 0x226   : > { %2090 = vmatprep.mubr.f32.mxu0 %v8304_v54  ;;  %8351 = vst [vmem:[#allocation9_spill] sm:$0xff] %v7047_v25  ;;  %v8198_v59 = vand.u32 4294901760, %v7047_v25 }
 0x227   : > { %8348 = vst [vmem:[#allocation8_spill] sm:$0xff] %v7034_v22  ;;  %v8200_v49 = vand.u32 4294901760, %v7034_v22 }
 0x228   : > { %v7084_v20 = vsub.f32 %v7047_v25, %v8198_v59 }
 0x229   : > { %2092 = vmatmul.mubr.f32.gmra.mrb[18].mxu0 %v6697_v42  ;;  %v7057_v19 = vsub.f32 %v7034_v22, %v8200_v49 }
 0x22a   : > { %2097 = vmatprep.mubr.f32.mxu0 %v8304_v54 }
 0x22d   : > { %2099 = vmatmul.mubr.f32.gmra.mrb[20].mxu0 %v6711_v55 }
 0x22e   : > { %2104 = vmatprep.mubr.f32.mxu0 %v8304_v54 }
 0x231   : > { %2106 = vmatmul.mubr.f32.gmra.mrb[22].mxu0 %v6718_v56  ;;  %v2175_v56 = vld [vmem:[%s8141_s5 + $0x18] sm:$0xff] }
 0x232   : > { %2111 = vmatprep.mubr.f32.mxu0 %v8304_v54  ;;  %v7049_v32 = vand.u32 4294901760, %v2175_v56 }
 0x234   : > { %8352 = vst [vmem:[#allocation15_spill] sm:$0xff] %v7049_v32  ;;  %v7066_v43 = vsub.f32 %v2175_v56, %v7049_v32 }
 0x235   : > { %2113 = vmatmul.mubr.f32.gmra.mrb[24].mxu0 %v6739_v7  ;;  %v8199_v7 = vand.u32 4294901760, %v7037_v3 }
 0x236   : > { %2118 = vmatprep.mubr.f32.mxu0 %v8304_v54 }
 0x237   : > { %v7062_v30 = vsub.f32 %v7037_v3, %v8199_v7 }
 0x239   : > { %2120 = vmatmul.mubr.f32.gmra.mrb[26].mxu0 %v6753_v37 }
 0x23a   : > { %2125 = vmatprep.mubr.f32.mxu0 %v8304_v54 }
 0x23d   : > { %2127 = vmatmul.mubr.f32.gmra.mrb[28].mxu0 %v6767_v24  ;;  %v637_v24 = vpop.permute.xlu1 %636 }
 0x23e   : > { %2132 = vmatprep.mubr.f32.mxu0 %v8304_v54 }
 0x241   : > { %2134 = vmatmul.mubr.f32.gmra.mrb[30].mxu0 %v6778_v5  ;;  %v647_v6 = vpop.permute.xlu1 %646 }
 0x245   : > { %v657_v60 = vpop.permute.xlu1 %656 }
 0x2d8   : > { %v2030_v17 = vpop.f32.mrb[0].mxu0 }
 0x2d9   : > { %v5537_v48 = vadd.f32 %v2030_v17, %v632_v62  ;;  %v2032_v23 = vpop.f32.mrb[1].mxu0 }
 0x2da   : > { %v5538_v46 = vadd.f32 %v2032_v23, %v632_v62 }
 0x2db   : > { %5941 = vtanh.f32 %v5537_v48 }
 0x2dc   : > { %5943 = vtanh.f32 %v5538_v46  ;;  %v2037_v33 = vpop.f32.mrb[2].mxu0 }
 0x2dd   : > { %v5539_v42 = vadd.f32 %v2037_v33, %v637_v24  ;;  %v2039_v37 = vpop.f32.mrb[3].mxu0 }
 0x2de   : > { %v5540_v55 = vadd.f32 %v2039_v37, %v637_v24 }
 0x2df   : > { %5945 = vtanh.f32 %v5539_v42 }
 0x2e0   : > { %5947 = vtanh.f32 %v5540_v55  ;;  %v2044_v40 = vpop.f32.mrb[4].mxu0 }
 0x2e1   : > { %v5541_v5 = vadd.f32 %v2044_v40, %v642_v39  ;;  %v2046_v27 = vpop.f32.mrb[5].mxu0 }
 0x2e2   : > { %v5542_v16 = vadd.f32 %v2046_v27, %v642_v39 }
 0x2e3   : > { %5949 = vtanh.f32 %v5541_v5 }
 0x2e4   : > { %5951 = vtanh.f32 %v5542_v16  ;;  %v2051_v57 = vpop.f32.mrb[6].mxu0 }
 0x2e5   : > { %v5942_v8 = vpop.eup %5941  ;;  %v5543_v63 = vadd.f32 %v2051_v57, %v647_v6  ;;  %v2053_v4 = vpop.f32.mrb[7].mxu0 }
 0x2e6   : > { %v5944_v51 = vpop.eup %5943  ;;  %v5544_v53 = vadd.f32 %v2053_v4, %v647_v6  ;;  %v2230_v36 = vand.u32 4294901760, %v5942_v8 }
 0x2e7   : > { %5953 = vtanh.f32 %v5543_v63  ;;  %v2228_v35 = vand.u32 4294901760, %v5944_v51 }
 0x2e8   : > { %5955 = vtanh.f32 %v5544_v53  ;;  %v2058_v11 = vpop.f32.mrb[8].mxu0  ;;  %v7070_v28 = vsub.f32 %v5942_v8, %v2230_v36 }
 0x2e9   : > { %v5946_v38 = vpop.eup %5945  ;;  %v5545_v26 = vadd.f32 %v2058_v11, %v652_v14  ;;  %v2060_v31 = vpop.f32.mrb[9].mxu0  ;;  %v7079_v2 = vsub.f32 %v5944_v51, %v2228_v35 }
 0x2ea   : > { %v5948_v9 = vpop.eup %5947  ;;  %v5546_v45 = vadd.f32 %v2060_v31, %v652_v14  ;;  %v2234_v0 = vand.u32 4294901760, %v5946_v38  ;;  %v8208_v15 = vand.u32 4294901760, %v7070_v28 }
 0x2eb   : > { %5957 = vtanh.f32 %v5545_v26  ;;  %v2232_v44 = vand.u32 4294901760, %v5948_v9  ;;  %v8211_v12 = vand.u32 4294901760, %v7079_v2 }
 0x2ec   : > { %5959 = vtanh.f32 %v5546_v45  ;;  %v2065_v61 = vpop.f32.mrb[10].mxu0  ;;  %v7095_v62 = vpack.c.bf16 %v2234_v0, %v2230_v36  ;;  %v7097_v17 = vsub.f32 %v5946_v38, %v2234_v0  ;;  %v2422_v48 = vsub.f32 %v7070_v28, %v8208_v15 }
 0x2ed   : > { %v5950_v23 = vpop.eup %5949  ;;  %v5547_v46 = vadd.f32 %v2065_v61, %v657_v60  ;;  %v2067_v21 = vpop.f32.mrb[11].mxu0  ;;  %v7102_v24 = vpack.c.bf16 %v2232_v44, %v2228_v35  ;;  %v7104_v33 = vsub.f32 %v5948_v9, %v2232_v44  ;;  %v2416_v42 = vsub.f32 %v7079_v2, %v8211_v12 }
 0x2ee   : > { %8355 = vst [vmem:[#allocation16_spill] sm:$0xff] %v7095_v62  ;;  %v5952_v37 = vpop.eup %5951  ;;  %v5548_v55 = vadd.f32 %v2067_v21, %v657_v60  ;;  %v2238_v56 = vand.u32 4294901760, %v5950_v23  ;;  %v2423_v39 = vand.u32 4294901760, %v2422_v48  ;;  %v8207_v40 = vand.u32 4294901760, %v7097_v17  ;;  %v667_v60 = vpop.permute.xlu1 %666 }
 0x2ef   : > { %8356 = vst [vmem:[#allocation18_spill] sm:$0xff] %v7102_v24  ;;  %5961 = vtanh.f32 %v5547_v46  ;;  %5202 = vmatprep.subr.bf16.mxu1 %v7102_v24  ;;  %v2236_v5 = vand.u32 4294901760, %v5952_v37  ;;  %v2417_v27 = vand.u32 4294901760, %v2416_v42  ;;  %v8209_v16 = vand.u32 4294901760, %v7104_v33 }
 0x2f0   : > { %5963 = vtanh.f32 %v5548_v55  ;;  %v2072_v6 = vpop.f32.mrb[12].mxu0  ;;  %5204 = vmatpush1.bf16.msra.mxu1 %v7095_v62  ;;  %v7113_v57 = vsub.f32 %v5950_v23, %v2238_v56  ;;  %v2434_v8 = vsub.f32 %v7097_v17, %v8207_v40 }
 0x2f1   : > { %v5954_v4 = vpop.eup %5953  ;;  %v5549_v51 = vadd.f32 %v2072_v6, %v662_v29  ;;  %v2074_v53 = vpop.f32.mrb[13].mxu0  ;;  %v7120_v36 = vsub.f32 %v5952_v37, %v2236_v5  ;;  %v2428_v35 = vsub.f32 %v7104_v33, %v8209_v16 }
 0x2f2   : > { %v5956_v11 = vpop.eup %5955  ;;  %v5550_v38 = vadd.f32 %v2074_v53, %v662_v29  ;;  %v2242_v26 = vand.u32 4294901760, %v5954_v4  ;;  %v2435_v31 = vand.u32 4294901760, %v2434_v8  ;;  %v8202_v9 = vand.u32 4294901760, %v7113_v57  ;;  %v677_v49 = vpop.permute.xlu1 %676 }
 0x2f3   : > { %5965 = vtanh.f32 %v5549_v51  ;;  %v2240_v45 = vand.u32 4294901760, %v5956_v11  ;;  %v2429_v0 = vand.u32 4294901760, %v2428_v35  ;;  %v8206_v44 = vand.u32 4294901760, %v7120_v36  ;;  %v672_v35 = vpop.permute.xlu0 %671 }
 0x2f4   : > { %5967 = vtanh.f32 %v5550_v38  ;;  %v2079_v61 = vpop.f32.mrb[14].mxu0  ;;  %v7129_v48 = vpack.c.bf16 %v2242_v26, %v2238_v56  ;;  %v7131_v23 = vsub.f32 %v5954_v4, %v2242_v26  ;;  %v7133_v46 = vpack.c.bf16 %v2435_v31, %v2423_v39 }
 0x2f5   : > { %v5958_v21 = vpop.eup %5957  ;;  %v5551_v42 = vadd.f32 %v2079_v61, %v667_v60  ;;  %v2081_v37 = vpop.f32.mrb[15].mxu0  ;;  %v7135_v55 = vpack.c.bf16 %v2240_v45, %v2236_v5  ;;  %v7137_v29 = vsub.f32 %v5956_v11, %v2240_v45  ;;  %v7139_v6 = vpack.c.bf16 %v2429_v0, %v2417_v27 }
 0x2f6   : > { %8357 = vst [vmem:[#allocation19_spill] sm:$0xff] %v7129_v48  ;;  %v5960_v8 = vpop.eup %5959  ;;  %v5552_v51 = vadd.f32 %v2081_v37, %v667_v60  ;;  %v2246_v53 = vand.u32 4294901760, %v5958_v21  ;;  %v2440_v56 = vsub.f32 %v7120_v36, %v8206_v44  ;;  %v2446_v39 = vsub.f32 %v7113_v57, %v8202_v9  ;;  %v687_v40 = vpop.permute.xlu1 %686 }
 0x2f7   : > { %8358 = vst [vmem:[#allocation20_spill] sm:$0xff] %v7135_v55  ;;  %5969 = vtanh.f32 %v5551_v42  ;;  %5206 = vmatprep.subr.bf16.mxu1 %v7135_v55  ;;  %v2244_v5 = vand.u32 4294901760, %v5960_v8  ;;  %v8205_v4 = vand.u32 4294901760, %v7137_v29  ;;  %v8201_v27 = vand.u32 4294901760, %v7131_v23 }
 0x2f8   : > { %5971 = vtanh.f32 %v5552_v51  ;;  %v2086_v11 = vpop.f32.mrb[16].mxu0  ;;  %5208 = vmatpush1.bf16.msra.mxu1 %v7129_v48  ;;  %v7151_v38 = vsub.f32 %v5958_v21, %v2246_v53  ;;  %v2441_v26 = vand.u32 4294901760, %v2440_v56  ;;  %v2447_v31 = vand.u32 4294901760, %v2446_v39 }
 0x2f9   : > { %v5962_v45 = vpop.eup %5961  ;;  %v5553_v0 = vadd.f32 %v2086_v11, %v672_v35  ;;  %v2088_v60 = vpop.f32.mrb[17].mxu0  ;;  %v7153_v61 = vsub.f32 %v5960_v8, %v2244_v5  ;;  %v2452_v42 = vsub.f32 %v7137_v29, %v8205_v4  ;;  %v2458_v37 = vsub.f32 %v7131_v23, %v8201_v27 }
 0x2fa   : > { %v5964_v51 = vpop.eup %5963  ;;  %v5554_v59 = vadd.f32 %v2088_v60, %v672_v35  ;;  %v2250_v7 = vand.u32 4294901760, %v5962_v45  ;;  %v8203_v21 = vand.u32 4294901760, %v7151_v38 }
 0x2fb   : > { %5973 = vtanh.f32 %v5553_v0  ;;  %v2248_v39 = vand.u32 4294901760, %v5964_v51  ;;  %v2453_v8 = vand.u32 4294901760, %v2452_v42  ;;  %v2459_v11 = vand.u32 4294901760, %v2458_v37 }
 0x2fc   : > { %5975 = vtanh.f32 %v5554_v59  ;;  %v2093_v14 = vpop.f32.mrb[18].mxu0  ;;  %v7164_v63 = vpack.c.bf16 %v2250_v7, %v2246_v53  ;;  %v7166_v13 = vsub.f32 %v5962_v45, %v2250_v7  ;;  %v8204_v50 = vand.u32 4294901760, %v7153_v61 }
 0x2fd   : > { %v5966_v35 = vpop.eup %5965  ;;  %v5555_v60 = vadd.f32 %v2093_v14, %v677_v49  ;;  %v2095_v10 = vpop.f32.mrb[19].mxu0  ;;  %v7169_v27 = vpack.c.bf16 %v2248_v39, %v2244_v5  ;;  %v7171_v9 = vsub.f32 %v5964_v51, %v2248_v39  ;;  %v7173_v0 = vpack.c.bf16 %v2453_v8, %v2441_v26 }
 0x2fe   : > { %8359 = vst [vmem:[#allocation21_spill] sm:$0xff] %v7164_v63  ;;  %v5968_v42 = vpop.eup %5967  ;;  %v5556_v37 = vadd.f32 %v2095_v10, %v677_v49  ;;  %v2254_v56 = vand.u32 4294901760, %v5966_v35  ;;  %v7175_v59 = vpack.c.bf16 %v2459_v11, %v2447_v31  ;;  %v2464_v7 = vsub.f32 %v7153_v61, %v8204_v50  ;;  %v682_v26 = vpop.permute.xlu0 %681 }
 0x2ff   : > { %8360 = vst [vmem:[#allocation22_spill] sm:$0xff] %v7169_v27  ;;  %5977 = vtanh.f32 %v5555_v60  ;;  %5210 = vmatprep.subr.bf16.mxu1 %v7169_v27  ;;  %v2252_v14 = vand.u32 4294901760, %v5968_v42  ;;  %v8210_v53 = vand.u32 4294901760, %v7171_v9  ;;  %v2470_v5 = vsub.f32 %v7151_v38, %v8203_v21  ;;  %v697_v27 = vpop.permute.xlu1 %696 }
 0x300   : > { %8361 = vst [vmem:[#allocation23_spill] sm:$0xff] %v7175_v59  ;;  %5979 = vtanh.f32 %v5556_v37  ;;  %v2100_v49 = vpop.f32.mrb[20].mxu0  ;;  %5212 = vmatpush1.bf16.msra.mxu1 %v7164_v63  ;;  %v7186_v10 = vsub.f32 %v5966_v35, %v2254_v56  ;;  %v2465_v31 = vand.u32 4294901760, %v2464_v7  ;;  %v8214_v45 = vand.u32 4294901760, %v7166_v13 }
 0x301   : > { %v5970_v51 = vpop.eup %5969  ;;  %v5557_v39 = vadd.f32 %v2100_v49, %v682_v26  ;;  %v2102_v8 = vpop.f32.mrb[21].mxu0  ;;  %v7189_v11 = vsub.f32 %v5968_v42, %v2252_v14  ;;  %v2476_v60 = vsub.f32 %v7171_v9, %v8210_v53  ;;  %v2471_v21 = vand.u32 4294901760, %v2470_v5 }
 0x302   : > { %v5972_v50 = vpop.eup %5971  ;;  %v5558_v37 = vadd.f32 %v2102_v8, %v682_v26  ;;  %v2258_v4 = vand.u32 4294901760, %v5970_v51  ;;  %v2482_v35 = vsub.f32 %v7166_v13, %v8214_v45 }
 0x303   : > { %5981 = vtanh.f32 %v5557_v39  ;;  %v2256_v44 = vand.u32 4294901760, %v5972_v50  ;;  %v2477_v49 = vand.u32 4294901760, %v2476_v60  ;;  %v707_v24 = vpop.permute.xlu1 %706 }
 0x304   : > { %5983 = vtanh.f32 %v5558_v37  ;;  %v2107_v15 = vpop.f32.mrb[22].mxu0  ;;  %v7199_v16 = vpack.c.bf16 %v2258_v4, %v2254_v56  ;;  %v7201_v5 = vsub.f32 %v5970_v51, %v2258_v4  ;;  %v2483_v26 = vand.u32 4294901760, %v2482_v35 }
 0x305   : > { %v5974_v8 = vpop.eup %5973  ;;  %v5559_v53 = vadd.f32 %v2107_v15, %v687_v40  ;;  %v2109_v12 = vpop.f32.mrb[23].mxu0  ;;  %v7203_v63 = vpack.c.bf16 %v2256_v44, %v2252_v14  ;;  %v7205_v45 = vsub.f32 %v5972_v50, %v2256_v44  ;;  %v7207_v39 = vpack.c.bf16 %v2477_v49, %v2465_v31 }
 0x306   : > { %8362 = vst [vmem:[#allocation24_spill] sm:$0xff] %v7199_v16  ;;  %v5976_v60 = vpop.eup %5975  ;;  %v5560_v7 = vadd.f32 %v2109_v12, %v687_v40  ;;  %v2262_v42 = vand.u32 4294901760, %v5974_v8  ;;  %v7209_v25 = vpack.c.bf16 %v2483_v26, %v2471_v21  ;;  %v8366_v56 = vand.u32 4294901760, %v7189_v11  ;;  %v692_v31 = vpop.permute.xlu0 %691 }
 0x307   : > { %8363 = vst [vmem:[#allocation25_spill] sm:$0xff] %v7203_v63  ;;  %8364 = vst [vmem:[#allocation26_spill] sm:$0xff] %v7207_v39  ;;  %5985 = vtanh.f32 %v5559_v53  ;;  %5214 = vmatprep.subr.bf16.mxu1 %v7203_v63  ;;  %v2260_v15 = vand.u32 4294901760, %v5976_v60  ;;  %v8227_v14 = vand.u32 4294901760, %v7205_v45  ;;  %v8367_v50 = vand.u32 4294901760, %v7186_v10 }
 0x308   : > { %8365 = vst [vmem:[#allocation27_spill] sm:$0xff] %v7209_v25  ;;  %v2488_v4 = vsub.f32 %v7189_v11, %v8366_v56  ;;  %5987 = vtanh.f32 %v5560_v7  ;;  %v2114_v12 = vpop.f32.mrb[24].mxu0  ;;  %5216 = vmatpush1.bf16.msra.mxu1 %v7199_v16  ;;  %v7220_v40 = vsub.f32 %v5974_v8, %v2262_v42  ;;  %v8232_v51 = vand.u32 4294901760, %v7201_v5 }
 0x309   : > { %v2494_v44 = vsub.f32 %v7186_v10, %v8367_v50  ;;  %v5978_v53 = vpop.eup %5977  ;;  %v5561_v37 = vadd.f32 %v2114_v12, %v692_v31  ;;  %v2116_v35 = vpop.f32.mrb[25].mxu0  ;;  %v7223_v49 = vsub.f32 %v5976_v60, %v2260_v15  ;;  %v2500_v26 = vsub.f32 %v7205_v45, %v8227_v14 }
 0x30a   : > { %v2489_v21 = vand.u32 4294901760, %v2488_v4  ;;  %v5980_v50 = vpop.eup %5979  ;;  %v5562_v7 = vadd.f32 %v2116_v35, %v692_v31  ;;  %v2266_v63 = vand.u32 4294901760, %v5978_v53  ;;  %v2506_v8 = vsub.f32 %v7201_v5, %v8232_v51 }
 0x30b   : > { %v2495_v56 = vand.u32 4294901760, %v2494_v44  ;;  %5989 = vtanh.f32 %v5561_v37  ;;  %v2264_v16 = vand.u32 4294901760, %v5980_v50  ;;  %v2501_v12 = vand.u32 4294901760, %v2500_v26 }
 0x30c   : > { %5991 = vtanh.f32 %v5562_v7  ;;  %v2121_v48 = vpop.f32.mrb[26].mxu0  ;;  %v7233_v3 = vpack.c.bf16 %v2266_v63, %v2262_v42  ;;  %v7235_v44 = vsub.f32 %v5978_v53, %v2266_v63  ;;  %v2507_v31 = vand.u32 4294901760, %v2506_v8  ;;  %v702_v53 = vpop.permute.xlu0 %701 }
 0x30d   : > { %v5982_v35 = vpop.eup %5981  ;;  %v5563_v14 = vadd.f32 %v2121_v48, %v697_v27  ;;  %v2123_v55 = vpop.f32.mrb[27].mxu0  ;;  %v7237_v62 = vpack.c.bf16 %v2264_v16, %v2260_v15  ;;  %v7239_v51 = vsub.f32 %v5980_v50, %v2264_v16  ;;  %v7241_v37 = vpack.c.bf16 %v2501_v12, %v2489_v21 }
 0x30e   : > { %8368 = vst [vmem:[#allocation28_spill] sm:$0xff] %v7233_v3  ;;  %v5984_v26 = vpop.eup %5983  ;;  %v5564_v4 = vadd.f32 %v2123_v55, %v697_v27  ;;  %v2270_v60 = vand.u32 4294901760, %v5982_v35  ;;  %v7243_v22 = vpack.c.bf16 %v2507_v31, %v2495_v56  ;;  %v8372_v42 = vand.u32 4294901760, %v7223_v49 }
 0x30f   : > { %8369 = vst [vmem:[#allocation29_spill] sm:$0xff] %v7237_v62  ;;  %8370 = vst [vmem:[#allocation30_spill] sm:$0xff] %v7241_v37  ;;  %5993 = vtanh.f32 %v5563_v14  ;;  %5218 = vmatprep.subr.bf16.mxu1 %v7237_v62  ;;  %v2268_v48 = vand.u32 4294901760, %v5984_v26  ;;  %v8245_v15 = vand.u32 4294901760, %v7239_v51  ;;  %v8373_v16 = vand.u32 4294901760, %v7220_v40 }
 0x310   : > { %8371 = vst [vmem:[#allocation31_spill] sm:$0xff] %v7243_v22  ;;  %v2512_v63 = vsub.f32 %v7223_v49, %v8372_v42  ;;  %5995 = vtanh.f32 %v5564_v4  ;;  %v2128_v55 = vpop.f32.mrb[28].mxu0  ;;  %5220 = vmatpush1.bf16.msra.mxu1 %v7233_v3  ;;  %v7254_v27 = vsub.f32 %v5982_v35, %v2270_v60  ;;  %v8250_v50 = vand.u32 4294901760, %v7235_v44 }
 0x311   : > { %v2518_v21 = vsub.f32 %v7220_v40, %v8373_v16  ;;  %v5986_v14 = vpop.eup %5985  ;;  %v5565_v7 = vadd.f32 %v2128_v55, %v702_v53  ;;  %v2130_v8 = vpop.f32.mrb[29].mxu0  ;;  %v7257_v12 = vsub.f32 %v5984_v26, %v2268_v48  ;;  %v2524_v31 = vsub.f32 %v7239_v51, %v8245_v15 }
 0x312   : > { %v2513_v56 = vand.u32 4294901760, %v2512_v63  ;;  %v5988_v16 = vpop.eup %5987  ;;  %v5566_v4 = vadd.f32 %v2130_v8, %v702_v53  ;;  %v2274_v62 = vand.u32 4294901760, %v5986_v14  ;;  %v2530_v35 = vsub.f32 %v7235_v44, %v8250_v50 }
 0x313   : > { %v2519_v42 = vand.u32 4294901760, %v2518_v21  ;;  %5997 = vtanh.f32 %v5565_v7  ;;  %v2272_v3 = vand.u32 4294901760, %v5988_v16  ;;  %v2525_v55 = vand.u32 4294901760, %v2524_v31 }
 0x314   : > { %5999 = vtanh.f32 %v5566_v4  ;;  %v2135_v58 = vpop.f32.mrb[30].mxu0  ;;  %v7267_v32 = vpack.c.bf16 %v2274_v62, %v2270_v60  ;;  %v7269_v21 = vsub.f32 %v5986_v14, %v2274_v62  ;;  %v2531_v53 = vand.u32 4294901760, %v2530_v35 }
 0x315   : > { %v5990_v8 = vpop.eup %5989  ;;  %v5567_v15 = vadd.f32 %v2135_v58, %v707_v24  ;;  %v2137_v34 = vpop.f32.mrb[31].mxu0  ;;  %v7271_v1 = vpack.c.bf16 %v2272_v3, %v2268_v48  ;;  %v7273_v50 = vsub.f32 %v5988_v16, %v2272_v3  ;;  %v7275_v7 = vpack.c.bf16 %v2525_v55, %v2513_v56 }
 0x316   : > { %8374 = vst [vmem:[#allocation32_spill] sm:$0xff] %v7267_v32  ;;  %v5992_v31 = vpop.eup %5991  ;;  %v5568_v63 = vadd.f32 %v2137_v34, %v707_v24  ;;  %v2278_v26 = vand.u32 4294901760, %v5990_v8  ;;  %v7277_v41 = vpack.c.bf16 %v2531_v53, %v2519_v42  ;;  %v8378_v60 = vand.u32 4294901760, %v7257_v12 }
 0x317   : > { %8375 = vst [vmem:[#allocation33_spill] sm:$0xff] %v7271_v1  ;;  %8376 = vst [vmem:[#allocation34_spill] sm:$0xff] %v7275_v7  ;;  %6001 = vtanh.f32 %v5567_v15  ;;  %5222 = vmatprep.subr.bf16.mxu1 %v7271_v1  ;;  %v2276_v58 = vand.u32 4294901760, %v5992_v31  ;;  %v8253_v48 = vand.u32 4294901760, %v7273_v50  ;;  %v8379_v3 = vand.u32 4294901760, %v7254_v27 }
 0x318   : > { %8377 = vst [vmem:[#allocation35_spill] sm:$0xff] %v7277_v41  ;;  %v2536_v62 = vsub.f32 %v7257_v12, %v8378_v60  ;;  %6003 = vtanh.f32 %v5568_v63  ;;  %5224 = vmatpush1.bf16.msra.mxu1 %v7267_v32  ;;  %v7288_v34 = vsub.f32 %v5990_v8, %v2278_v26  ;;  %v8256_v14 = vand.u32 4294901760, %v7269_v21 }
 0x319   : > { %v2542_v56 = vsub.f32 %v7254_v27, %v8379_v3  ;;  %v5994_v42 = vpop.eup %5993  ;;  %v7291_v16 = vsub.f32 %v5992_v31, %v2276_v58  ;;  %v2548_v15 = vsub.f32 %v7273_v50, %v8253_v48  ;;  %v8396_v22 = vand.u32 4294901760, %v7113_v57 }
 0x31a   : > { %v2537_v24 = vand.u32 4294901760, %v2536_v62  ;;  %v5996_v55 = vpop.eup %5995  ;;  %v2282_v63 = vand.u32 4294901760, %v5994_v42  ;;  %v2554_v53 = vsub.f32 %v7269_v21, %v8256_v14  ;;  %v8259_v8 = vand.u32 4294901760, %v7288_v34 }
 0x31b   : > { %v2543_v4 = vand.u32 4294901760, %v2542_v56  ;;  %v2280_v60 = vand.u32 4294901760, %v5996_v55  ;;  %v2549_v62 = vand.u32 4294901760, %v2548_v15  ;;  %v8260_v3 = vand.u32 4294901760, %v7291_v16 }
 0x31c   : > { %v7307_v48 = vpack.c.bf16 %v2282_v63, %v2278_v26  ;;  %v7309_v35 = vsub.f32 %v5994_v42, %v2282_v63  ;;  %v2555_v32 = vand.u32 4294901760, %v2554_v53  ;;  %v2566_v14 = vsub.f32 %v7288_v34, %v8259_v8 }
 0x31d   : > { %v5998_v1 = vpop.eup %5997  ;;  %v7314_v41 = vpack.c.bf16 %v2280_v60, %v2276_v58  ;;  %v7316_v31 = vsub.f32 %v5996_v55, %v2280_v60  ;;  %v7318_v15 = vpack.c.bf16 %v2549_v62, %v2537_v24  ;;  %v2560_v56 = vsub.f32 %v7291_v16, %v8260_v3 }
 0x31e   : > { %8380 = vst [vmem:[#allocation36_spill] sm:$0xff] %v7307_v48  ;;  %v6000_v26 = vpop.eup %5999  ;;  %v2286_v7 = vand.u32 4294901760, %v5998_v1  ;;  %v7323_v42 = vpack.c.bf16 %v2555_v32, %v2543_v4  ;;  %v2567_v63 = vand.u32 4294901760, %v2566_v14  ;;  %v8265_v53 = vand.u32 4294901760, %v7309_v35 }
 0x31f   : > { %8381 = vst [vmem:[#allocation37_spill] sm:$0xff] %v7314_v41  ;;  %8382 = vst [vmem:[#allocation38_spill] sm:$0xff] %v7318_v15  ;;  %5226 = vmatprep.subr.bf16.mxu1 %v7314_v41  ;;  %v2284_v8 = vand.u32 4294901760, %v6000_v26  ;;  %v2561_v58 = vand.u32 4294901760, %v2560_v56  ;;  %v2571_v55 = vand.u32 4294901760, %v7316_v31 }
 0x320   : > { %8383 = vst [vmem:[#allocation39_spill] sm:$0xff] %v7323_v42  ;;  %5228 = vmatpush1.bf16.msra.mxu1 %v7307_v48  ;;  %v7331_v60 = vsub.f32 %v5998_v1, %v2286_v7  ;;  %v2578_v32 = vsub.f32 %v7309_v35, %v8265_v53 }
 0x321   : > { %v6002_v62 = vpop.eup %6001  ;;  %v7340_v56 = vsub.f32 %v6000_v26, %v2284_v8  ;;  %v2572_v3 = vsub.f32 %v7316_v31, %v2571_v55 }
 0x322   : > { %8384 = vst [vmem:[#allocation40_spill] sm:$0xff] %v7331_v60  ;;  %v6004_v48 = vpop.eup %6003  ;;  %v2290_v41 = vand.u32 4294901760, %v6002_v62  ;;  %v2579_v53 = vand.u32 4294901760, %v2578_v32  ;;  %v2589_v42 = vand.u32 4294901760, %v7331_v60 }
 0x323   : > { %v2288_v4 = vand.u32 4294901760, %v6004_v48  ;;  %v2573_v15 = vand.u32 4294901760, %v2572_v3  ;;  %v2583_v26 = vand.u32 4294901760, %v7340_v56 }
 0x324   : > { %v7353_v37 = vpack.c.bf16 %v2290_v41, %v2286_v7  ;;  %v7355_v24 = vsub.f32 %v6002_v62, %v2290_v41  ;;  %v7357_v1 = vpack.c.bf16 %v2579_v53, %v2567_v63  ;;  %v2590_v32 = vsub.f32 %v7331_v60, %v2589_v42 }
 0x325   : > { %v7360_v25 = vpack.c.bf16 %v2288_v4, %v2284_v8  ;;  %v7362_v39 = vsub.f32 %v6004_v48, %v2288_v4  ;;  %v7364_v14 = vpack.c.bf16 %v2573_v15, %v2561_v58  ;;  %v2584_v3 = vsub.f32 %v7340_v56, %v2583_v26 }
 0x326   : > { %8385 = vst [vmem:[#allocation41_spill] sm:$0xff] %v7353_v37  ;;  %v2591_v59 = vand.u32 4294901760, %v2590_v32  ;;  %v2601_v52 = vand.u32 4294901760, %v7355_v24  ;;  %v8387_v15 = vand.u32 4294901760, %v7079_v2  ;;  %v8388_v53 = vand.u32 4294901760, %v7104_v33 }
 0x327   : > { %8386 = vst [vmem:[#allocation42_spill] sm:$0xff] %v7360_v25  ;;  %5230 = vmatprep.subr.bf16.mxu1 %v7360_v25  ;;  %v2585_v63 = vand.u32 4294901760, %v2584_v3  ;;  %v2595_v8 = vand.u32 4294901760, %v7362_v39  ;;  %v8390_v62 = vand.u32 4294901760, %v7070_v28  ;;  %v8391_v32 = vand.u32 4294901760, %v7097_v17 }
 0x328   : > { %v7380_v58 = vpack.c.bf16 %v8388_v53, %v8387_v15  ;;  %5232 = vmatpush1.bf16.msra.mxu1 %v7353_v37  ;;  %v2602_v4 = vsub.f32 %v7355_v24, %v2601_v52  ;;  %v8393_v41 = vand.u32 4294901760, %v7120_v36  ;;  %v8394_v48 = vand.u32 4294901760, %v7137_v29 }
 0x329   : > { %v7388_v3 = vpack.c.bf16 %v8391_v32, %v8390_v62  ;;  %v8397_v15 = vand.u32 4294901760, %v7131_v23  ;;  %5234 = vmatprep.subr.bf16.mxu1 %v7139_v6  ;;  %v8399_v37 = vand.u32 4294901760, %v7153_v61  ;;  %v8400_v62 = vand.u32 4294901760, %v7171_v9 }
 0x32a   : > { %8389 = vst [vmem:[#allocation43_spill] sm:$0xff] %v7380_v58  ;;  %v7394_v7 = vpack.c.bf16 %v8394_v48, %v8393_v41  ;;  %v2596_v58 = vsub.f32 %v7362_v39, %v2595_v8  ;;  %v8403_v41 = vand.u32 4294901760, %v7166_v13  ;;  %v2603_v6 = vand.u32 4294901760, %v2602_v4 }
 0x32b   : > { %8392 = vst [vmem:[#allocation44_spill] sm:$0xff] %v7388_v3  ;;  %v7400_v53 = vpack.c.bf16 %v8397_v15, %v8396_v22  ;;  %v7408_v32 = vpack.c.bf16 %v8400_v62, %v8399_v37  ;;  %v8402_v3 = vand.u32 4294901760, %v7151_v38  ;;  %v8406_v22 = vand.u32 4294901760, %v7205_v45 }
 0x32c   : > { %8395 = vst [vmem:[#allocation45_spill] sm:$0xff] %v7394_v7  ;;  %v8405_v7 = vand.u32 4294901760, %v7189_v11  ;;  %v8408_v25 = vand.u32 4294901760, %v7201_v5  ;;  %v8410_v37 = vand.u32 4294901760, %v7223_v49  ;;  %v8411_v62 = vand.u32 4294901760, %v7239_v51 }
 0x32d   : > { %8398 = vst [vmem:[#allocation46_spill] sm:$0xff] %v7400_v53  ;;  %8401 = vst [vmem:[#allocation47_spill] sm:$0xff] %v7408_v32  ;;  %v7414_v48 = vpack.c.bf16 %v8403_v41, %v8402_v3  ;;  %v8407_v53 = vand.u32 4294901760, %v7186_v10  ;;  %v8413_v3 = vand.u32 4294901760, %v7220_v40  ;;  %v8414_v41 = vand.u32 4294901760, %v7235_v44 }
 0x32e   : > { %v7420_v15 = vpack.c.bf16 %v8406_v22, %v8405_v7  ;;  %v7432_v32 = vpack.c.bf16 %v8411_v62, %v8410_v37  ;;  %v8415_v7 = vand.u32 4294901760, %v7057_v19  ;;  %v2597_v4 = vand.u32 4294901760, %v2596_v58  ;;  %v2178_v19 = vld [vmem:[%s8141_s5 + $0x30] sm:$0xff] }
 0x32f   : > { %8404 = vst [vmem:[#allocation48_spill] sm:$0xff] %v7414_v48  ;;  %v7426_v60 = vpack.c.bf16 %v8408_v25, %v8407_v53  ;;  %v7438_v48 = vpack.c.bf16 %v8414_v41, %v8413_v3  ;;  %v8416_v22 = vand.u32 4294901760, %v7257_v12  ;;  %v8417_v25 = vand.u32 4294901760, %v7273_v50 }
 0x330   : > { %8412 = vst [vmem:[#allocation50_spill] sm:$0xff] %v7432_v32  ;;  %2330 = vmatmul.mubr.f32.vlgmr.msra.gmra.mrb[0].mxu1 %v8415_v7  ;;  %v8419_v37 = vand.u32 4294901760, %v7269_v21  ;;  %v8420_v32 = vand.u32 4294901760, %v7291_v16  ;;  %v5263_v58 = vpack.c.bf16 %v2603_v6, %v2591_v59  ;;  %v8421_v41 = vand.u32 4294901760, %v7288_v34 }
 0x331   : > { %8409 = vst [vmem:[#allocation49_spill] sm:$0xff] %v7426_v60  ;;  %v7446_v53 = vpack.c.bf16 %v8417_v25, %v8416_v22  ;;  %v8418_v60 = vand.u32 4294901760, %v7254_v27  ;;  %5236 = vmatpush1.bf16.msra.mxu1 %v7133_v46  ;;  %2335 = vmatprep.mubr.f32.mxu1 %v8304_v54  ;;  %v8422_v7 = vand.u32 4294901760, %v7309_v35  ;;  %v8423_v46 = vand.u32 4294901760, %v7066_v43 }
 0x332   : > { %v7456_v3 = vpack.c.bf16 %v2571_v55, %v8420_v32  ;;  %5238 = vmatprep.subr.bf16.mxu1 %v7173_v0  ;;  %v5261_v55 = vpack.c.bf16 %v2597_v4, %v2585_v63  ;;  %v7472_v32 = vpack.c.bf16 %v2601_v52, %v2589_v42  ;;  %v2351_v59 = vand.u32 4294901760, %v7084_v20  ;;  %v8426_v0 = vld [vmem:[#allocation23_spill] sm:$0xff]  ;;  %v2179_v52 = vld [vmem:[%s8141_s5 + $0x38] sm:$0xff] }
 0x333   : > { %v7452_v62 = vpack.c.bf16 %v8419_v37, %v8418_v60  ;;  %v7467_v22 = vpack.c.bf16 %v8422_v7, %v8421_v41  ;;  %v7469_v60 = vpack.c.bf16 %v2595_v8, %v2583_v26  ;;  %v2361_v25 = vsub.f32 %v7066_v43, %v8423_v46  ;;  %v8425_v41 = vld [vmem:[#allocation10_spill] sm:$0xff]  ;;  %v8428_v46 = vld [vmem:[#allocation27_spill] sm:$0xff] }
 0x334   : > { %v8424_v37 = vand.u32 4294901760, %v7062_v30  ;;  %v2371_v6 = vand.u32 4294901760, %v7089_v47  ;;  %v7483_v26 = vsub.f32 %v8425_v41, %v7093_v18  ;;  %v7485_v8 = vand.u32 4294901760, %v2178_v19  ;;  %v8427_v30 = vld [vmem:[#allocation26_spill] sm:$0xff] }
 0x335   : > { %5240 = vmatpush1.bf16.msra.mxu1 %v8426_v0  ;;  %v2362_v42 = vand.u32 4294901760, %v2361_v25  ;;  %v7500_v7 = vand.u32 4294901760, %v2179_v52 }
 0x336   : > { %2341 = vmatmul.mubr.f32.gmra.mrb[2].mxu1 %v8424_v37  ;;  %5242 = vmatprep.subr.bf16.mxu1 %v8427_v30  ;;  %v2372_v20 = vsub.f32 %v7089_v47, %v2371_v6  ;;  %v2382_v63 = vand.u32 4294901760, %v7483_v26  ;;  %v7498_v4 = vsub.f32 %v2178_v19, %v7485_v8  ;;  %v8429_v37 = vld [vmem:[#allocation30_spill] sm:$0xff]  ;;  %v8430_v19 = vld [vmem:[#allocation31_spill] sm:$0xff] }
 0x337   : > { %2346 = vmatprep.mubr.f32.mxu1 %v8304_v54  ;;  %v7510_v0 = vsub.f32 %v2179_v52, %v7500_v7  ;;  %v8431_v30 = vld [vmem:[#allocation34_spill] sm:$0xff] }
 0x338   : > { %v2373_v25 = vand.u32 4294901760, %v2372_v20  ;;  %v2393_v41 = vand.u32 4294901760, %v7498_v4  ;;  %v8433_v52 = vld [vmem:[#allocation38_spill] sm:$0xff] }
 0x339   : > { %5244 = vmatpush1.bf16.msra.mxu1 %v8428_v46  ;;  %v2404_v20 = vand.u32 4294901760, %v7510_v0 }
 0x33a   : > { %2352 = vmatmul.mubr.f32.gmra.mrb[4].mxu1 %v2351_v59  ;;  %5246 = vmatprep.subr.bf16.mxu1 %v8429_v37  ;;  %v2383_v59 = vsub.f32 %v7483_v26, %v2382_v63  ;;  %v8432_v37 = vld [vmem:[#allocation35_spill] sm:$0xff] }
 0x33b   : > { %2357 = vmatprep.mubr.f32.mxu1 %v8304_v54 }
 0x33c   : > { %v2384_v46 = vand.u32 4294901760, %v2383_v59 }
 0x33d   : > { %5248 = vmatpush1.bf16.msra.mxu1 %v8430_v19 }
 0x33e   : > { %2363 = vmatmul.mubr.f32.gmra.mrb[6].mxu1 %v2362_v42  ;;  %5250 = vmatprep.subr.bf16.mxu1 %v8431_v30  ;;  %v2394_v42 = vsub.f32 %v7498_v4, %v2393_v41  ;;  %v2405_v30 = vsub.f32 %v7510_v0, %v2404_v20 }
 0x33f   : > { %2368 = vmatprep.mubr.f32.mxu1 %v8304_v54 }
 0x340   : > { %v2395_v19 = vand.u32 4294901760, %v2394_v42  ;;  %v2406_v59 = vand.u32 4294901760, %v2405_v30  ;;  %v8436_v42 = vld [vmem:[#allocation11_spill] sm:$0xff]  ;;  %v8475_v30 = vld [vmem:[#allocation41_spill] sm:$0xff] }
 0x341   : > { %5252 = vmatpush1.bf16.msra.mxu1 %v8432_v37  ;;  %v8472_v37 = vld [vmem:[#allocation37_spill] sm:$0xff] }
 0x342   : > { %2374 = vmatmul.mubr.f32.gmra.mrb[8].mxu1 %v2373_v25  ;;  %5254 = vmatprep.subr.bf16.mxu1 %v8433_v52  ;;  %v8434_v25 = vld [vmem:[#allocation39_spill] sm:$0xff]  ;;  %v8473_v52 = vld [vmem:[#allocation36_spill] sm:$0xff] }
 0x343   : > { %2379 = vmatprep.mubr.f32.mxu1 %v8304_v54 }
 0x345   : > { %5256 = vmatpush1.bf16.msra.mxu1 %v8434_v25  ;;  %v8476_v25 = vld [vmem:[#allocation43_spill] sm:$0xff] }
 0x346   : > { %2385 = vmatmul.mubr.f32.gmra.mrb[10].mxu1 %v2384_v46  ;;  %5258 = vmatprep.subr.bf16.mxu1 %v7364_v14  ;;  %v8435_v46 = vpack.c.bf16 %v7104_v33, %v7079_v2  ;;  %v8437_v14 = vpack.c.bf16 %v7097_v17, %v7070_v28  ;;  %v8441_v2 = vpack.c.bf16 %v7171_v9, %v7153_v61  ;;  %v8442_v28 = vld [vmem:[#allocation14_spill] sm:$0xff] }
 0x347   : > { %2390 = vmatprep.mubr.f32.mxu1 %v8304_v54  ;;  %v8443_v17 = vpack.c.bf16 %v7166_v13, %v7151_v38  ;;  %v8444_v33 = vpack.c.bf16 %v7205_v45, %v7189_v11  ;;  %v8447_v9 = vpack.c.bf16 %v7239_v51, %v7223_v49  ;;  %v8448_v13 = vld [vmem:[#allocation17_spill] sm:$0xff]  ;;  %v8451_v38 = vpack.c.bf16 %v7269_v21, %v7254_v27  ;;  %v8455_v11 = vld [vmem:[#allocation40_spill] sm:$0xff]  ;;  %v8462_v27 = vld [vmem:[#allocation19_spill] sm:$0xff] }
 0x348   : > { %v8452_v61 = vpack.c.bf16 %v7316_v31, %v7291_v16  ;;  %v8454_v45 = vpack.c.bf16 %v7362_v39, %v7340_v56  ;;  %v8458_v51 = vld [vmem:[#allocation8_spill] sm:$0xff]  ;;  %v8461_v39 = vld [vmem:[#allocation13_spill] sm:$0xff] }
 0x349   : > { %5260 = vmatpush1.bf16.msra.mxu1 %v7357_v1  ;;  %v8438_v1 = vpack.c.bf16 %v7137_v29, %v7120_v36  ;;  %v8446_v36 = vpack.c.bf16 %v7201_v5, %v7186_v10  ;;  %v8450_v29 = vpack.c.bf16 %v7273_v50, %v7257_v12  ;;  %v8453_v10 = vpack.c.bf16 %v7309_v35, %v7288_v34  ;;  %v8459_v49 = vld [vmem:[#allocation16_spill] sm:$0xff]  ;;  %v8463_v50 = vld [vmem:[#allocation22_spill] sm:$0xff]  ;;  %v8464_v12 = vld [vmem:[#allocation9_spill] sm:$0xff] }
 0x34a   : > { %2396 = vmatmul.mubr.f32.gmra.mrb[12].mxu1 %v2395_v19  ;;  %5262 = vmatprep.subr.bf16.mxu1 %v5261_v55  ;;  %v8439_v55 = vld [vmem:[#allocation12_spill] sm:$0xff]  ;;  %v8456_v5 = vpack.c.bf16 %v7355_v24, %v8455_v11  ;;  %v8465_v21 = vld [vmem:[#allocation21_spill] sm:$0xff]  ;;  %v8474_v19 = vld [vmem:[#allocation42_spill] sm:$0xff] }
 0x34b   : > { %2401 = vmatprep.mubr.f32.mxu1 %v8304_v54  ;;  %v8466_v34 = vld [vmem:[#allocation25_spill] sm:$0xff]  ;;  %v8467_v16 = vld [vmem:[#allocation24_spill] sm:$0xff] }
 0x34c   : > { %v8468_v35 = vld [vmem:[#allocation29_spill] sm:$0xff]  ;;  %v8469_v31 = vld [vmem:[#allocation28_spill] sm:$0xff] }
 0x34d   : > { %5264 = vmatpush1.bf16.msra.mxu1 %v5263_v58  ;;  %v8440_v58 = vpack.c.bf16 %v7131_v23, %v7113_v57  ;;  %v8445_v57 = vld [vmem:[#allocation15_spill] sm:$0xff]  ;;  %v8449_v23 = vpack.c.bf16 %v7235_v44, %v7220_v40  ;;  %v8457_v40 = vld [vmem:[#allocation18_spill] sm:$0xff]  ;;  %v8460_v44 = vld [vmem:[#allocation20_spill] sm:$0xff] }
 0x34e   : > { %2407 = vmatmul.mubr.f32.gmra.mrb[14].mxu1 %v2406_v59  ;;  %5266 = vmatprep.subr.bf16.mxu1 %v8435_v46  ;;  %v8470_v24 = vld [vmem:[#allocation33_spill] sm:$0xff]  ;;  %v8471_v56 = vld [vmem:[#allocation32_spill] sm:$0xff]  ;;  %v8477_v59 = vand.u32 4294901760, %v8458_v51 }
 0x34f   : > { %2637 = vmatprep.mubr.f32.mxu1 %v8304_v54  ;;  %v8478_v46 = vld [vmem:[#allocation44_spill] sm:$0xff] }
 0x352   : > { %2639 = vmatmul.mubr.f32.vlgmr.msra.gmra.mrb[0].mxu1 %v8436_v42 }
 0x353   : > { %5268 = vmatpush1.bf16.msra.mxu1 %v8437_v14  ;;  %2644 = vmatprep.mubr.f32.mxu1 %v8304_v54  ;;  %v8479_v14 = vld [vmem:[#allocation45_spill] sm:$0xff] }
 0x354   : > { %5270 = vmatprep.subr.bf16.mxu1 %v8438_v1  ;;  %v8480_v1 = vand.u32 4294901760, %v8461_v39 }
 0x356   : > { %2646 = vmatmul.mubr.f32.gmra.mrb[2].mxu1 %v8439_v55 }
 0x357   : > { %5272 = vmatpush1.bf16.msra.mxu1 %v8440_v58  ;;  %2651 = vmatprep.mubr.f32.mxu1 %v8304_v54  ;;  %v8481_v58 = vld [vmem:[#allocation46_spill] sm:$0xff] }
 0x358   : > { %5274 = vmatprep.subr.bf16.mxu1 %v8441_v2  ;;  %v8482_v2 = vld [vmem:[#allocation47_spill] sm:$0xff] }
 0x35a   : > { %2653 = vmatmul.mubr.f32.gmra.mrb[4].mxu1 %v8442_v28 }
 0x35b   : > { %5276 = vmatpush1.bf16.msra.mxu1 %v8443_v17  ;;  %2658 = vmatprep.mubr.f32.mxu1 %v8304_v54  ;;  %v8483_v17 = vand.u32 4294901760, %v8464_v12 }
 0x35c   : > { %5278 = vmatprep.subr.bf16.mxu1 %v8444_v33  ;;  %v8484_v33 = vld [vmem:[#allocation48_spill] sm:$0xff] }
 0x35e   : > { %2660 = vmatmul.mubr.f32.gmra.mrb[6].mxu1 %v8445_v57 }
 0x35f   : > { %5280 = vmatpush1.bf16.msra.mxu1 %v8446_v36  ;;  %2665 = vmatprep.mubr.f32.mxu1 %v8304_v54  ;;  %v8485_v36 = vand.u32 4294901760, %v7066_v43 }
 0x360   : > { %5282 = vmatprep.subr.bf16.mxu1 %v8447_v9  ;;  %v8486_v9 = vld [vmem:[#allocation49_spill] sm:$0xff] }
 0x362   : > { %2667 = vmatmul.mubr.f32.gmra.mrb[8].mxu1 %v8448_v13 }
 0x363   : > { %5284 = vmatpush1.bf16.msra.mxu1 %v8449_v23  ;;  %2672 = vmatprep.mubr.f32.mxu1 %v8304_v54  ;;  %v8487_v23 = vld [vmem:[#allocation50_spill] sm:$0xff] }
 0x364   : > { %5286 = vmatprep.subr.bf16.mxu1 %v8450_v29 }
 0x366   : > { %2674 = vmatmul.mubr.f32.gmra.mrb[10].mxu1 %v7093_v18 }
 0x367   : > { %5288 = vmatpush1.bf16.msra.mxu1 %v8451_v38  ;;  %2679 = vmatprep.mubr.f32.mxu1 %v8304_v54 }
 0x368   : > { %5290 = vmatprep.subr.bf16.mxu1 %v8452_v61  ;;  %v2196_v61 = vpop.permute.xlu1 %2195 }
 0x36a   : > { %2681 = vmatmul.mubr.f32.gmra.mrb[12].mxu1 %v7485_v8 }
 0x36b   : > { %5292 = vmatpush1.bf16.msra.mxu1 %v8453_v10  ;;  %2686 = vmatprep.mubr.f32.mxu1 %v8304_v54 }
 0x36c   : > { %5294 = vmatprep.subr.bf16.mxu1 %v8454_v45 }
 0x36e   : > { %2688 = vmatmul.mubr.f32.gmra.mrb[14].mxu1 %v7500_v7 }
 0x36f   : > { %5296 = vmatpush1.bf16.msra.mxu1 %v8456_v5  ;;  %2822 = vmatprep.mubr.f32.mxu1 %v8304_v54 }
 0x370   : > { %5298 = vmatprep.subr.bf16.mxu1 %v8457_v40 }
 0x372   : > { %2825 = vmatmul.mubr.f32.vlgmr.msra.gmra.mrb[0].mxu1 %v8458_v51 }
 0x373   : > { %5300 = vmatpush1.bf16.msra.mxu1 %v8459_v49  ;;  %2830 = vmatprep.mubr.f32.mxu1 %v8304_v54 }
 0x374   : > { %5302 = vmatprep.subr.bf16.mxu1 %v8460_v44 }
 0x376   : > { %2833 = vmatmul.mubr.f32.gmra.mrb[2].mxu1 %v8461_v39 }
 0x377   : > { %5304 = vmatpush1.bf16.msra.mxu1 %v8462_v27  ;;  %2838 = vmatprep.mubr.f32.mxu1 %v8304_v54 }
 0x378   : > { %5306 = vmatprep.subr.bf16.mxu1 %v8463_v50 }
 0x37a   : > { %2841 = vmatmul.mubr.f32.gmra.mrb[4].mxu1 %v8464_v12 }
 0x37b   : > { %5308 = vmatpush1.bf16.msra.mxu1 %v8465_v21  ;;  %2846 = vmatprep.mubr.f32.mxu1 %v8304_v54 }
 0x37c   : > { %5310 = vmatprep.subr.bf16.mxu1 %v8466_v34 }
 0x37e   : > { %2849 = vmatmul.mubr.f32.gmra.mrb[6].mxu1 %v7066_v43  ;;  %v3474_v43 = vld [vmem:[%s8143_s7] sm:$0xff] }
 0x37f   : > { %5312 = vmatpush1.bf16.msra.mxu1 %v8467_v16  ;;  %2854 = vmatprep.mubr.f32.mxu1 %v8304_v54 }
 0x380   : > { %5314 = vmatprep.subr.bf16.mxu1 %v8468_v35 }
 0x382   : > { %2857 = vmatmul.mubr.f32.gmra.mrb[8].mxu1 %v7089_v47  ;;  %v3475_v47 = vld [vmem:[%s8143_s7 + $0x8] sm:$0xff] }
 0x383   : > { %5316 = vmatpush1.bf16.msra.mxu1 %v8469_v31  ;;  %2862 = vmatprep.mubr.f32.mxu1 %v8304_v54 }
 0x384   : > { %5318 = vmatprep.subr.bf16.mxu1 %v8470_v24 }
 0x386   : > { %2865 = vmatmul.mubr.f32.gmra.mrb[10].mxu1 %v7483_v26 }
 0x387   : > { %5320 = vmatpush1.bf16.msra.mxu1 %v8471_v56  ;;  %2870 = vmatprep.mubr.f32.mxu1 %v8304_v54 }
 0x388   : > { %5322 = vmatprep.subr.bf16.mxu1 %v8472_v37 }
 0x38a   : > { %2873 = vmatmul.mubr.f32.gmra.mrb[12].mxu1 %v7498_v4 }
 0x38b   : > { %5324 = vmatpush1.bf16.msra.mxu1 %v8473_v52  ;;  %2878 = vmatprep.mubr.f32.mxu1 %v8304_v54 }
 0x38c   : > { %5326 = vmatprep.subr.bf16.mxu1 %v8474_v19 }
 0x38e   : > { %2881 = vmatmul.mubr.f32.gmra.mrb[14].mxu1 %v7510_v0 }
 0x38f   : > { %5328 = vmatpush1.bf16.msra.mxu1 %v8475_v30  ;;  %2983 = vmatprep.mubr.f32.mxu1 %v8304_v54 }
 0x390   : > { %5330 = vmatprep.subr.bf16.mxu1 %v8476_v25 }
 0x392   : > { %2987 = vmatmul.mubr.f32.vlgmr.msra.gmra.mrb[0].mxu1 %v8477_v59 }
 0x393   : > { %5332 = vmatpush1.bf16.msra.mxu1 %v8478_v46  ;;  %2992 = vmatprep.mubr.f32.mxu1 %v8304_v54 }
 0x394   : > { %5334 = vmatprep.subr.bf16.mxu1 %v8479_v14 }
 0x396   : > { %2996 = vmatmul.mubr.f32.gmra.mrb[2].mxu1 %v8480_v1 }
 0x397   : > { %5336 = vmatpush1.bf16.msra.mxu1 %v8481_v58  ;;  %3001 = vmatprep.mubr.f32.mxu1 %v8304_v54 }
 0x398   : > { %5338 = vmatprep.subr.bf16.mxu1 %v8482_v2 }
 0x39a   : > { %3005 = vmatmul.mubr.f32.gmra.mrb[4].mxu1 %v8483_v17 }
 0x39b   : > { %5340 = vmatpush1.bf16.msra.mxu1 %v8484_v33  ;;  %3010 = vmatprep.mubr.f32.mxu1 %v8304_v54  ;;  %v2206_v33 = vpop.permute.xlu1 %2205 }
 0x39c   : > { %5342 = vmatprep.subr.bf16.mxu1 %v7420_v15  ;;  %v3506_v15 = vsel %vm709_vm0, %v3475_v47, 0 }
 0x39e   : > { %3014 = vmatmul.mubr.f32.gmra.mrb[6].mxu1 %v8485_v36 }
 0x39f   : > { %5344 = vmatpush1.bf16.msra.mxu1 %v8486_v9  ;;  %3019 = vmatprep.mubr.f32.mxu1 %v8304_v54 }
 0x3a0   : > { %5346 = vmatprep.subr.bf16.mxu1 %v8487_v23 }
 0x3a2   : > { %3023 = vmatmul.mubr.f32.gmra.mrb[8].mxu1 %v2371_v6 }
 0x3a3   : > { %5348 = vmatpush1.bf16.msra.mxu1 %v7438_v48  ;;  %3028 = vmatprep.mubr.f32.mxu1 %v8304_v54  ;;  %v3503_v48 = vsel %vm709_vm0, %v3474_v43, 0 }
 0x3a4   : > { %5350 = vmatprep.subr.bf16.mxu1 %v7446_v53 }
 0x3a6   : > { %3032 = vmatmul.mubr.f32.gmra.mrb[10].mxu1 %v2382_v63 }
 0x3a7   : > { %5352 = vmatpush1.bf16.msra.mxu1 %v7452_v62  ;;  %3037 = vmatprep.mubr.f32.mxu1 %v8304_v54  ;;  %v7727_v62 = vand.u32 4294901760, %v3503_v48 }
 0x3a8   : > { %5354 = vmatprep.subr.bf16.mxu1 %v7456_v3  ;;  %v7729_v3 = vand.u32 4294901760, %v3506_v15 }
 0x3aa   : > { %3041 = vmatmul.mubr.f32.gmra.mrb[12].mxu1 %v2393_v41  ;;  %v7741_v26 = vsub.f32 %v3506_v15, %v7729_v3  ;;  %v2191_v41 = vpop.permute.xlu0 %2190 }
 0x3ab   : > { %5356 = vmatpush1.bf16.msra.mxu1 %v7467_v22  ;;  %3046 = vmatprep.mubr.f32.mxu1 %v8304_v54  ;;  %v3477_v22 = vld [vmem:[%s8143_s7 + $0x18] sm:$0xff] }
 0x3ac   : > { %5358 = vmatprep.subr.bf16.mxu1 %v7469_v60  ;;  %v3512_v6 = vsel %vm709_vm0, %v3477_v22, 0 }
 0x3ad   : > { %v7746_v63 = vand.u32 4294901760, %v3512_v6 }
 0x3ae   : > { %3050 = vmatmul.mubr.f32.gmra.mrb[14].mxu1 %v2404_v20 }
 0x3af   : > { %5360 = vmatpush1.bf16.msra.mxu1 %v7472_v32  ;;  %3216 = vmatprep.mubr.f32.mxu1 %v8304_v54  ;;  %v7737_v32 = vsub.f32 %v3503_v48, %v7727_v62 }
 0x3b0   : > { %5362 = vmatprep.subr.bf16.mxu1 %v8457_v40 }
 0x3b1   : > { %v8275_v4 = vand.u32 4294901760, %v7737_v32 }
 0x3b2   : > { %3218 = vmatmul.mubr.f32.vlgmr.msra.gmra.mrb[0].mxu1 %v8436_v42 }
 0x3b3   : > { %5364 = vmatpush1.bf16.msra.mxu1 %v8459_v49  ;;  %3223 = vmatprep.mubr.f32.mxu1 %v8304_v54 }
 0x3b4   : > { %5366 = vmatprep.subr.bf16.mxu1 %v8460_v44 }
 0x3b6   : > { %3225 = vmatmul.mubr.f32.gmra.mrb[2].mxu1 %v8439_v55 }
 0x3b7   : > { %5368 = vmatpush1.bf16.msra.mxu1 %v8462_v27  ;;  %3230 = vmatprep.mubr.f32.mxu1 %v8304_v54 }
 0x3b8   : > { %5370 = vmatprep.subr.bf16.mxu1 %v8463_v50 }
 0x3ba   : > { %3232 = vmatmul.mubr.f32.gmra.mrb[4].mxu1 %v8442_v28 }
 0x3bb   : > { %5372 = vmatpush1.bf16.msra.mxu1 %v8465_v21  ;;  %3237 = vmatprep.mubr.f32.mxu1 %v8304_v54 }
 0x3bc   : > { %5374 = vmatprep.subr.bf16.mxu1 %v8466_v34 }
 0x3be   : > { %3239 = vmatmul.mubr.f32.gmra.mrb[6].mxu1 %v8445_v57 }
 0x3bf   : > { %5376 = vmatpush1.bf16.msra.mxu1 %v8467_v16  ;;  %3244 = vmatprep.mubr.f32.mxu1 %v8304_v54  ;;  %v2201_v16 = vpop.permute.xlu0 %2200 }
 0x3c0   : > { %5378 = vmatprep.subr.bf16.mxu1 %v8468_v35 }
 0x3c2   : > { %3246 = vmatmul.mubr.f32.gmra.mrb[8].mxu1 %v8448_v13 }
 0x3c3   : > { %5380 = vmatpush1.bf16.msra.mxu1 %v8469_v31  ;;  %3251 = vmatprep.mubr.f32.mxu1 %v8304_v54 }
 0x3c4   : > { %5382 = vmatprep.subr.bf16.mxu1 %v8470_v24 }
 0x3c6   : > { %3253 = vmatmul.mubr.f32.gmra.mrb[10].mxu1 %v7093_v18 }
 0x3c7   : > { %5384 = vmatpush1.bf16.msra.mxu1 %v8471_v56  ;;  %3258 = vmatprep.mubr.f32.mxu1 %v8304_v54 }
 0x3c8   : > { %5386 = vmatprep.subr.bf16.mxu1 %v8472_v37 }
 0x3ca   : > { %3260 = vmatmul.mubr.f32.gmra.mrb[12].mxu1 %v7485_v8 }
 0x3cb   : > { %5388 = vmatpush1.bf16.msra.mxu1 %v8473_v52  ;;  %3265 = vmatprep.mubr.f32.mxu1 %v8304_v54 }
 0x3cc   : > { %5390 = vmatprep.subr.bf16.mxu1 %v8474_v19 }
 0x3ce   : > { %3267 = vmatmul.mubr.f32.gmra.mrb[14].mxu1 %v7500_v7 }
 0x3cf   : > { %5392 = vmatpush1.bf16.msra.mxu1 %v8475_v30  ;;  %3369 = vmatprep.mubr.f32.mxu1 %v8304_v54 }
 0x3d2   : > { %3371 = vmatmul.mubr.f32.vlgmr.msra.gmra.mrb[0].mxu1 %v8436_v42 }
 0x3d3   : > { %3376 = vmatprep.mubr.f32.mxu1 %v8304_v54 }
 0x3d6   : > { %3378 = vmatmul.mubr.f32.gmra.mrb[2].mxu1 %v8439_v55 }
 0x3d7   : > { %3383 = vmatprep.mubr.f32.mxu1 %v8304_v54 }
 0x3da   : > { %3385 = vmatmul.mubr.f32.gmra.mrb[4].mxu1 %v8442_v28  ;;  %v7752_v28 = vsub.f32 %v3512_v6, %v7746_v63 }
 0x3db   : > { %3390 = vmatprep.mubr.f32.mxu1 %v8304_v54 }
 0x3dc   : > { %v8272_v49 = vand.u32 4294901760, %v7752_v28 }
 0x3de   : > { %3392 = vmatmul.mubr.f32.gmra.mrb[6].mxu1 %v8445_v57  ;;  %v7780_v25 = vsub.f32 %v7752_v28, %v8272_v49 }
 0x3df   : > { %3397 = vmatprep.mubr.f32.mxu1 %v8304_v54 }
 0x3e2   : > { %3399 = vmatmul.mubr.f32.gmra.mrb[8].mxu1 %v8448_v13  ;;  %v7757_v13 = vsub.f32 %v7737_v32, %v8275_v4 }
 0x3e3   : > { %3404 = vmatprep.mubr.f32.mxu1 %v8304_v54 }
 0x3e4   : > { %v3599_v50 = vand.u32 4294901760, %v7757_v13 }
 0x3e6   : > { %3406 = vmatmul.mubr.f32.gmra.mrb[10].mxu1 %v7093_v18  ;;  %v3476_v18 = vld [vmem:[%s8143_s7 + $0x10] sm:$0xff] }
 0x3e7   : > { %3411 = vmatprep.mubr.f32.mxu1 %v8304_v54  ;;  %v3509_v53 = vsel %vm709_vm0, %v3476_v18, 0 }
 0x3e8   : > { %v7734_v60 = vand.u32 4294901760, %v3509_v53 }
 0x3ea   : > { %3413 = vmatmul.mubr.f32.gmra.mrb[12].mxu1 %v7485_v8  ;;  %v7744_v8 = vsub.f32 %v3509_v53, %v7734_v60 }
 0x3eb   : > { %3418 = vmatprep.mubr.f32.mxu1 %v8304_v54 }
 0x3ec   : > { %v8273_v20 = vand.u32 4294901760, %v7744_v8 }
 0x3ee   : > { %3420 = vmatmul.mubr.f32.gmra.mrb[14].mxu1 %v7500_v7  ;;  %v8274_v7 = vand.u32 4294901760, %v7741_v26  ;;  %v7767_v11 = vsub.f32 %v7744_v8, %v8273_v20 }
 0x3ef   : > { %3594 = vmatprep.mubr.f32.mxu1 %v8304_v54 }
 0x3f0   : > { %v7762_v38 = vsub.f32 %v7741_v26, %v8274_v7 }
 0x3f2   : > { %v3610_v34 = vand.u32 4294901760, %v7762_v38 }
 0x4a5   : > { %v3372_v0 = vpop.f32.mrb[0].mxu1 }
 0x4a6   : > { %v5569_v42 = vadd.f32 %v3372_v0, %v2191_v41  ;;  %v3374_v55 = vpop.f32.mrb[1].mxu1 }
 0x4a7   : > { %v5570_v57 = vadd.f32 %v3374_v55, %v2191_v41 }
 0x4a8   : > { %vm3426_vm1 = vcmp.gt.f32.partialorder %v5569_v42, 0.0  ;;  %v3442_v29 = vmul.f32 0.2, %v5569_v42 }
 0x4a9   : > { %vm3427_vm2 = vcmp.gt.f32.partialorder %v5570_v57, 0.0  ;;  %v3443_v10 = vmul.f32 0.2, %v5570_v57  ;;  %v3379_v45 = vpop.f32.mrb[2].mxu1 }
 0x4aa   : > { %v3458_v5 = vsel %vm3426_vm1, %v5569_v42, %v3442_v29  ;;  %v5571_v40 = vadd.f32 %v3379_v45, %v2196_v61  ;;  %v3381_v51 = vpop.f32.mrb[3].mxu1  ;;  %v2211_v29 = vpop.permute.xlu0 %2210  ;;  %vm4330_vm1 = vcmask 261120  }
 0x4ab   : > { %v3516_v44 = vand.u32 4294901760, %v3458_v5  ;;  %v3459_v39 = vsel %vm3427_vm2, %v5570_v57, %v3443_v10  ;;  %v5572_v27 = vadd.f32 %v3381_v51, %v2196_v61 }
 0x4ac   : > { %v3514_v12 = vand.u32 4294901760, %v3459_v39  ;;  %vm3428_vm3 = vcmp.gt.f32.partialorder %v5571_v40, 0.0  ;;  %v3444_v21 = vmul.f32 0.2, %v5571_v40 }
 0x4ad   : > { %v7772_v35 = vsub.f32 %v3458_v5, %v3516_v44  ;;  %vm3429_vm4 = vcmp.gt.f32.partialorder %v5572_v27, 0.0  ;;  %v3445_v31 = vmul.f32 0.2, %v5572_v27  ;;  %v3386_v24 = vpop.f32.mrb[4].mxu1 }
 0x4ae   : > { %v7775_v37 = vsub.f32 %v3459_v39, %v3514_v12  ;;  %v3460_v52 = vsel %vm3428_vm3, %v5571_v40, %v3444_v21  ;;  %v5573_v19 = vadd.f32 %v3386_v24, %v2201_v16  ;;  %v3388_v30 = vpop.f32.mrb[5].mxu1 }
 0x4af   : > { %v8283_v59 = vand.u32 4294901760, %v7772_v35  ;;  %v3520_v46 = vand.u32 4294901760, %v3460_v52  ;;  %v3461_v14 = vsel %vm3429_vm4, %v5572_v27, %v3445_v31  ;;  %v5574_v1 = vadd.f32 %v3388_v30, %v2201_v16  ;;  %v2216_v30 = vpop.permute.xlu1 %2215 }
 0x4b0   : > { %v3518_v58 = vand.u32 4294901760, %v3461_v14  ;;  %vm3430_vm5 = vcmp.gt.f32.partialorder %v5573_v19, 0.0  ;;  %v3446_v2 = vmul.f32 0.2, %v5573_v19  ;;  %v3641_v17 = vand.u32 4294901760, %v7775_v37 }
 0x4b1   : > { %v7784_v36 = vsub.f32 %v3460_v52, %v3520_v46  ;;  %vm3431_vm6 = vcmp.gt.f32.partialorder %v5574_v1, 0.0  ;;  %v3447_v9 = vmul.f32 0.2, %v5574_v1  ;;  %v3393_v23 = vpop.f32.mrb[6].mxu1  ;;  %v7786_v43 = vpack.c.bf16 %v3520_v46, %v3516_v44 }
 0x4b2   : > { %v7788_v47 = vsub.f32 %v3461_v14, %v3518_v58  ;;  %v3462_v18 = vsel %vm3430_vm5, %v5573_v19, %v3446_v2  ;;  %v5575_v48 = vadd.f32 %v3393_v23, %v2206_v33  ;;  %v3395_v15 = vpop.f32.mrb[7].mxu1  ;;  %v7790_v53 = vpack.c.bf16 %v3518_v58, %v3514_v12 }
 0x4b3   : > { %v8278_v22 = vand.u32 4294901760, %v7784_v36  ;;  %v3524_v6 = vand.u32 4294901760, %v3462_v18  ;;  %v3463_v41 = vsel %vm3431_vm6, %v5574_v1, %v3447_v9  ;;  %v5576_v0 = vadd.f32 %v3395_v15, %v2206_v33 }
 0x4b4   : > { %v3522_v42 = vand.u32 4294901760, %v3463_v41  ;;  %vm3432_vm7 = vcmp.gt.f32.partialorder %v5575_v48, 0.0  ;;  %v3448_v55 = vmul.f32 0.2, %v5575_v48  ;;  %5394 = vmatprep.subr.bf16.mxu1 %v7790_v53  ;;  %v3642_v57 = vsub.f32 %v7775_v37, %v3641_v17 }
 0x4b5   : > { %v7797_v61 = vsub.f32 %v3462_v18, %v3524_v6  ;;  %vm3433_vm8 = vcmp.gt.f32.partialorder %v5576_v0, 0.0  ;;  %v3449_v10 = vmul.f32 0.2, %v5576_v0  ;;  %v3400_v45 = vpop.f32.mrb[8].mxu1  ;;  %5396 = vmatpush1.bf16.msra.mxu1 %v7786_v43  ;;  %v8284_v5 = vand.u32 4294901760, %v7788_v47 }
 0x4b6   : > { %v7801_v40 = vsub.f32 %v3463_v41, %v3522_v42  ;;  %v3464_v51 = vsel %vm3432_vm7, %v5575_v48, %v3448_v55  ;;  %v5577_v44 = vadd.f32 %v3400_v45, %v2211_v29  ;;  %v3402_v39 = vpop.f32.mrb[9].mxu1  ;;  %v3643_v27 = vand.u32 4294901760, %v3642_v57 }
 0x4b7   : > { %v8279_v12 = vand.u32 4294901760, %v7797_v61  ;;  %v3528_v21 = vand.u32 4294901760, %v3464_v51  ;;  %v3465_v16 = vsel %vm3433_vm8, %v5576_v0, %v3449_v10  ;;  %v5578_v31 = vadd.f32 %v3402_v39, %v2211_v29 }
 0x4b8   : > { %v3526_v24 = vand.u32 4294901760, %v3465_v16  ;;  %vm3434_vm9 = vcmp.gt.f32.partialorder %v5577_v44, 0.0  ;;  %v3450_v52 = vmul.f32 0.2, %v5577_v44  ;;  %v3654_v19 = vsub.f32 %v7788_v47, %v8284_v5 }
 0x4b9   : > { %v7807_v46 = vsub.f32 %v3464_v51, %v3528_v21  ;;  %vm3435_vm10 = vcmp.gt.f32.partialorder %v5578_v31, 0.0  ;;  %v3451_v14 = vmul.f32 0.2, %v5578_v31  ;;  %v3407_v1 = vpop.f32.mrb[10].mxu1  ;;  %v7809_v58 = vpack.c.bf16 %v3528_v21, %v3524_v6  ;;  %v2221_v6 = vpop.permute.xlu0 %2220 }
 0x4ba   : > { %v7811_v2 = vsub.f32 %v3465_v16, %v3526_v24  ;;  %v3466_v33 = vsel %vm3434_vm9, %v5577_v44, %v3450_v52  ;;  %v5579_v9 = vadd.f32 %v3407_v1, %v2216_v30  ;;  %v3409_v23 = vpop.f32.mrb[11].mxu1  ;;  %v7813_v18 = vpack.c.bf16 %v3526_v24, %v3522_v42 }
 0x4bb   : > { %v8282_v48 = vand.u32 4294901760, %v7807_v46  ;;  %v3532_v15 = vand.u32 4294901760, %v3466_v33  ;;  %v3467_v41 = vsel %vm3435_vm10, %v5578_v31, %v3451_v14  ;;  %v5580_v0 = vadd.f32 %v3409_v23, %v2216_v30  ;;  %v2226_v23 = vpop.permute.xlu1 %2225 }
 0x4bc   : > { %v3530_v55 = vand.u32 4294901760, %v3467_v41  ;;  %vm3436_vm11 = vcmp.gt.f32.partialorder %v5579_v9, 0.0  ;;  %v3452_v57 = vmul.f32 0.2, %v5579_v9  ;;  %5398 = vmatprep.subr.bf16.mxu1 %v7813_v18  ;;  %v3655_v29 = vand.u32 4294901760, %v3654_v19 }
 0x4bd   : > { %v7817_v10 = vsub.f32 %v3466_v33, %v3532_v15  ;;  %vm3437_vm12 = vcmp.gt.f32.partialorder %v5580_v0, 0.0  ;;  %v3453_v45 = vmul.f32 0.2, %v5580_v0  ;;  %v3414_v51 = vpop.f32.mrb[12].mxu1  ;;  %5400 = vmatpush1.bf16.msra.mxu1 %v7809_v58  ;;  %v3648_v42 = vsub.f32 %v7772_v35, %v8283_v59 }
 0x4be   : > { %v7823_v44 = vsub.f32 %v3467_v41, %v3530_v55  ;;  %v3468_v39 = vsel %vm3436_vm11, %v5579_v9, %v3452_v57  ;;  %v5581_v21 = vadd.f32 %v3414_v51, %v2221_v6  ;;  %v3416_v16 = vpop.f32.mrb[13].mxu1  ;;  %v7825_v31 = vpack.c.bf16 %v3655_v29, %v3643_v27 }
 0x4bf   : > { %v8281_v24 = vand.u32 4294901760, %v7817_v10  ;;  %v3536_v52 = vand.u32 4294901760, %v3468_v39  ;;  %v3469_v19 = vsel %vm3437_vm12, %v5580_v0, %v3453_v45  ;;  %v5582_v30 = vadd.f32 %v3416_v16, %v2221_v6 }
 0x4c0   : > { %v3534_v14 = vand.u32 4294901760, %v3469_v19  ;;  %vm3438_vm13 = vcmp.gt.f32.partialorder %v5581_v21, 0.0  ;;  %v3454_v1 = vmul.f32 0.2, %v5581_v21  ;;  %v3649_v33 = vand.u32 4294901760, %v3648_v42 }
 0x4c1   : > { %v7828_v49 = vsub.f32 %v3468_v39, %v3536_v52  ;;  %vm3439_vm14 = vcmp.gt.f32.partialorder %v5582_v30, 0.0  ;;  %v3455_v41 = vmul.f32 0.2, %v5582_v30  ;;  %v3421_v20 = vpop.f32.mrb[14].mxu1  ;;  %v7830_v9 = vpack.c.bf16 %v3536_v52, %v3532_v15 }
 0x4c2   : > { %v7832_v57 = vsub.f32 %v3469_v19, %v3534_v14  ;;  %v3470_v27 = vsel %vm3438_vm13, %v5581_v21, %v3454_v1  ;;  %v5583_v29 = vadd.f32 %v3421_v20, %v2226_v23  ;;  %v3423_v51 = vpop.f32.mrb[15].mxu1  ;;  %v7834_v7 = vpack.c.bf16 %v3534_v14, %v3530_v55 }
 0x4c3   : > { %v8280_v0 = vand.u32 4294901760, %v7828_v49  ;;  %v3540_v6 = vand.u32 4294901760, %v3470_v27  ;;  %v3471_v45 = vsel %vm3439_vm14, %v5582_v30, %v3455_v41  ;;  %v5584_v42 = vadd.f32 %v3423_v51, %v2226_v23 }
 0x4c4   : > { %v3538_v16 = vand.u32 4294901760, %v3471_v45  ;;  %vm3440_vm15 = vcmp.gt.f32.partialorder %v5583_v29, 0.0  ;;  %v3456_v39 = vmul.f32 0.2, %v5583_v29  ;;  %5402 = vmatprep.subr.bf16.mxu1 %v7834_v7  ;;  %v3660_v15 = vsub.f32 %v7784_v36, %v8278_v22 }
 0x4c5   : > { %v7841_v52 = vsub.f32 %v3470_v27, %v3540_v6  ;;  %vm3441_vm0 = vcmp.gt.f32.partialorder %v5584_v42, 0.0  ;;  %v3457_v20 = vmul.f32 0.2, %v5584_v42  ;;  %5404 = vmatpush1.bf16.msra.mxu1 %v7830_v9  ;;  %v8276_v55 = vand.u32 4294901760, %v7801_v40 }
 0x4c6   : > { %v7845_v21 = vsub.f32 %v3471_v45, %v3538_v16  ;;  %v3472_v19 = vsel %vm3440_vm15, %v5583_v29, %v3456_v39  ;;  %v3661_v30 = vand.u32 4294901760, %v3660_v15  ;;  %v8277_v14 = vand.u32 4294901760, %v7811_v2 }
 0x4c7   : > { %v8285_v1 = vand.u32 4294901760, %v7841_v52  ;;  %v3544_v23 = vand.u32 4294901760, %v3472_v19  ;;  %v3473_v41 = vsel %vm3441_vm0, %v5584_v42, %v3457_v20  ;;  %v3666_v27 = vsub.f32 %v7801_v40, %v8276_v55 }
 0x4c8   : > { %v3542_v51 = vand.u32 4294901760, %v3473_v41  ;;  %v5411_v4 = vpack.c.bf16 %v3661_v30, %v3649_v33  ;;  %v3678_v56 = vsub.f32 %v7811_v2, %v8277_v14  ;;  %v3672_v29 = vsub.f32 %v7797_v61, %v8279_v12 }
 0x4c9   : > { %v7858_v45 = vsub.f32 %v3472_v19, %v3544_v23  ;;  %v7860_v39 = vpack.c.bf16 %v3544_v23, %v3540_v6  ;;  %v3667_v15 = vand.u32 4294901760, %v3666_v27  ;;  %v3684_v42 = vsub.f32 %v7807_v46, %v8282_v48 }
 0x4ca   : > { %v7865_v20 = vsub.f32 %v3473_v41, %v3542_v51  ;;  %v7867_v33 = vpack.c.bf16 %v3542_v51, %v3538_v16  ;;  %v3679_v30 = vand.u32 4294901760, %v3678_v56  ;;  %v3673_v55 = vand.u32 4294901760, %v3672_v29 }
 0x4cb   : > { %v3731_v14 = vand.u32 4294901760, %v7858_v45  ;;  %v3685_v22 = vand.u32 4294901760, %v3684_v42  ;;  %v3689_v12 = vand.u32 4294901760, %v7823_v44  ;;  %v3701_v19 = vand.u32 4294901760, %v7832_v57 }
 0x4cc   : > { %5406 = vmatprep.subr.bf16.mxu1 %v7867_v33  ;;  %v5413_v6 = vpack.c.bf16 %v3679_v30, %v3667_v15  ;;  %v3696_v23 = vsub.f32 %v7817_v10, %v8281_v24  ;;  %v3708_v16 = vsub.f32 %v7828_v49, %v8280_v0  ;;  %v3713_v56 = vand.u32 4294901760, %v7845_v21 }
 0x4cd   : > { %5408 = vmatpush1.bf16.msra.mxu1 %v7860_v39  ;;  %v5415_v41 = vpack.c.bf16 %v3685_v22, %v3673_v55  ;;  %v3690_v27 = vsub.f32 %v7823_v44, %v3689_v12  ;;  %v3702_v51 = vsub.f32 %v7832_v57, %v3701_v19  ;;  %v3725_v29 = vand.u32 4294901760, %v7865_v20 }
 0x4ce   : > { %5410 = vmatprep.subr.bf16.mxu1 %v7825_v31  ;;  %v3697_v15 = vand.u32 4294901760, %v3696_v23  ;;  %v3709_v42 = vand.u32 4294901760, %v3708_v16  ;;  %v3714_v30 = vsub.f32 %v7845_v21, %v3713_v56  ;;  %v3720_v0 = vsub.f32 %v7841_v52, %v8285_v1 }
 0x4cf   : > { %v3691_v24 = vand.u32 4294901760, %v3690_v27  ;;  %v3703_v48 = vand.u32 4294901760, %v3702_v51  ;;  %v3726_v22 = vsub.f32 %v7865_v20, %v3725_v29  ;;  %v3732_v55 = vsub.f32 %v7858_v45, %v3731_v14 }
 0x4d0   : > { %3600 = vmatmul.mubr.f32.vlgmr.msra.gmra.mrb[16].mxu1 %v3599_v50  ;;  %v5419_v59 = vpack.c.bf16 %v3709_v42, %v3697_v15  ;;  %v3715_v5 = vand.u32 4294901760, %v3714_v30  ;;  %v3721_v31 = vand.u32 4294901760, %v3720_v0  ;;  %v5425_v23 = vpack.c.bf16 %v7788_v47, %v7775_v37 }
 0x4d1   : > { %5412 = vmatpush1.bf16.msra.mxu1 %v5411_v4  ;;  %3605 = vmatprep.mubr.f32.mxu1 %v8304_v54  ;;  %v5417_v16 = vpack.c.bf16 %v3703_v48, %v3691_v24  ;;  %v3727_v1 = vand.u32 4294901760, %v3726_v22  ;;  %v3733_v27 = vand.u32 4294901760, %v3732_v55  ;;  %v5427_v51 = vpack.c.bf16 %v7784_v36, %v7772_v35 }
 0x4d2   : > { %5414 = vmatprep.subr.bf16.mxu1 %v5413_v6  ;;  %v5429_v13 = vpack.c.bf16 %v7811_v2, %v7801_v40  ;;  %v5431_v50 = vpack.c.bf16 %v7807_v46, %v7797_v61  ;;  %v5433_v0 = vpack.c.bf16 %v7832_v57, %v7823_v44  ;;  %v5435_v4 = vpack.c.bf16 %v7828_v49, %v7817_v10 }
 0x4d3   : > { %v5421_v15 = vpack.c.bf16 %v3727_v1, %v3715_v5  ;;  %v5423_v48 = vpack.c.bf16 %v3733_v27, %v3721_v31  ;;  %v5437_v24 = vpack.c.bf16 %v7865_v20, %v7845_v21  ;;  %v5439_v6 = vpack.c.bf16 %v7858_v45, %v7841_v52 }
 0x4d4   : > { %3611 = vmatmul.mubr.f32.gmra.mrb[18].mxu1 %v3610_v34  ;;  %v8488_v42 = vand.u32 4294901760, %v7788_v47  ;;  %v8489_v44 = vand.u32 4294901760, %v7772_v35  ;;  %v8490_v57 = vand.u32 4294901760, %v7784_v36  ;;  %v8491_v1 = vand.u32 4294901760, %v7801_v40 }
 0x4d5   : > { %v8492_v21 = vand.u32 4294901760, %v7811_v2  ;;  %v8493_v45 = vand.u32 4294901760, %v7797_v61  ;;  %v8494_v38 = vand.u32 4294901760, %v7807_v46  ;;  %5416 = vmatpush1.bf16.msra.mxu1 %v5415_v41  ;;  %3616 = vmatprep.mubr.f32.mxu1 %v8304_v54  ;;  %v5465_v37 = vpack.c.bf16 %v3701_v19, %v3689_v12 }
 0x4d6   : > { %v5457_v30 = vpack.c.bf16 %v8488_v42, %v3641_v17  ;;  %v5459_v5 = vpack.c.bf16 %v8490_v57, %v8489_v44  ;;  %v8495_v17 = vand.u32 4294901760, %v7817_v10  ;;  %v8496_v35 = vand.u32 4294901760, %v7828_v49  ;;  %5418 = vmatprep.subr.bf16.mxu1 %v5417_v16 }
 0x4d7   : > { %v5461_v20 = vpack.c.bf16 %v8492_v21, %v8491_v1  ;;  %v5463_v34 = vpack.c.bf16 %v8494_v38, %v8493_v45  ;;  %v5469_v47 = vpack.c.bf16 %v3725_v29, %v3713_v56  ;;  %v8497_v40 = vand.u32 4294901760, %v7841_v52 }
 0x4d8   : > { %v5467_v36 = vpack.c.bf16 %v8496_v35, %v8495_v17  ;;  %v8498_v22 = vand.u32 4294901760, %v7767_v11  ;;  %v3632_v61 = vand.u32 4294901760, %v7780_v25  ;;  %v8499_v11 = vand.u32 4294901760, %v7737_v32 }
 0x4d9   : > { %v5471_v2 = vpack.c.bf16 %v3731_v14, %v8497_v40  ;;  %5420 = vmatpush1.bf16.msra.mxu1 %v5419_v59  ;;  %v8500_v49 = vand.u32 4294901760, %v7741_v26  ;;  %v8501_v25 = vand.u32 4294901760, %v7744_v8 }
 0x4da   : > { %3622 = vmatmul.mubr.f32.gmra.mrb[20].mxu1 %v8498_v22  ;;  %5422 = vmatprep.subr.bf16.mxu1 %v5421_v15 }
 0x4db   : > { %3627 = vmatprep.mubr.f32.mxu1 %v8304_v54 }
 0x4dd   : > { %5424 = vmatpush1.bf16.msra.mxu1 %v5423_v48 }
 0x4de   : > { %3633 = vmatmul.mubr.f32.gmra.mrb[22].mxu1 %v3632_v61  ;;  %5426 = vmatprep.subr.bf16.mxu1 %v5425_v23 }
 0x4df   : > { %3783 = vmatprep.mubr.f32.mxu1 %v8304_v54 }
 0x4e2   : > { %3785 = vmatmul.mubr.f32.vlgmr.msra.gmra.mrb[16].mxu1 %v7727_v62 }
 0x4e3   : > { %5428 = vmatpush1.bf16.msra.mxu1 %v5427_v51  ;;  %3790 = vmatprep.mubr.f32.mxu1 %v8304_v54 }
 0x4e4   : > { %5430 = vmatprep.subr.bf16.mxu1 %v5429_v13 }
 0x4e6   : > { %3792 = vmatmul.mubr.f32.gmra.mrb[18].mxu1 %v7729_v3 }
 0x4e7   : > { %5432 = vmatpush1.bf16.msra.mxu1 %v5431_v50  ;;  %3797 = vmatprep.mubr.f32.mxu1 %v8304_v54 }
 0x4e8   : > { %5434 = vmatprep.subr.bf16.mxu1 %v5433_v0 }
 0x4ea   : > { %3799 = vmatmul.mubr.f32.gmra.mrb[20].mxu1 %v7734_v60 }
 0x4eb   : > { %5436 = vmatpush1.bf16.msra.mxu1 %v5435_v4  ;;  %3804 = vmatprep.mubr.f32.mxu1 %v8304_v54 }
 0x4ec   : > { %5438 = vmatprep.subr.bf16.mxu1 %v5437_v24 }
 0x4ee   : > { %3806 = vmatmul.mubr.f32.gmra.mrb[22].mxu1 %v7746_v63 }
 0x4ef   : > { %5440 = vmatpush1.bf16.msra.mxu1 %v5439_v6  ;;  %3908 = vmatprep.mubr.f32.mxu1 %v8304_v54 }
 0x4f0   : > { %5442 = vmatprep.subr.bf16.mxu1 %v7790_v53 }
 0x4f2   : > { %3911 = vmatmul.mubr.f32.vlgmr.msra.gmra.mrb[16].mxu1 %v7737_v32  ;;  %v8502_v32 = vand.u32 4294901760, %v7752_v28 }
 0x4f3   : > { %5444 = vmatpush1.bf16.msra.mxu1 %v7786_v43  ;;  %3916 = vmatprep.mubr.f32.mxu1 %v8304_v54 }
 0x4f4   : > { %5446 = vmatprep.subr.bf16.mxu1 %v7813_v18 }
 0x4f6   : > { %3919 = vmatmul.mubr.f32.gmra.mrb[18].mxu1 %v7741_v26  ;;  %v4316_v26 = vld [vmem:[%s8145_s9] sm:$0xff] }
 0x4f7   : > { %5448 = vmatpush1.bf16.msra.mxu1 %v7809_v58  ;;  %3924 = vmatprep.mubr.f32.mxu1 %v8304_v54 }
 0x4f8   : > { %5450 = vmatprep.subr.bf16.mxu1 %v7834_v7 }
 0x4fa   : > { %3927 = vmatmul.mubr.f32.gmra.mrb[20].mxu1 %v7744_v8 }
 0x4fb   : > { %5452 = vmatpush1.bf16.msra.mxu1 %v7830_v9  ;;  %3932 = vmatprep.mubr.f32.mxu1 %v8304_v54 }
 0x4fc   : > { %5454 = vmatprep.subr.bf16.mxu1 %v7867_v33 }
 0x4fe   : > { %3935 = vmatmul.mubr.f32.gmra.mrb[22].mxu1 %v7752_v28 }
 0x4ff   : > { %5456 = vmatpush1.bf16.msra.mxu1 %v7860_v39  ;;  %4021 = vmatprep.mubr.f32.mxu1 %v8304_v54 }
 0x500   : > { %5458 = vmatprep.subr.bf16.mxu1 %v5457_v30 }
 0x502   : > { %4025 = vmatmul.mubr.f32.vlgmr.msra.gmra.mrb[16].mxu1 %v8499_v11 }
 0x503   : > { %5460 = vmatpush1.bf16.msra.mxu1 %v5459_v5  ;;  %4030 = vmatprep.mubr.f32.mxu1 %v8304_v54 }
 0x504   : > { %5462 = vmatprep.subr.bf16.mxu1 %v5461_v20 }
 0x506   : > { %4034 = vmatmul.mubr.f32.gmra.mrb[18].mxu1 %v8500_v49 }
 0x507   : > { %5464 = vmatpush1.bf16.msra.mxu1 %v5463_v34  ;;  %4039 = vmatprep.mubr.f32.mxu1 %v8304_v54 }
 0x508   : > { %5466 = vmatprep.subr.bf16.mxu1 %v5465_v37 }
 0x50a   : > { %4043 = vmatmul.mubr.f32.gmra.mrb[20].mxu1 %v8501_v25 }
 0x50b   : > { %5468 = vmatpush1.bf16.msra.mxu1 %v5467_v36  ;;  %4048 = vmatprep.mubr.f32.mxu1 %v8304_v54 }
 0x50c   : > { %5470 = vmatprep.subr.bf16.mxu1 %v5469_v47 }
 0x50e   : > { %4052 = vmatmul.mubr.f32.gmra.mrb[22].mxu1 %v8502_v32 }
 0x50f   : > { %5472 = vmatpush1.bf16.msra.mxu1 %v5471_v2  ;;  %4170 = vmatprep.mubr.f32.mxu1 %v8304_v54 }
 0x510   : > { %5474 = vmatprep.subr.bf16.mxu1 %v7790_v53 }
 0x512   : > { %4172 = vmatmul.mubr.f32.vlgmr.msra.gmra.mrb[16].mxu1 %v7727_v62 }
 0x513   : > { %5476 = vmatpush1.bf16.msra.mxu1 %v7786_v43  ;;  %4177 = vmatprep.mubr.f32.mxu1 %v8304_v54 }
 0x514   : > { %5478 = vmatprep.subr.bf16.mxu1 %v7813_v18 }
 0x516   : > { %4179 = vmatmul.mubr.f32.gmra.mrb[18].mxu1 %v7729_v3 }
 0x517   : > { %5480 = vmatpush1.bf16.msra.mxu1 %v7809_v58  ;;  %4184 = vmatprep.mubr.f32.mxu1 %v8304_v54  ;;  %v3490_v58 = vpop.permute.xlu1 %3489 }
 0x518   : > { %5482 = vmatprep.subr.bf16.mxu1 %v7834_v7 }
 0x51a   : > { %4186 = vmatmul.mubr.f32.gmra.mrb[20].mxu1 %v7734_v60 }
 0x51b   : > { %5484 = vmatpush1.bf16.msra.mxu1 %v7830_v9  ;;  %4191 = vmatprep.mubr.f32.mxu1 %v8304_v54  ;;  %v3500_v57 = vpop.permute.xlu1 %3499 }
 0x51c   : > { %5486 = vmatprep.subr.bf16.mxu1 %v7867_v33 }
 0x51e   : > { %4193 = vmatmul.mubr.f32.gmra.mrb[22].mxu1 %v7746_v63 }
 0x51f   : > { %5488 = vmatpush1.bf16.msra.mxu1 %v7860_v39  ;;  %4279 = vmatprep.mubr.f32.mxu1 %v8304_v54 }
 0x522   : > { %4281 = vmatmul.mubr.f32.vlgmr.msra.gmra.mrb[16].mxu1 %v7727_v62  ;;  %v4332_v62 = vsel %vm4330_vm1, %v4316_v26, 0 }
 0x523   : > { %4286 = vmatprep.mubr.f32.mxu1 %v8304_v54  ;;  %v8006_v8 = vand.u32 4294901760, %v4332_v62 }
 0x526   : > { %4288 = vmatmul.mubr.f32.gmra.mrb[18].mxu1 %v7729_v3  ;;  %v4317_v3 = vld [vmem:[%s8145_s9 + $0x8] sm:$0xff] }
 0x527   : > { %4293 = vmatprep.mubr.f32.mxu1 %v8304_v54  ;;  %v4335_v7 = vsel %vm4330_vm1, %v4317_v3, 0 }
 0x528   : > { %v8011_v12 = vand.u32 4294901760, %v4335_v7 }
 0x52a   : > { %4295 = vmatmul.mubr.f32.gmra.mrb[20].mxu1 %v7734_v60  ;;  %v3485_v60 = vpop.permute.xlu0 %3484  ;;  %v8015_v56 = vsub.f32 %v4335_v7, %v8011_v12 }
 0x52b   : > { %4300 = vmatprep.mubr.f32.mxu1 %v8304_v54 }
 0x52c   : > { %v4423_v24 = vand.u32 4294901760, %v8015_v56 }
 0x52e   : > { %4302 = vmatmul.mubr.f32.gmra.mrb[22].mxu1 %v7746_v63  ;;  %v8009_v63 = vsub.f32 %v4332_v62, %v8006_v8  ;;  %v3495_v55 = vpop.permute.xlu0 %3494 }
 0x52f   : > { %4409 = vmatprep.mubr.f32.mxu1 %v8304_v54 }
 0x530   : > { %v4412_v39 = vand.u32 4294901760, %v8009_v63 }
 0x532   : > { %v8025_v0 = vsub.f32 %v8009_v63, %v4412_v39 }
 0x5f5   : > { %v4282_v28 = vpop.f32.mrb[16].mxu1 }
 0x5f6   : > { %v5585_v59 = vadd.f32 %v4282_v28, %v3485_v60  ;;  %v4284_v43 = vpop.f32.mrb[17].mxu1 }
 0x5f7   : > { %v5586_v53 = vadd.f32 %v4284_v43, %v3485_v60 }
 0x5f8   : > { %v4308_v46 = vmax.f32 %v5585_v59, 0.0 }
 0x5f9   : > { %v4309_v18 = vmax.f32 %v5586_v53, 0.0  ;;  %v4289_v10 = vpop.f32.mrb[18].mxu1 }
 0x5fa   : > { %v4339_v9 = vand.u32 4294901760, %v4308_v46  ;;  %v5587_v52 = vadd.f32 %v4289_v10, %v3490_v58  ;;  %v4291_v14 = vpop.f32.mrb[19].mxu1 }
 0x5fb   : > { %v4337_v33 = vand.u32 4294901760, %v4309_v18  ;;  %v5588_v19 = vadd.f32 %v4291_v14, %v3490_v58 }
 0x5fc   : > { %v8017_v41 = vsub.f32 %v4308_v46, %v4339_v9  ;;  %v4310_v29 = vmax.f32 %v5587_v52, 0.0 }
 0x5fd   : > { %v8019_v31 = vsub.f32 %v4309_v18, %v4337_v33  ;;  %v4311_v23 = vmax.f32 %v5588_v19, 0.0  ;;  %v4296_v16 = vpop.f32.mrb[20].mxu1 }
 0x5fe   : > { %v4440_v27 = vand.u32 4294901760, %v8017_v41  ;;  %v4343_v51 = vand.u32 4294901760, %v4310_v29  ;;  %v5589_v13 = vadd.f32 %v4296_v16, %v3495_v55  ;;  %v4298_v50 = vpop.f32.mrb[21].mxu1 }
 0x5ff   : > { %v4434_v4 = vand.u32 4294901760, %v8019_v31  ;;  %v4341_v15 = vand.u32 4294901760, %v4311_v23  ;;  %v5590_v48 = vadd.f32 %v4298_v50, %v3495_v55 }
 0x600   : > { %v4441_v6 = vsub.f32 %v8017_v41, %v4440_v27  ;;  %v8030_v42 = vpack.c.bf16 %v4343_v51, %v4339_v9  ;;  %v8032_v30 = vsub.f32 %v4310_v29, %v4343_v51  ;;  %v4312_v44 = vmax.f32 %v5589_v13, 0.0 }
 0x601   : > { %v8034_v5 = vsub.f32 %v4311_v23, %v4341_v15  ;;  %v4313_v1 = vmax.f32 %v5590_v48, 0.0  ;;  %v4303_v21 = vpop.f32.mrb[22].mxu1  ;;  %v8036_v20 = vpack.c.bf16 %v4341_v15, %v4337_v33  ;;  %v4435_v45 = vsub.f32 %v8019_v31, %v4434_v4 }
 0x602   : > { %v4442_v38 = vand.u32 4294901760, %v4441_v6  ;;  %v4452_v34 = vand.u32 4294901760, %v8032_v30  ;;  %v4347_v37 = vand.u32 4294901760, %v4312_v44  ;;  %v5591_v17 = vadd.f32 %v4303_v21, %v3500_v57  ;;  %v4305_v35 = vpop.f32.mrb[23].mxu1 }
 0x603   : > { %v4446_v36 = vand.u32 4294901760, %v8034_v5  ;;  %v4345_v47 = vand.u32 4294901760, %v4313_v1  ;;  %v5592_v40 = vadd.f32 %v4305_v35, %v3500_v57  ;;  %5490 = vmatprep.subr.bf16.mxu1 %v8036_v20  ;;  %v4436_v2 = vand.u32 4294901760, %v4435_v45 }
 0x604   : > { %v4453_v22 = vsub.f32 %v8032_v30, %v4452_v34  ;;  %v4463_v61 = vsub.f32 %v4312_v44, %v4347_v37  ;;  %v4314_v11 = vmax.f32 %v5591_v17, 0.0  ;;  %5492 = vmatpush1.bf16.msra.mxu1 %v8030_v42  ;;  %v5505_v49 = vpack.c.bf16 %v8034_v5, %v8019_v31 }
 0x605   : > { %v4457_v25 = vsub.f32 %v4313_v1, %v4345_v47  ;;  %v4315_v32 = vmax.f32 %v5592_v40, 0.0  ;;  %v4447_v26 = vsub.f32 %v8034_v5, %v4446_v36  ;;  %v5507_v62 = vpack.c.bf16 %v8032_v30, %v8017_v41  ;;  %v4328_v5 = vpop.permute.xlu1 %4327 }
 0x606   : > { %v4454_v3 = vand.u32 4294901760, %v4453_v22  ;;  %v4464_v7 = vand.u32 4294901760, %v4463_v61  ;;  %v4351_v60 = vand.u32 4294901760, %v4314_v11  ;;  %v5521_v28 = vpack.c.bf16 %v4446_v36, %v4434_v4 }
 0x607   : > { %v4458_v59 = vand.u32 4294901760, %v4457_v25  ;;  %v4349_v43 = vand.u32 4294901760, %v4315_v32  ;;  %v4448_v53 = vand.u32 4294901760, %v4447_v26  ;;  %v5523_v46 = vpack.c.bf16 %v4452_v34, %v4440_v27 }
 0x608   : > { %v8049_v58 = vpack.c.bf16 %v4351_v60, %v4347_v37  ;;  %v4475_v18 = vsub.f32 %v4314_v11, %v4351_v60  ;;  %v5499_v10 = vpack.c.bf16 %v4454_v3, %v4442_v38  ;;  %v4465_v33 = vsub.f32 %v4463_v61, %v4464_v7 }
 0x609   : > { %v4469_v9 = vsub.f32 %v4315_v32, %v4349_v43  ;;  %v5493_v52 = vpack.c.bf16 %v4349_v43, %v4345_v47  ;;  %v5497_v14 = vpack.c.bf16 %v4448_v53, %v4436_v2  ;;  %v4414_v29 = vand.u32 4294901760, %v8025_v0  ;;  %v4963_v11 = vpop.permute.xlu1 %4962 }
 0x60a   : > { %v4476_v19 = vand.u32 4294901760, %v4475_v18  ;;  %v5511_v41 = vpack.c.bf16 %v4475_v18, %v4463_v61  ;;  %v4424_v31 = vsub.f32 %v8015_v56, %v4423_v24  ;;  %v4459_v23 = vsub.f32 %v4457_v25, %v4458_v59 }
 0x60b   : > { %v4470_v55 = vand.u32 4294901760, %v4469_v9  ;;  %5494 = vmatprep.subr.bf16.mxu1 %v5493_v52  ;;  %v5509_v16 = vpack.c.bf16 %v4469_v9, %v4457_v25  ;;  %v4466_v4 = vand.u32 4294901760, %v4465_v33 }
 0x60c   : > { %v4477_v27 = vsub.f32 %v4475_v18, %v4476_v19  ;;  %5496 = vmatpush1.bf16.msra.mxu1 %v8049_v58  ;;  %v5527_v51 = vpack.c.bf16 %v4476_v19, %v4464_v7  ;;  %v4425_v0 = vand.u32 4294901760, %v4424_v31  ;;  %v4460_v48 = vand.u32 4294901760, %v4459_v23 }
 0x60d   : > { %5498 = vmatprep.subr.bf16.mxu1 %v5497_v14  ;;  %v4471_v13 = vsub.f32 %v4469_v9, %v4470_v55  ;;  %v5525_v50 = vpack.c.bf16 %v4470_v55, %v4458_v59  ;;  %v6087_v18 = vmov 1966171168  }
 0x60e   : > { %v4478_v15 = vand.u32 4294901760, %v4477_v27 }
 0x60f   : > { %4415 = vmatmul.mubr.f32.vlgmr.msra.gmra.mrb[24].mxu1 %v4414_v29  ;;  %v4472_v6 = vand.u32 4294901760, %v4471_v13 }
 0x610   : > { %5500 = vmatpush1.bf16.msra.mxu1 %v5499_v10  ;;  %4420 = vmatprep.mubr.f32.mxu1 %v8304_v54  ;;  %v5503_v30 = vpack.c.bf16 %v4478_v15, %v4466_v4  ;;  %v4999_v10 = vunpack.c.l.s4 %v6087_v18  ;;  %v8505_v15 = vlaneseq }
 0x611   : > { %v5501_v44 = vpack.c.bf16 %v4472_v6, %v4460_v48 }
 0x612   : > { %v5000_v29 = vunpack.c.0.s8 %v4999_v10  ;;  %vm5015_vm2 = vcmp.lt.s32.totalorder %v8505_v15, 256 }
 0x613   : > { %4426 = vmatmul.mubr.f32.gmra.mrb[26].mxu1 %v4425_v0  ;;  %5502 = vmatprep.subr.bf16.mxu1 %v5501_v44 }
 0x614   : > { %5504 = vmatpush1.bf16.msra.mxu1 %v5503_v30  ;;  %4536 = vmatprep.mubr.f32.mxu1 %v8304_v54 }
 0x615   : > { %5506 = vmatprep.subr.bf16.mxu1 %v5505_v49 }
 0x617   : > { %4538 = vmatmul.mubr.f32.vlgmr.msra.gmra.mrb[24].mxu1 %v8006_v8 }
 0x618   : > { %5508 = vmatpush1.bf16.msra.mxu1 %v5507_v62  ;;  %4543 = vmatprep.mubr.f32.mxu1 %v8304_v54 }
 0x619   : > { %5510 = vmatprep.subr.bf16.mxu1 %v5509_v16 }
 0x61b   : > { %4545 = vmatmul.mubr.f32.gmra.mrb[26].mxu1 %v8011_v12 }
 0x61c   : > { %5512 = vmatpush1.bf16.msra.mxu1 %v5511_v41  ;;  %4631 = vmatprep.mubr.f32.mxu1 %v8304_v54  ;;  %v8503_v41 = vld [vmem:[#allocation7_spill] sm:$0xff] }
 0x61d   : > { %5514 = vmatprep.subr.bf16.mxu1 %v8036_v20  ;;  %v8504_v55 = vsub.s32 0, %v8503_v41  ;;  %v5003_v13 = vsub.s32 %v5000_v29, %v8503_v41 }
 0x61f   : > { %4634 = vmatmul.mubr.f32.vlgmr.msra.gmra.mrb[24].mxu1 %v8009_v63  ;;  %v4323_v63 = vpop.permute.xlu0 %4322 }
 0x620   : > { %5516 = vmatpush1.bf16.msra.mxu1 %v8030_v42  ;;  %4639 = vmatprep.mubr.f32.mxu1 %v8304_v54 }
 0x621   : > { %5518 = vmatprep.subr.bf16.mxu1 %v5493_v52 }
 0x623   : > { %4642 = vmatmul.mubr.f32.gmra.mrb[26].mxu1 %v8015_v56  ;;  %v4958_v49 = vpop.permute.xlu0 %4957 }
 0x624   : > { %5520 = vmatpush1.bf16.msra.mxu1 %v8049_v58  ;;  %4720 = vmatprep.mubr.f32.mxu1 %v8304_v54 }
 0x625   : > { %5522 = vmatprep.subr.bf16.mxu1 %v5521_v28 }
 0x627   : > { %4724 = vmatmul.mubr.f32.vlgmr.msra.gmra.mrb[24].mxu1 %v4412_v39 }
 0x628   : > { %5524 = vmatpush1.bf16.msra.mxu1 %v5523_v46  ;;  %4729 = vmatprep.mubr.f32.mxu1 %v8304_v54 }
 0x629   : > { %5526 = vmatprep.subr.bf16.mxu1 %v5525_v50 }
 0x62b   : > { %4733 = vmatmul.mubr.f32.gmra.mrb[26].mxu1 %v4423_v24 }
 0x62c   : > { %5528 = vmatpush1.bf16.msra.mxu1 %v5527_v51  ;;  %4827 = vmatprep.mubr.f32.mxu1 %v8304_v54 }
 0x62d   : > { %5530 = vmatprep.subr.bf16.mxu1 %v8036_v20 }
 0x62f   : > { %4829 = vmatmul.mubr.f32.vlgmr.msra.gmra.mrb[24].mxu1 %v8006_v8 }
 0x630   : > { %5532 = vmatpush1.bf16.msra.mxu1 %v8030_v42  ;;  %4834 = vmatprep.mubr.f32.mxu1 %v8304_v54 }
 0x631   : > { %5534 = vmatprep.subr.bf16.mxu1 %v5493_v52  ;;  %v4987_v52 = vpop.permute.xlu0 %4986 }
 0x632   : > { %v4992_v31 = vrot.slane %v4987_v52, %v8504_v55 }
 0x633   : > { %4836 = vmatmul.mubr.f32.gmra.mrb[26].mxu1 %v8011_v12 }
 0x634   : > { %5536 = vmatpush1.bf16.msra.mxu1 %v8049_v58  ;;  %4914 = vmatprep.mubr.f32.mxu1 %v8304_v54 }
 0x637   : > { %4916 = vmatmul.mubr.f32.vlgmr.msra.gmra.mrb[24].mxu1 %v8006_v8 }
 0x638   : > { %4921 = vmatprep.mubr.f32.mxu1 %v8304_v54 }
 0x63b   : > { %4923 = vmatmul.mubr.f32.gmra.mrb[26].mxu1 %v8011_v12 }
 0x70a   : > { %v4917_v39 = vpop.f32.mrb[24].mxu1 }
 0x70b   : > { %v5593_v56 = vadd.f32 %v4917_v39, %v4323_v63  ;;  %v4919_v24 = vpop.f32.mrb[25].mxu1 }
 0x70c   : > { %v5594_v42 = vadd.f32 %v4919_v24, %v4323_v63 }
 0x70d   : > { %v5095_v57 = vmul.f32 -1.442695, %v5593_v56 }
 0x70e   : > { %v5096_v1 = vmul.f32 -1.442695, %v5594_v42  ;;  %v4924_v21 = vpop.f32.mrb[26].mxu1 }
 0x70f   : > { %6005 = vpow2.f32 %v5095_v57  ;;  %v5595_v20 = vadd.f32 %v4924_v21, %v4328_v5  ;;  %v4926_v45 = vpop.f32.mrb[27].mxu1 }
 0x710   : > { %6007 = vpow2.f32 %v5096_v1  ;;  %v5596_v38 = vadd.f32 %v4926_v45, %v4328_v5 }
 0x711   : > { %v5097_v34 = vmul.f32 -1.442695, %v5595_v20 }
 0x712   : > { %v5098_v8 = vmul.f32 -1.442695, %v5596_v38 }
 0x713   : > { %6009 = vpow2.f32 %v5097_v34 }
 0x714   : > { %6011 = vpow2.f32 %v5098_v8 }
 0x719   : > { %v6006_v54 = vpop.eup %6005 }
 0x71a   : > { %v6008_v12 = vpop.eup %6007  ;;  %v4941_v37 = vadd.f32 1.0, %v6006_v54 }
 0x71b   : > { %v4942_v17 = vadd.f32 1.0, %v6008_v12 }
 0x71c   : > { %6013 = vrcp.f32 %v4941_v37 }
 0x71d   : > { %v6010_v35 = vpop.eup %6009  ;;  %6015 = vrcp.f32 %v4942_v17 }
 0x71e   : > { %v6012_v36 = vpop.eup %6011  ;;  %v4943_v47 = vadd.f32 1.0, %v6010_v35 }
 0x71f   : > { %v4944_v40 = vadd.f32 1.0, %v6012_v36 }
 0x720   : > { %6017 = vrcp.f32 %v4943_v47 }
 0x721   : > { %6019 = vrcp.f32 %v4944_v40 }
 0x726   : > { %v6014_v2 = vpop.eup %6013 }
 0x727   : > { %v6016_v22 = vpop.eup %6015  ;;  %v4965_v32 = vmul.f32 %v6014_v2, %v4958_v49 }
 0x728   : > { %v4966_v62 = vmul.f32 %v6016_v22, %v4958_v49 }
 0x72a   : > { %v6018_v61 = vpop.eup %6017 }
 0x72b   : > { %v6020_v25 = vpop.eup %6019  ;;  %v4967_v26 = vmul.f32 %v6018_v61, %v4963_v11 }
 0x72c   : > { %v4968_v3 = vmul.f32 %v6020_v25, %v4963_v11 }
 0x72d   : > { %v4969_v7 = vadd.f32 %v4967_v26, %v4965_v32 }
 0x72e   : > { %v4976_v60 = vadd.f32 %v4968_v3, %v4966_v62 }
 0x72f   : > { %v4970_v28 = vrot.slane %v4969_v7, 4 }
 0x730   : > { %v4977_v59 = vrot.slane %v4976_v60, 4 }
 0x731   : > { %v4971_v43 = vadd.f32 %v4970_v28, %v4969_v7 }
 0x732   : > { %v4978_v53 = vadd.f32 %v4977_v59, %v4976_v60 }
 0x733   : > { %v4972_v46 = vrot.slane %v4971_v43, 2 }
 0x734   : > { %v4979_v58 = vrot.slane %v4978_v53, 2 }
 0x735   : > { %v4973_v9 = vadd.f32 %v4972_v46, %v4971_v43 }
 0x736   : > { %v4980_v14 = vadd.f32 %v4979_v58, %v4978_v53 }
 0x737   : > { %v4974_v33 = vrot.slane %v4973_v9, 1 }
 0x738   : > { %v4981_v19 = vrot.slane %v4980_v14, 1 }
 0x739   : > { %v4975_v23 = vadd.f32 %v4974_v33, %v4973_v9 }
 0x73a   : > { %v4982_v16 = vadd.f32 %v4981_v19, %v4980_v14 }
 0x73b   : > { %v4993_v27 = vadd.f32 %v4992_v31, %v4975_v23 }
 0x73c   : > { %v4994_v51 = vadd.f32 %v4992_v31, %v4982_v16 }
 0x73e   : > { %v4997_v50 = vcombine.low %v4993_v27, %v4994_v51 }
 0x740   : > { %v5004_v4 = vrot.slane %v4997_v50, %v5003_v13 }
 0x742   : > { %v5011_v0 = vrot.slane %v5004_v4, %v5003_v13 }
 0x744   : > { %5017 = vst.msk [vmem:[%s434_s24] sm:$0x3] %vm5015_vm2, %v5011_v0 }
 0x745   : > { %6034 = shalt.err (!%p6031_p3)
}
 0x746   : > { %s6035_s22 = scalar_lea.hbm %s8094_s16, 32  ;;  %s6039_s26 = scalar_lea.hbm %s8149_s13, 128 }
 0x747   : > { %p6036_p4 = scmp.ne.s32.totalorder %s8094_s16, %s6035_s22  ;;  %p6040_p9 = scmp.lt.u32.totalorder %s8094_s16, %s8149_s13 }
 0x748   : > { %p6041_p10 = scmp.lt.u32.totalorder %s6039_s26, %s6035_s22  ;;  %p6043_p12 = scmp.lt.u32.totalorder %s6035_s22, %s8094_s16 }
 0x749   : > { %p6037_p7 = pnand %p6036_p4, %p6200_p5 }
 0x74a   : > { %p6042_p11 = por %p6041_p10, %p6040_p9 }
 0x74b   : > { %p6038_p8 = pneg %p6037_p7 }
 0x74c   : > { %p6044_p13 = por %p6043_p12, %p6042_p11 }
 0x74e   : > { %p6045_p0 = pnand %p6044_p13, %p6038_p8 }
 0x750   : > { %6048 = shalt.err (!%p6045_p0)
}
 0x751   : > { %5897 = dma.vmem_to_hbm [thread:$0]  (%p6200_p5), %s8096_s25, 32, %s8094_s16, %s5019_s17  }
 0x752 PF: > { %p5903_p1 = scmp.ge.s32.totalorder %s6083_s30, 2  ;;  %s5045_s0 = sand.u32 1, %s6071_s27  }
 0x753   : > { %s5046_s21 = scalar_lea.sflag [#allocation4], %s5045_s0 }
 0x754   : > { %p5900_p2 = pnand %p5903_p1, %p6204_p6 }
 0x756   : > { %6066 = dma.done.wait (!%p5900_p2), %s5046_s21, 32  }
 0x757   : > { %6068 = vsyncadd (!%p5900_p2), %s5046_s21, 4294967264  ;;  %s8506_s23 = sld [smem:[#allocation6_spill]]  ;;  %p25_p3 = scmp.ge.s32.totalorder %s6187_s15, 6  }
 0x758   : > { %s8507_s27 = smov %s6075_s28  ;;  %s8508_s28 = smov %s6079_s29 }
 0x759   : > { %s8510_s30 = smov %s6187_s15  ;;  %27 = sbr.rel (!%p25_p3) target bundleno = 6 (0x6), region = 107 }
 0x75d   : > { %s8509_s29 = smov %s8506_s23 }
 0x760   :  { %5051 = vsyncpa [#allocation4], 1 }
 0x761   :  { %5053 = vsyncpa [#allocation4 + $0x1], 1 }

</bundles_post_ra>
